<compile_context>
chip_gen: v6e
topology: v6e:2x2x1
jax: 0.10.0
libtpu: 0.0.40
codegen_flags: <defaults>
</compile_context>

<pallas_src>
import functools

import jax
import jax.numpy as jnp
from jax.experimental import pallas as pl
from jax.experimental.pallas import tpu as pltpu

BN_EPS = 1e-5
SOFTPLUS_THRESHOLD = 20.0


def _softplus(x):
    # matches torch.nn.Softplus(beta=1, threshold=20)
    safe = jnp.minimum(x, SOFTPLUS_THRESHOLD)
    return jnp.where(x > SOFTPLUS_THRESHOLD, x, jnp.log1p(jnp.exp(safe)))


def _default_vmem_limit():
    """Per-generation scoped VMEM limit: ~3/4 of physical, capped at 100 MiB
    (v5e/v6e: 128 MiB -> 96-100 MiB; v7x: 64 MiB -> 48 MiB)."""
    cap = None
    try:
        info = pltpu.get_tpu_info()
        cap = getattr(info, "vmem_capacity_bytes", None) or getattr(info, "vmem_bytes", None)
    except Exception:
        cap = None
    if not cap:
        return 48 * 1024 * 1024          # safe on every generation
    return int(min(100 * 1024 * 1024, (cap * 3) // 4))


def _atom_tile(n):
    # <=256-atom tiles keep per-step VMEM bounded (review: chunk edge work) and
    # give the pipeline / megacore grid something to parallelize over.
    for t in (256, 128, 64, 32, 16, 8):
        if t < n and n % t == 0:
            return t
    return n


# ----------------------------------------------------------------------------
# Pallas kernels
# ----------------------------------------------------------------------------
def _embed_kernel(x_ref, w_ref, b_ref, o_ref):
    o_ref[...] = (jnp.dot(x_ref[...], w_ref[...],
                          preferred_element_type=jnp.float32) + b_ref[...])


def _conv_kernel(atom_ref, nbr_ref, bond_ref,
                 wsf_ref, wsc_ref, wnf_ref, wnc_ref, wbf_ref, wbc_ref,
                 b1f_ref, b1c_ref, s2_ref, t2_ref,
                 out_ref, *, T, M, A):
    """One ConvLayer on one atom tile (T atoms, T*M edges).

    Filter/core weights are pre-split host-side, so the kernel never slices the
    gated tensor at the (non-128-aligned) lane boundary A.
    """
    f32 = jnp.float32
    atom = atom_ref[...]                                   # (T, A) f32
    atom_bf = atom.astype(jnp.bfloat16)
    nbr = nbr_ref[...]                                     # (T*M, A) bf16 (gathered)
    bond = bond_ref[...]                                   # (T*M, B) bf16

    # self (per-atom) halves; fc_full/bn1 bias folded in, added once then
    # broadcast over the M neighbors.
    self_f = jnp.dot(atom_bf, wsf_ref[...], preferred_element_type=f32) + b1f_ref[...]
    self_c = jnp.dot(atom_bf, wsc_ref[...], preferred_element_type=f32) + b1c_ref[...]

    # per-edge halves: filter_pre / core_pre computed directly.
    edge_f = (jnp.dot(nbr, wnf_ref[...], preferred_element_type=f32)
              + jnp.dot(bond, wbf_ref[...], preferred_element_type=f32))
    edge_c = (jnp.dot(nbr, wnc_ref[...], preferred_element_type=f32)
              + jnp.dot(bond, wbc_ref[...], preferred_element_type=f32))

    gate_f = self_f.reshape(T, 1, A) + edge_f.reshape(T, M, A)
    gate_c = self_c.reshape(T, 1, A) + edge_c.reshape(T, M, A)

    nbr_filter = jax.nn.sigmoid(gate_f)
    nbr_core = _softplus(gate_c)
    summed = jnp.sum(nbr_filter * nbr_core, axis=1)        # (T, A)

    summed = summed * s2_ref[...] + t2_ref[...]            # folded eval-mode bn2
    out_ref[...] = _softplus(atom + summed)


def _head_kernel(crys_ref, glob_ref, w1a_ref, w1b_ref, b1_ref, w2_ref, b2_ref,
                 out_ref):
    # softplus(cat[crys, glob]) -> Linear(H) -> softplus -> Linear(1)
    # concat avoided by splitting the fc weight into crys / global halves.
    crys = _softplus(crys_ref[...])
    glob = _softplus(glob_ref[...])
    h = (jnp.dot(crys.astype(jnp.bfloat16), w1a_ref[...],
                 preferred_element_type=jnp.float32)
         + jnp.dot(glob.astype(jnp.bfloat16), w1b_ref[...],
                   preferred_element_type=jnp.float32)
         + b1_ref[...])
    h = _softplus(h)
    out_ref[...] = (jnp.dot(h.astype(jnp.bfloat16), w2_ref[...],
                            preferred_element_type=jnp.float32) + b2_ref[...])


# ----------------------------------------------------------------------------
# Host-side (trace-time) parameter folding / layout plumbing
# ----------------------------------------------------------------------------
def _fold_bn1(w, b, gamma, beta, mean, var):
    scale = gamma * jax.lax.rsqrt(var + BN_EPS)            # per output channel
    w_f = w * scale[:, None]                               # (2A, 2A+B)
    b_f = (b - mean) * scale + beta                        # (2A,)
    return w_f, b_f


def _fold_bn2(gamma, beta, mean, var):
    scale = gamma * jax.lax.rsqrt(var + BN_EPS)
    shift = beta - mean * scale
    return scale, shift


def _fold_conv_params(p, A):
    """Fold eval-mode BN and split weights into self/nbr/bond x filter/core."""
    w_f, b_f = _fold_bn1(p["w"], p["b"], p["bn1_gamma"], p["bn1_beta"],
                         p["bn1_mean"], p["bn1_var"])
    wt = w_f.T                                             # (2A+B, 2A)
    w_self, w_nbr, w_bond = wt[:A], wt[A:2 * A], wt[2 * A:]
    s2, t2 = _fold_bn2(p["bn2_gamma"], p["bn2_beta"], p["bn2_mean"], p["bn2_var"])
    bf16 = jnp.bfloat16
    return (w_self[:, :A].astype(bf16), w_self[:, A:].astype(bf16),
            w_nbr[:, :A].astype(bf16), w_nbr[:, A:].astype(bf16),
            w_bond[:, :A].astype(bf16), w_bond[:, A:].astype(bf16),
            b_f[:A].reshape(1, -1), b_f[A:].reshape(1, -1),
            s2.reshape(1, -1), t2.reshape(1, -1))


def crystal_graph_conv_net_forward(params, atom_fea, nbr_fea, nbr_fea_idx,
                                   crystal_atom_idx, atom_type, nbr_type,
                                   nbr_dist, pair_type, global_fea):
    # atom_type / nbr_type / nbr_dist / pair_type are unused by the reference forward.
    N, orig = atom_fea.shape
    M = nbr_fea_idx.shape[1]
    B = nbr_fea.shape[2]
    we, be = params["embedding"]
    A = we.shape[0]
    N0 = global_fea.shape[0]
    G = global_fea.shape[1]
    H = params["head"]["conv_to_fc_w"].shape[0]

    T = _atom_tile(N)
    assert N % T == 0
    grid = (N // T,)
    vmem_limit = _default_vmem_limit()
    cparams_grid = pltpu.CompilerParams(dimension_semantics=("parallel",),
                                        vmem_limit_bytes=vmem_limit)
    cparams_nogrid = pltpu.CompilerParams(vmem_limit_bytes=vmem_limit)

    # ---- embedding (tiled over atoms) ----
    emb_w = we.T.astype(jnp.bfloat16)                      # (orig, A)
    emb_b = be.reshape(1, -1)                              # (1, A) f32
    atom = pl.pallas_call(
        _embed_kernel,
        out_shape=jax.ShapeDtypeStruct((N, A), jnp.float32),
        grid=grid,
        in_specs=[pl.BlockSpec((T, orig), lambda i: (i, 0)),
                  pl.BlockSpec((orig, A), lambda i: (0, 0)),
                  pl.BlockSpec((1, A), lambda i: (0, 0))],
        out_specs=pl.BlockSpec((T, A), lambda i: (i, 0)),
        compiler_params=cparams_grid,
    )(atom_fea.astype(jnp.bfloat16), emb_w, emb_b)

    # ---- n_conv ConvLayers: XLA row gather + tiled Pallas conv per layer ----
    bond = nbr_fea.reshape(N * M, B).astype(jnp.bfloat16)
    nbr_idx_flat = nbr_fea_idx.reshape(-1).astype(jnp.int32)
    conv_kernel = functools.partial(_conv_kernel, T=T, M=M, A=A)
    conv_in_specs = [
        pl.BlockSpec((T, A), lambda i: (i, 0)),            # atom tile (f32)
        pl.BlockSpec((T * M, A), lambda i: (i, 0)),        # gathered neighbors (bf16)
        pl.BlockSpec((T * M, B), lambda i: (i, 0)),        # bond features (bf16)
        pl.BlockSpec((A, A), lambda i: (0, 0)),            # w_self_f
        pl.BlockSpec((A, A), lambda i: (0, 0)),            # w_self_c
        pl.BlockSpec((A, A), lambda i: (0, 0)),            # w_nbr_f
        pl.BlockSpec((A, A), lambda i: (0, 0)),            # w_nbr_c
        pl.BlockSpec((B, A), lambda i: (0, 0)),            # w_bond_f
        pl.BlockSpec((B, A), lambda i: (0, 0)),            # w_bond_c
        pl.BlockSpec((1, A), lambda i: (0, 0)),            # b1_f
        pl.BlockSpec((1, A), lambda i: (0, 0)),            # b1_c
        pl.BlockSpec((1, A), lambda i: (0, 0)),            # bn2 scale
        pl.BlockSpec((1, A), lambda i: (0, 0)),            # bn2 shift
    ]
    for p in params["convs"]:
        folded = _fold_conv_params(p, A)
        # Vectorized O(N*M) row gather of the current atom features (bf16 to
        # halve traffic).  Replaces the former serial in-kernel copy loop.
        atom_nbr = jnp.take(atom.astype(jnp.bfloat16), nbr_idx_flat, axis=0)  # (N*M, A)
        atom = pl.pallas_call(
            conv_kernel,
            out_shape=jax.ShapeDtypeStruct((N, A), jnp.float32),
            grid=grid,
            in_specs=conv_in_specs,
            out_specs=pl.BlockSpec((T, A), lambda i: (i, 0)),
            compiler_params=cparams_grid,
        )(atom, atom_nbr, bond, *folded)

    # ---- pooling: first atom of each crystal (idx_map[0]), as in the module ----
    first_idx = jnp.stack([im[0] for im in crystal_atom_idx]).astype(jnp.int32)
    crys = jnp.take(atom, first_idx, axis=0)               # (N0, A) f32

    # ---- head (tiny, gridless) ----
    head = params["head"]
    w1t = head["conv_to_fc_w"].T                           # (A+G, H)
    w1a = w1t[:A].astype(jnp.bfloat16)                     # (A, H)
    w1b = w1t[A:].astype(jnp.bfloat16)                     # (G, H)
    b1h = head["conv_to_fc_b"].reshape(1, -1)              # (1, H) f32
    w2 = head["fc_out_w"].T.astype(jnp.bfloat16)           # (H, 1)
    b2h = head["fc_out_b"].reshape(1, -1)                  # (1, 1) f32

    vmem = pl.BlockSpec(memory_space=pltpu.MemorySpace.VMEM)
    out = pl.pallas_call(
        _head_kernel,
        out_shape=jax.ShapeDtypeStruct((N0, 1), jnp.float32),
        in_specs=[vmem] * 7,
        out_specs=vmem,
        compiler_params=cparams_nogrid,
    )(crys, global_fea, w1a, w1b, b1h, w2, b2h)
    return [out]


# ----------------------------------------------------------------------------
# Parameter init (deterministic, PyTorch-Linear-style uniform)
# ----------------------------------------------------------------------------
def _linear_init(key, fan_in, fan_out):
    k1, k2 = jax.random.split(key)
    bound = 1.0 / (fan_in ** 0.5)
    w = jax.random.uniform(k1, (fan_out, fan_in), jnp.float32, -bound, bound)
    b = jax.random.uniform(k2, (fan_out,), jnp.float32, -bound, bound)
    return w, b


def init_params(key, orig_atom_fea_len, nbr_fea_len, atom_fea_len, n_conv,
                h_fea_len, global_fea_len):
    keys = jax.random.split(key, 3 + n_conv)
    params = {"embedding": _linear_init(keys[0], orig_atom_fea_len, atom_fea_len)}

    convs = []
    for i in range(n_conv):
        ks = jax.random.split(keys[1 + i], 5)
        w, b = _linear_init(ks[0], 2 * atom_fea_len + nbr_fea_len, 2 * atom_fea_len)
        convs.append({
            "w": w, "b": b,
            "bn1_gamma": jax.random.uniform(ks[1], (2 * atom_fea_len,), jnp.float32, 0.5, 1.5),
            "bn1_beta": jax.random.uniform(ks[2], (2 * atom_fea_len,), jnp.float32, -0.1, 0.1),
            "bn1_mean": jnp.zeros((2 * atom_fea_len,), jnp.float32),
            "bn1_var": jnp.ones((2 * atom_fea_len,), jnp.float32),
            "bn2_gamma": jax.random.uniform(ks[3], (atom_fea_len,), jnp.float32, 0.5, 1.5),
            "bn2_beta": jax.random.uniform(ks[4], (atom_fea_len,), jnp.float32, -0.1, 0.1),
            "bn2_mean": jnp.zeros((atom_fea_len,), jnp.float32),
            "bn2_var": jnp.ones((atom_fea_len,), jnp.float32),
        })
    params["convs"] = convs

    w1, b1 = _linear_init(keys[1 + n_conv], atom_fea_len + global_fea_len, h_fea_len)
    w2, b2 = _linear_init(keys[2 + n_conv], h_fea_len, 1)
    params["head"] = {"conv_to_fc_w": w1, "conv_to_fc_b": b1,
                      "fc_out_w": w2, "fc_out_b": b2}
    return params


# ----------------------------------------------------------------------------
# Pure-JAX f32 reference (true module semantics) for correctness checking
# ----------------------------------------------------------------------------
def reference_forward(params, atom_fea, nbr_fea, nbr_fea_idx, crystal_atom_idx,
                      global_fea):
    P = jax.lax.Precision.HIGHEST
    we, be = params["embedding"]
    x = jnp.dot(atom_fea, we.T, precision=P) + be
    for p in params["convs"]:
        N, M = nbr_fea_idx.shape
        A = x.shape[1]
        atom_nbr = x[nbr_fea_idx]
        total = jnp.concatenate(
            [jnp.broadcast_to(x[:, None, :], (N, M, A)), atom_nbr, nbr_fea], axis=2)
        gated = jnp.dot(total, p["w"].T, precision=P) + p["b"]
        gated = (gated - p["bn1_mean"]) / jnp.sqrt(p["bn1_var"] + BN_EPS) \
            * p["bn1_gamma"] + p["bn1_beta"]
        filt = jax.nn.sigmoid(gated[..., :A])
        core = _softplus(gated[..., A:])
        summed = jnp.sum(filt * core, axis=1)
        summed = (summed - p["bn2_mean"]) / jnp.sqrt(p["bn2_var"] + BN_EPS) \
            * p["bn2_gamma"] + p["bn2_beta"]
        x = _softplus(x + summed)
    first_idx = jnp.stack([im[0] for im in crystal_atom_idx])
    crys = jnp.concatenate([x[first_idx, :], global_fea], axis=1)
    h = _softplus(crys)
    h = _softplus(jnp.dot(h, params["head"]["conv_to_fc_w"].T, precision=P)
                  + params["head"]["conv_to_fc_b"])
    return jnp.dot(h, params["head"]["fc_out_w"].T, precision=P) \
        + params["head"]["fc_out_b"]


# ----------------------------------------------------------------------------
if __name__ == "__main__":
    # Small shapes consistent with the module (A=64 -> 2A=128 lane-dense,
    # matching the module's default atom_fea_len / h_fea_len).
    N = 128                 # total atoms in batch
    M = 8                   # max neighbors
    N0 = 2                  # crystals in batch
    orig_atom_fea_len = 16
    nbr_fea_len = 8
    atom_fea_len = 64
    n_conv = 3
    h_fea_len = 128
    global_fea_len = 4

    key = jax.random.PRNGKey(0)
    k_par, k_af, k_nf, k_idx, k_gf, k_dist = jax.random.split(key, 6)

    params = init_params(k_par, orig_atom_fea_len, nbr_fea_len, atom_fea_len,
                         n_conv, h_fea_len, global_fea_len)

    atom_fea = jax.random.normal(k_af, (N, orig_atom_fea_len), jnp.float32)
    nbr_fea = jax.random.normal(k_nf, (N, M, nbr_fea_len), jnp.float32)
    nbr_fea_idx = jax.random.randint(k_idx, (N, M), 0, N, jnp.int32)
    crystal_atom_idx = [jnp.arange(0, 64, dtype=jnp.int32),
                        jnp.arange(64, 128, dtype=jnp.int32)]
    global_fea = jax.random.normal(k_gf, (N0, global_fea_len), jnp.float32)

    # Unused-by-forward inputs (kept for signature fidelity).
    atom_type = jnp.ones((N, 1), jnp.int32)
    nbr_type = jnp.ones((N, M), jnp.int32)
    nbr_dist = jax.random.uniform(k_dist, (N, M), jnp.float32, 1.0, 3.0)
    pair_type = jnp.zeros((N, M), jnp.int32)

    forward = jax.jit(crystal_graph_conv_net_forward)
    out_list = forward(params, atom_fea, nbr_fea, nbr_fea_idx, crystal_atom_idx,
                       atom_type, nbr_type, nbr_dist, pair_type, global_fea)
    out = jax.block_until_ready(out_list[0])
    assert out.shape == (N0, 1)

    ref = jax.block_until_ready(
        reference_forward(params, atom_fea, nbr_fea, nbr_fea_idx,
                          crystal_atom_idx, global_fea))
    # kernel uses bf16 MXU operands (f32 accumulation) over 3 layers; reference is f32
    assert jnp.allclose(out, ref, rtol=5e-2, atol=1e-1), (out, ref)

    print("KERNEL_OK")
</pallas_src>

<mosaic_0001>
module attributes {stable_mosaic.version = 11 : i64} {
  func.func @_embed_kernel(%arg0: i32, %arg1: memref<64x16xbf16, #tpu.memory_space<vmem>>, %arg2: memref<16x64xbf16, #tpu.memory_space<vmem>>, %arg3: memref<1x64xf32, #tpu.memory_space<vmem>>, %arg4: memref<64x64xf32, #tpu.memory_space<vmem>>) attributes {dimension_semantics = [#tpu.dimension_semantics<parallel>], iteration_bounds = array<i64: 2>, scalar_prefetch = 0 : i64, scratch_operands = 0 : i64, tpu.core_type = #tpu.core_type<tc>, window_params = [{transform_indices = @transform_0, window_bounds = array<i64: 64, 16>}, {pipeline_mode = #tpu.pipeline_mode<synchronous>, transform_indices = @transform_1, window_bounds = array<i64: 16, 64>}, {pipeline_mode = #tpu.pipeline_mode<synchronous>, transform_indices = @transform_2, window_bounds = array<i64: 1, 64>}, {transform_indices = @transform_3, window_bounds = array<i64: 64, 64>}]} {
    %c0 = arith.constant 0 : index
    %c0_0 = arith.constant 0 : index
    %0 = vector.load %arg1[%c0, %c0_0] : memref<64x16xbf16, #tpu.memory_space<vmem>>, vector<64x16xbf16>
    %c0_1 = arith.constant 0 : index
    %c0_2 = arith.constant 0 : index
    %1 = vector.load %arg2[%c0_1, %c0_2] : memref<16x64xbf16, #tpu.memory_space<vmem>>, vector<16x64xbf16>
    %cst = arith.constant dense<0.000000e+00> : vector<64x64xf32>
    %2 = tpu.matmul %0, %1, %cst {dimension_numbers = #tpu.dot_dimension_numbers<[1], [0], [0], [1], [0, 0, 1, 1], [], []>} : vector<64x16xbf16>, vector<16x64xbf16>, vector<64x64xf32> -> vector<64x64xf32>
    %c0_3 = arith.constant 0 : index
    %c0_4 = arith.constant 0 : index
    %3 = vector.load %arg3[%c0_3, %c0_4] : memref<1x64xf32, #tpu.memory_space<vmem>>, vector<1x64xf32>
    %4 = vector.broadcast %3 : vector<1x64xf32> to vector<64x64xf32>
    %5 = arith.addf %2, %4 : vector<64x64xf32>
    %c0_5 = arith.constant 0 : index
    %c0_6 = arith.constant 0 : index
    %6 = vector.load %arg4[%c0_5, %c0_6] : memref<64x64xf32, #tpu.memory_space<vmem>>, vector<64x64xf32>
    tpu.vector_store %arg4[%c0_5, %c0_6], %5 {strides = array<i32>} : memref<64x64xf32, #tpu.memory_space<vmem>>, vector<64x64xf32>,
    return
  }
  func.func @transform_0(%arg0: i32) -> (i32, i32) {
    %c0_i32 = arith.constant 0 : i32
    %c0_i32_0 = arith.constant 0 : i32
    return %arg0, %c0_i32 : i32, i32
  }
  func.func @transform_1(%arg0: i32) -> (i32, i32) {
    %c0_i32 = arith.constant 0 : i32
    %c0_i32_0 = arith.constant 0 : i32
    %c0_i32_1 = arith.constant 0 : i32
    return %c0_i32, %c0_i32_0 : i32, i32
  }
  func.func @transform_2(%arg0: i32) -> (i32, i32) {
    %c0_i32 = arith.constant 0 : i32
    %c0_i32_0 = arith.constant 0 : i32
    %c0_i32_1 = arith.constant 0 : i32
    return %c0_i32, %c0_i32_0 : i32, i32
  }
  func.func @transform_3(%arg0: i32) -> (i32, i32) {
    %c0_i32 = arith.constant 0 : i32
    %c0_i32_0 = arith.constant 0 : i32
    return %arg0, %c0_i32 : i32, i32
  }
}

module attributes {stable_mosaic.version = 11 : i64} {
  func.func @_conv_kernel(%arg0: i32, %arg1: memref<64x64xf32, #tpu.memory_space<vmem>>, %arg2: memref<512x64xbf16, #tpu.memory_space<vmem>>, %arg3: memref<512x8xbf16, #tpu.memory_space<vmem>>, %arg4: memref<64x64xbf16, #tpu.memory_space<vmem>>, %arg5: memref<64x64xbf16, #tpu.memory_space<vmem>>, %arg6: memref<64x64xbf16, #tpu.memory_space<vmem>>, %arg7: memref<64x64xbf16, #tpu.memory_space<vmem>>, %arg8: memref<8x64xbf16, #tpu.memory_space<vmem>>, %arg9: memref<8x64xbf16, #tpu.memory_space<vmem>>, %arg10: memref<1x64xf32, #tpu.memory_space<vmem>>, %arg11: memref<1x64xf32, #tpu.memory_space<vmem>>, %arg12: memref<1x64xf32, #tpu.memory_space<vmem>>, %arg13: memref<1x64xf32, #tpu.memory_space<vmem>>, %arg14: memref<64x64xf32, #tpu.memory_space<vmem>>) attributes {dimension_semantics = [#tpu.dimension_semantics<parallel>], iteration_bounds = array<i64: 2>, scalar_prefetch = 0 : i64, scratch_operands = 0 : i64, tpu.core_type = #tpu.core_type<tc>, window_params = [{transform_indices = @transform_0, window_bounds = array<i64: 64, 64>}, {transform_indices = @transform_1, window_bounds = array<i64: 512, 64>}, {transform_indices = @transform_2, window_bounds = array<i64: 512, 8>}, {pipeline_mode = #tpu.pipeline_mode<synchronous>, transform_indices = @transform_3, window_bounds = array<i64: 64, 64>}, {pipeline_mode = #tpu.pipeline_mode<synchronous>, transform_indices = @transform_4, window_bounds = array<i64: 64, 64>}, {pipeline_mode = #tpu.pipeline_mode<synchronous>, transform_indices = @transform_5, window_bounds = array<i64: 64, 64>}, {pipeline_mode = #tpu.pipeline_mode<synchronous>, transform_indices = @transform_6, window_bounds = array<i64: 64, 64>}, {pipeline_mode = #tpu.pipeline_mode<synchronous>, transform_indices = @transform_7, window_bounds = array<i64: 8, 64>}, {pipeline_mode = #tpu.pipeline_mode<synchronous>, transform_indices = @transform_8, window_bounds = array<i64: 8, 64>}, {pipeline_mode = #tpu.pipeline_mode<synchronous>, transform_indices = @transform_9, window_bounds = array<i64: 1, 64>}, {pipeline_mode = #tpu.pipeline_mode<synchronous>, transform_indices = @transform_10, window_bounds = array<i64: 1, 64>}, {pipeline_mode = #tpu.pipeline_mode<synchronous>, transform_indices = @transform_11, window_bounds = array<i64: 1, 64>}, {pipeline_mode = #tpu.pipeline_mode<synchronous>, transform_indices = @transform_12, window_bounds = array<i64: 1, 64>}, {transform_indices = @transform_13, window_bounds = array<i64: 64, 64>}]} {
    %c0 = arith.constant 0 : index
    %c0_0 = arith.constant 0 : index
    %0 = vector.load %arg1[%c0, %c0_0] : memref<64x64xf32, #tpu.memory_space<vmem>>, vector<64x64xf32>
    %1 = arith.truncf %0 : vector<64x64xf32> to vector<64x64xbf16>
    %c0_1 = arith.constant 0 : index
    %c0_2 = arith.constant 0 : index
    %2 = vector.load %arg2[%c0_1, %c0_2] : memref<512x64xbf16, #tpu.memory_space<vmem>>, vector<512x64xbf16>
    %c0_3 = arith.constant 0 : index
    %c0_4 = arith.constant 0 : index
    %3 = vector.load %arg3[%c0_3, %c0_4] : memref<512x8xbf16, #tpu.memory_space<vmem>>, vector<512x8xbf16>
    %c0_5 = arith.constant 0 : index
    %c0_6 = arith.constant 0 : index
    %4 = vector.load %arg4[%c0_5, %c0_6] : memref<64x64xbf16, #tpu.memory_space<vmem>>, vector<64x64xbf16>
    %cst = arith.constant dense<0.000000e+00> : vector<64x64xf32>
    %5 = tpu.matmul %1, %4, %cst {dimension_numbers = #tpu.dot_dimension_numbers<[1], [0], [0], [1], [0, 0, 1, 1], [], []>} : vector<64x64xbf16>, vector<64x64xbf16>, vector<64x64xf32> -> vector<64x64xf32>
    %c0_7 = arith.constant 0 : index
    %c0_8 = arith.constant 0 : index
    %6 = vector.load %arg10[%c0_7, %c0_8] : memref<1x64xf32, #tpu.memory_space<vmem>>, vector<1x64xf32>
    %7 = vector.broadcast %6 : vector<1x64xf32> to vector<64x64xf32>
    %8 = arith.addf %5, %7 : vector<64x64xf32>
    %c0_9 = arith.constant 0 : index
    %c0_10 = arith.constant 0 : index
    %9 = vector.load %arg5[%c0_9, %c0_10] : memref<64x64xbf16, #tpu.memory_space<vmem>>, vector<64x64xbf16>
    %cst_11 = arith.constant dense<0.000000e+00> : vector<64x64xf32>
    %10 = tpu.matmul %1, %9, %cst_11 {dimension_numbers = #tpu.dot_dimension_numbers<[1], [0], [0], [1], [0, 0, 1, 1], [], []>} : vector<64x64xbf16>, vector<64x64xbf16>, vector<64x64xf32> -> vector<64x64xf32>
    %c0_12 = arith.constant 0 : index
    %c0_13 = arith.constant 0 : index
    %11 = vector.load %arg11[%c0_12, %c0_13] : memref<1x64xf32, #tpu.memory_space<vmem>>, vector<1x64xf32>
    %12 = vector.broadcast %11 : vector<1x64xf32> to vector<64x64xf32>
    %13 = arith.addf %10, %12 : vector<64x64xf32>
    %c0_14 = arith.constant 0 : index
    %c0_15 = arith.constant 0 : index
    %14 = vector.load %arg6[%c0_14, %c0_15] : memref<64x64xbf16, #tpu.memory_space<vmem>>, vector<64x64xbf16>
    %cst_16 = arith.constant dense<0.000000e+00> : vector<512x64xf32>
    %15 = tpu.matmul %2, %14, %cst_16 {dimension_numbers = #tpu.dot_dimension_numbers<[1], [0], [0], [1], [0, 0, 1, 1], [], []>} : vector<512x64xbf16>, vector<64x64xbf16>, vector<512x64xf32> -> vector<512x64xf32>
    %c0_17 = arith.constant 0 : index
    %c0_18 = arith.constant 0 : index
    %16 = vector.load %arg8[%c0_17, %c0_18] : memref<8x64xbf16, #tpu.memory_space<vmem>>, vector<8x64xbf16>
    %cst_19 = arith.constant dense<0.000000e+00> : vector<512x64xf32>
    %17 = tpu.matmul %3, %16, %cst_19 {dimension_numbers = #tpu.dot_dimension_numbers<[1], [0], [0], [1], [0, 0, 1, 1], [], []>} : vector<512x8xbf16>, vector<8x64xbf16>, vector<512x64xf32> -> vector<512x64xf32>
    %18 = arith.addf %15, %17 : vector<512x64xf32>
    %c0_20 = arith.constant 0 : index
    %c0_21 = arith.constant 0 : index
    %19 = vector.load %arg7[%c0_20, %c0_21] : memref<64x64xbf16, #tpu.memory_space<vmem>>, vector<64x64xbf16>
    %cst_22 = arith.constant dense<0.000000e+00> : vector<512x64xf32>
    %20 = tpu.matmul %2, %19, %cst_22 {dimension_numbers = #tpu.dot_dimension_numbers<[1], [0], [0], [1], [0, 0, 1, 1], [], []>} : vector<512x64xbf16>, vector<64x64xbf16>, vector<512x64xf32> -> vector<512x64xf32>
    %c0_23 = arith.constant 0 : index
    %c0_24 = arith.constant 0 : index
    %21 = vector.load %arg9[%c0_23, %c0_24] : memref<8x64xbf16, #tpu.memory_space<vmem>>, vector<8x64xbf16>
    %cst_25 = arith.constant dense<0.000000e+00> : vector<512x64xf32>
    %22 = tpu.matmul %3, %21, %cst_25 {dimension_numbers = #tpu.dot_dimension_numbers<[1], [0], [0], [1], [0, 0, 1, 1], [], []>} : vector<512x8xbf16>, vector<8x64xbf16>, vector<512x64xf32> -> vector<512x64xf32>
    %23 = arith.addf %20, %22 : vector<512x64xf32>
    %24 = vector.shape_cast %8 : vector<64x64xf32> to vector<64x1x64xf32>
    %25 = vector.shape_cast %18 : vector<512x64xf32> to vector<64x8x64xf32>
    %26 = vector.broadcast %24 : vector<64x1x64xf32> to vector<64x8x64xf32>
    %27 = arith.addf %26, %25 : vector<64x8x64xf32>
    %28 = vector.shape_cast %13 : vector<64x64xf32> to vector<64x1x64xf32>
    %29 = vector.shape_cast %23 : vector<512x64xf32> to vector<64x8x64xf32>
    %30 = vector.broadcast %28 : vector<64x1x64xf32> to vector<64x8x64xf32>
    %31 = arith.addf %30, %29 : vector<64x8x64xf32>
    %32 = arith.negf %27 : vector<64x8x64xf32>
    %33 = math.exp %32 : vector<64x8x64xf32>
    %cst_26 = arith.constant 1.000000e+00 : f32
    %34 = vector.broadcast %cst_26 : f32 to vector<64x8x64xf32>
    %35 = arith.addf %34, %33 : vector<64x8x64xf32>
    %36 = arith.divf %34, %35 : vector<64x8x64xf32>
    %cst_27 = arith.constant 2.000000e+01 : f32
    %37 = vector.broadcast %cst_27 : f32 to vector<64x8x64xf32>
    %38 = arith.minimumf %31, %37 : vector<64x8x64xf32>
    %cst_28 = arith.constant 2.000000e+01 : f32
    %39 = vector.broadcast %cst_28 : f32 to vector<64x8x64xf32>
    %40 = arith.cmpf ogt, %31, %39 : vector<64x8x64xf32>
    %41 = math.exp %38 : vector<64x8x64xf32>
    %42 = math.log1p %41 : vector<64x8x64xf32>
    %43 = arith.select %40, %31, %42 : vector<64x8x64xi1>, vector<64x8x64xf32>
    %44 = arith.mulf %36, %43 : vector<64x8x64xf32>
    %cst_29 = arith.constant dense<0.000000e+00> : vector<64x64xf32>
    %45 = vector.multi_reduction <add>, %44, %cst_29 [1] : vector<64x8x64xf32> to vector<64x64xf32>
    %c0_30 = arith.constant 0 : index
    %c0_31 = arith.constant 0 : index
    %46 = vector.load %arg12[%c0_30, %c0_31] : memref<1x64xf32, #tpu.memory_space<vmem>>, vector<1x64xf32>
    %47 = vector.broadcast %46 : vector<1x64xf32> to vector<64x64xf32>
    %48 = arith.mulf %45, %47 : vector<64x64xf32>
    %c0_32 = arith.constant 0 : index
    %c0_33 = arith.constant 0 : index
    %49 = vector.load %arg13[%c0_32, %c0_33] : memref<1x64xf32, #tpu.memory_space<vmem>>, vector<1x64xf32>
    %50 = vector.broadcast %49 : vector<1x64xf32> to vector<64x64xf32>
    %51 = arith.addf %48, %50 : vector<64x64xf32>
    %52 = arith.addf %0, %51 : vector<64x64xf32>
    %cst_34 = arith.constant 2.000000e+01 : f32
    %53 = vector.broadcast %cst_34 : f32 to vector<64x64xf32>
    %54 = arith.minimumf %52, %53 : vector<64x64xf32>
    %cst_35 = arith.constant 2.000000e+01 : f32
    %55 = vector.broadcast %cst_35 : f32 to vector<64x64xf32>
    %56 = arith.cmpf ogt, %52, %55 : vector<64x64xf32>
    %57 = math.exp %54 : vector<64x64xf32>
    %58 = math.log1p %57 : vector<64x64xf32>
    %59 = arith.select %56, %52, %58 : vector<64x64xi1>, vector<64x64xf32>
    %c0_36 = arith.constant 0 : index
    %c0_37 = arith.constant 0 : index
    %60 = vector.load %arg14[%c0_36, %c0_37] : memref<64x64xf32, #tpu.memory_space<vmem>>, vector<64x64xf32>
    tpu.vector_store %arg14[%c0_36, %c0_37], %59 {strides = array<i32>} : memref<64x64xf32, #tpu.memory_space<vmem>>, vector<64x64xf32>,
    return
  }
  func.func @transform_0(%arg0: i32) -> (i32, i32) {
    %c0_i32 = arith.constant 0 : i32
    %c0_i32_0 = arith.constant 0 : i32
    return %arg0, %c0_i32 : i32, i32
  }
  func.func @transform_1(%arg0: i32) -> (i32, i32) {
    %c0_i32 = arith.constant 0 : i32
    %c0_i32_0 = arith.constant 0 : i32
    return %arg0, %c0_i32 : i32, i32
  }
  func.func @transform_2(%arg0: i32) -> (i32, i32) {
    %c0_i32 = arith.constant 0 : i32
    %c0_i32_0 = arith.constant 0 : i32
    return %arg0, %c0_i32 : i32, i32
  }
  func.func @transform_3(%arg0: i32) -> (i32, i32) {
    %c0_i32 = arith.constant 0 : i32
    %c0_i32_0 = arith.constant 0 : i32
    %c0_i32_1 = arith.constant 0 : i32
    return %c0_i32, %c0_i32_0 : i32, i32
  }
  func.func @transform_4(%arg0: i32) -> (i32, i32) {
    %c0_i32 = arith.constant 0 : i32
    %c0_i32_0 = arith.constant 0 : i32
    %c0_i32_1 = arith.constant 0 : i32
    return %c0_i32, %c0_i32_0 : i32, i32
  }
  func.func @transform_5(%arg0: i32) -> (i32, i32) {
    %c0_i32 = arith.constant 0 : i32
    %c0_i32_0 = arith.constant 0 : i32
    %c0_i32_1 = arith.constant 0 : i32
    return %c0_i32, %c0_i32_0 : i32, i32
  }
  func.func @transform_6(%arg0: i32) -> (i32, i32) {
    %c0_i32 = arith.constant 0 : i32
    %c0_i32_0 = arith.constant 0 : i32
    %c0_i32_1 = arith.constant 0 : i32
    return %c0_i32, %c0_i32_0 : i32, i32
  }
  func.func @transform_7(%arg0: i32) -> (i32, i32) {
    %c0_i32 = arith.constant 0 : i32
    %c0_i32_0 = arith.constant 0 : i32
    %c0_i32_1 = arith.constant 0 : i32
    return %c0_i32, %c0_i32_0 : i32, i32
  }
  func.func @transform_8(%arg0: i32) -> (i32, i32) {
    %c0_i32 = arith.constant 0 : i32
    %c0_i32_0 = arith.constant 0 : i32
    %c0_i32_1 = arith.constant 0 : i32
    return %c0_i32, %c0_i32_0 : i32, i32
  }
  func.func @transform_9(%arg0: i32) -> (i32, i32) {
    %c0_i32 = arith.constant 0 : i32
    %c0_i32_0 = arith.constant 0 : i32
    %c0_i32_1 = arith.constant 0 : i32
    return %c0_i32, %c0_i32_0 : i32, i32
  }
  func.func @transform_10(%arg0: i32) -> (i32, i32) {
    %c0_i32 = arith.constant 0 : i32
    %c0_i32_0 = arith.constant 0 : i32
    %c0_i32_1 = arith.constant 0 : i32
    return %c0_i32, %c0_i32_0 : i32, i32
  }
  func.func @transform_11(%arg0: i32) -> (i32, i32) {
    %c0_i32 = arith.constant 0 : i32
    %c0_i32_0 = arith.constant 0 : i32
    %c0_i32_1 = arith.constant 0 : i32
    return %c0_i32, %c0_i32_0 : i32, i32
  }
  func.func @transform_12(%arg0: i32) -> (i32, i32) {
    %c0_i32 = arith.constant 0 : i32
    %c0_i32_0 = arith.constant 0 : i32
    %c0_i32_1 = arith.constant 0 : i32
    return %c0_i32, %c0_i32_0 : i32, i32
  }
  func.func @transform_13(%arg0: i32) -> (i32, i32) {
    %c0_i32 = arith.constant 0 : i32
    %c0_i32_0 = arith.constant 0 : i32
    return %arg0, %c0_i32 : i32, i32
  }
}

module attributes {stable_mosaic.version = 11 : i64} {
  func.func @_head_kernel(%arg0: memref<2x64xf32, #tpu.memory_space<vmem>>, %arg1: memref<2x4xf32, #tpu.memory_space<vmem>>, %arg2: memref<64x128xbf16, #tpu.memory_space<vmem>>, %arg3: memref<4x128xbf16, #tpu.memory_space<vmem>>, %arg4: memref<1x128xf32, #tpu.memory_space<vmem>>, %arg5: memref<128x1xbf16, #tpu.memory_space<vmem>>, %arg6: memref<1x1xf32, #tpu.memory_space<vmem>>, %arg7: memref<2x1xf32, #tpu.memory_space<vmem>>) attributes {dimension_semantics = [], scalar_prefetch = 0 : i64, scratch_operands = 0 : i64, tpu.core_type = #tpu.core_type<tc>} {
    %c0 = arith.constant 0 : index
    %c0_0 = arith.constant 0 : index
    %0 = vector.load %arg0[%c0, %c0_0] : memref<2x64xf32, #tpu.memory_space<vmem>>, vector<2x64xf32>
    %cst = arith.constant 2.000000e+01 : f32
    %1 = vector.broadcast %cst : f32 to vector<2x64xf32>
    %2 = arith.minimumf %0, %1 : vector<2x64xf32>
    %cst_1 = arith.constant 2.000000e+01 : f32
    %3 = vector.broadcast %cst_1 : f32 to vector<2x64xf32>
    %4 = arith.cmpf ogt, %0, %3 : vector<2x64xf32>
    %5 = math.exp %2 : vector<2x64xf32>
    %6 = math.log1p %5 : vector<2x64xf32>
    %7 = arith.select %4, %0, %6 : vector<2x64xi1>, vector<2x64xf32>
    %c0_2 = arith.constant 0 : index
    %c0_3 = arith.constant 0 : index
    %8 = vector.load %arg1[%c0_2, %c0_3] : memref<2x4xf32, #tpu.memory_space<vmem>>, vector<2x4xf32>
    %cst_4 = arith.constant 2.000000e+01 : f32
    %9 = vector.broadcast %cst_4 : f32 to vector<2x4xf32>
    %10 = arith.minimumf %8, %9 : vector<2x4xf32>
    %cst_5 = arith.constant 2.000000e+01 : f32
    %11 = vector.broadcast %cst_5 : f32 to vector<2x4xf32>
    %12 = arith.cmpf ogt, %8, %11 : vector<2x4xf32>
    %13 = math.exp %10 : vector<2x4xf32>
    %14 = math.log1p %13 : vector<2x4xf32>
    %15 = arith.select %12, %8, %14 : vector<2x4xi1>, vector<2x4xf32>
    %16 = arith.truncf %7 : vector<2x64xf32> to vector<2x64xbf16>
    %c0_6 = arith.constant 0 : index
    %c0_7 = arith.constant 0 : index
    %17 = vector.load %arg2[%c0_6, %c0_7] : memref<64x128xbf16, #tpu.memory_space<vmem>>, vector<64x128xbf16>
    %cst_8 = arith.constant dense<0.000000e+00> : vector<2x128xf32>
    %18 = tpu.matmul %16, %17, %cst_8 {dimension_numbers = #tpu.dot_dimension_numbers<[1], [0], [0], [1], [0, 0, 1, 1], [], []>} : vector<2x64xbf16>, vector<64x128xbf16>, vector<2x128xf32> -> vector<2x128xf32>
    %19 = arith.truncf %15 : vector<2x4xf32> to vector<2x4xbf16>
    %c0_9 = arith.constant 0 : index
    %c0_10 = arith.constant 0 : index
    %20 = vector.load %arg3[%c0_9, %c0_10] : memref<4x128xbf16, #tpu.memory_space<vmem>>, vector<4x128xbf16>
    %cst_11 = arith.constant dense<0.000000e+00> : vector<2x128xf32>
    %21 = tpu.matmul %19, %20, %cst_11 {dimension_numbers = #tpu.dot_dimension_numbers<[1], [0], [0], [1], [0, 0, 1, 1], [], []>} : vector<2x4xbf16>, vector<4x128xbf16>, vector<2x128xf32> -> vector<2x128xf32>
    %22 = arith.addf %18, %21 : vector<2x128xf32>
    %c0_12 = arith.constant 0 : index
    %c0_13 = arith.constant 0 : index
    %23 = vector.load %arg4[%c0_12, %c0_13] : memref<1x128xf32, #tpu.memory_space<vmem>>, vector<1x128xf32>
    %24 = vector.broadcast %23 : vector<1x128xf32> to vector<2x128xf32>
    %25 = arith.addf %22, %24 : vector<2x128xf32>
    %cst_14 = arith.constant 2.000000e+01 : f32
    %26 = vector.broadcast %cst_14 : f32 to vector<2x128xf32>
    %27 = arith.minimumf %25, %26 : vector<2x128xf32>
    %cst_15 = arith.constant 2.000000e+01 : f32
    %28 = vector.broadcast %cst_15 : f32 to vector<2x128xf32>
    %29 = arith.cmpf ogt, %25, %28 : vector<2x128xf32>
    %30 = math.exp %27 : vector<2x128xf32>
    %31 = math.log1p %30 : vector<2x128xf32>
    %32 = arith.select %29, %25, %31 : vector<2x128xi1>, vector<2x128xf32>
    %33 = arith.truncf %32 : vector<2x128xf32> to vector<2x128xbf16>
    %c0_16 = arith.constant 0 : index
    %c0_17 = arith.constant 0 : index
    %34 = vector.load %arg5[%c0_16, %c0_17] : memref<128x1xbf16, #tpu.memory_space<vmem>>, vector<128x1xbf16>
    %cst_18 = arith.constant dense<0.000000e+00> : vector<2x1xf32>
    %35 = tpu.matmul %33, %34, %cst_18 {dimension_numbers = #tpu.dot_dimension_numbers<[1], [0], [0], [1], [0, 0, 1, 1], [], []>} : vector<2x128xbf16>, vector<128x1xbf16>, vector<2x1xf32> -> vector<2x1xf32>
    %c0_19 = arith.constant 0 : index
    %c0_20 = arith.constant 0 : index
    %36 = vector.load %arg6[%c0_19, %c0_20] : memref<1x1xf32, #tpu.memory_space<vmem>>, vector<1x1xf32>
    %37 = vector.broadcast %36 : vector<1x1xf32> to vector<2x1xf32>
    %38 = arith.addf %35, %37 : vector<2x1xf32>
    %c0_21 = arith.constant 0 : index
    %c0_22 = arith.constant 0 : index
    %39 = vector.load %arg7[%c0_21, %c0_22] : memref<2x1xf32, #tpu.memory_space<vmem>>, vector<2x1xf32>
    tpu.vector_store %arg7[%c0_21, %c0_22], %38 {strides = array<i32>} : memref<2x1xf32, #tpu.memory_space<vmem>>, vector<2x1xf32>,
    return
  }
}

</mosaic_0001>

<bundles_post_ra>
// kernel: crystal_graph_conv_net_forward.5
= control target key start
LH: loop header
LB: loop body
LE: loop exit
PB: predicated region body
PF: predicated region fallthrough
CT: control target
= control target key end

     0   :  { %s440_s12 = smov 0   ;;  %s471_s0 = inlined_call_operand.vmem [shape: bf16[128,16], index: 0, kind: input, shape index: {}]   ;;  %s472_s1 = inlined_call_operand.vmem [shape: bf16[16,64], index: 1, kind: input, shape index: {}]   ;;  %s473_s2 = inlined_call_operand.vmem [shape: f32[1,64], index: 2, kind: input, shape index: {}]   ;;  %s474_s3 = inlined_call_operand.vmem [shape: f32[128,64], index: 3, kind: output, shape index: {}]  }
   0x1 LB: > { %s361_s13 = sadd.s32 4294967295, %s418_s12   ;;  %p365_p0 = scmp.ge.s32.totalorder %s418_s12, 1  ;;  %s418_s12 = sphi %s440_s12, %s13_s12  }
   0x2   : > { %p138_p1 = scmp.lt.s32.totalorder %s418_s12, 3 }
   0x4   : > { %p139_p2 = pnand %p365_p0, %p138_p1 }
   0x5   : > { %s366_s16 = sshll.u32 (!%p139_p2), %s361_s13, 3 }
   0x6   : > { %142 = sbr.rel (%p139_p2) target bundleno = 218 (0xda), region = 32  ;;  %p163_p3 = scmp.lt.s32.totalorder (!%p139_p2), %s366_s16, 15 }
   0xb   : > { %v407_v0 = vld [vmem:[%s472_s1] sm:$0xff]   ;;  %s476_s16 = smov (!%p163_p3, %s366_s16), 15  ;;  %vm218_vm0 = vcmask 130048   ;;  %vm296_vm1 = vcmask 523264  }
   0xc   : > { %387 = vmatprep.subr.bf16.mxu0 %v407_v0  ;;  %397 = vmatprep.subr.bf16.mxu1 %v407_v0  ;;  %s367_s17 = sshll.u32 %s476_s16, 2  ;;  %s369_s21 = sshll.u32 %s476_s16, 3  ;;  %v370_v5 = vld [vmem:[%s473_s2] ss:$0 sm:$0xff] }
   0xd   : > { %388 = vmatpush3.bf16.msra.mxu0 %v407_v0  ;;  %398 = vmatpush3.bf16.msra.mxu1 %v407_v0  ;;  %s166_s20 = scalar_lea.vmem %s471_s0, %s367_s17  ;;  %s172_s26 = scalar_lea.vmem %s474_s3, %s369_s21 }
   0xe   : > { %v408_v1 = vld [vmem:[%s166_s20] sm:$0xff]   ;;  %v409_v2 = vld [vmem:[%s166_s20 + $0x10] sm:$0xff]   ;;  %v410_v3 = vld [vmem:[%s166_s20 + $0x8] sm:$0xff]  }
   0xf   : > { %389 = vmatprep.mubr.msk.bf16.mxu0 %vm218_vm0, %v408_v1  ;;  %393 = vmatprep.mubr.msk.bf16.mxu1 %vm218_vm0, %v409_v2  ;;  %v411_v4 = vld [vmem:[%s166_s20 + $0x18] sm:$0xff]  }
  0x10   : > { %390 = vmatmul.mubr.msk.bf16.vlgmr.msra.gmra.mxu0 %vm218_vm0, %v410_v3  ;;  %394 = vmatmul.mubr.msk.bf16.vlgmr.msra.gmra.mxu1 %vm218_vm0, %v411_v4 }
  0xd0   : > { %v391_v6 = vpop.f32.mrf.mxu0  ;;  %v395_v8 = vpop.f32.mrf.mxu1 }
  0xd1   : > { %v274_v7 = vadd.f32 %v391_v6, %v370_v5  ;;  %v290_v9 = vadd.f32 %v395_v8, %v370_v5 }
  0xd2   : > { %v265_v10 = vpop.f32.mrf.mxu0  ;;  %v281_v12 = vpop.f32.mrf.mxu1 }
  0xd3   : > { %299 = vst.msk [vmem:[%s172_s26 + $0x10] sm:$0xff] %vm296_vm1, %v274_v7  ;;  %v266_v11 = vadd.f32 %v370_v5, %v265_v10  ;;  %303 = vst.msk [vmem:[%s172_s26 + $0x30] sm:$0xff] %vm296_vm1, %v290_v9  ;;  %v282_v13 = vadd.f32 %v370_v5, %v281_v12 }
  0xd4   : > { %v392_v14 = vpop.f32.mrf.mxu0  ;;  %v396_v16 = vpop.f32.mrf.mxu1 }
  0xd5   : > { %297 = vst.msk [vmem:[%s172_s26] sm:$0xff] %vm296_vm1, %v266_v11  ;;  %v277_v15 = vadd.f32 %v392_v14, %v370_v5  ;;  %301 = vst.msk [vmem:[%s172_s26 + $0x20] sm:$0xff] %vm296_vm1, %v282_v13  ;;  %v293_v17 = vadd.f32 %v396_v16, %v370_v5 }
  0xd6   : > { %v268_v18 = vpop.f32.mrf.mxu0  ;;  %v284_v20 = vpop.f32.mrf.mxu1 }
  0xd7   : > { %300 = vst.msk [vmem:[%s172_s26 + $0x18] sm:$0xff] %vm296_vm1, %v277_v15  ;;  %v269_v19 = vadd.f32 %v370_v5, %v268_v18  ;;  %304 = vst.msk [vmem:[%s172_s26 + $0x38] sm:$0xff] %vm296_vm1, %v293_v17  ;;  %v285_v21 = vadd.f32 %v370_v5, %v284_v20 }
  0xd9   : > { %298 = vst.msk [vmem:[%s172_s26 + $0x8] sm:$0xff] %vm296_vm1, %v269_v19  ;;  %302 = vst.msk [vmem:[%s172_s26 + $0x28] sm:$0xff] %vm296_vm1, %v285_v21 }
  0xda PF: > { %s13_s12 = sadd.s32 1, %s418_s12  }
  0xdb   : > { %p10_p4 = scmp.ge.s32.totalorder %s13_s12, 4  }
  0xdd   :  { %12 = sbr.rel (!%p10_p4) target bundleno = 1 (0x1), region = 62 }

// kernel: crystal_graph_conv_net_forward.9
= control target key start
LH: loop header
LB: loop body
LE: loop exit
PB: predicated region body
PF: predicated region fallthrough
CT: control target
= control target key end

     0   :  { %vm74_vm0 = vcmask 1041408   ;;  %v422_v0 = vmov 0.0   ;;  %vm423_vm1 = vmmov 0   ;;  %vm70_vm4 = vcmask 31744   ;;  %s537_s3 = inlined_call_operand.vmem [shape: bf16[4,128], index: 3, kind: input, shape index: {}]   ;;  %s538_s1 = inlined_call_operand.vmem [shape: f32[2,4], index: 1, kind: input, shape index: {}]   ;;  %s539_s2 = inlined_call_operand.vmem [shape: bf16[64,128], index: 2, kind: input, shape index: {}]   ;;  %s540_s0 = inlined_call_operand.vmem [shape: f32[2,64], index: 0, kind: input, shape index: {}]   ;;  %s541_s5 = inlined_call_operand.vmem [shape: bf16[128,1], index: 5, kind: input, shape index: {}]   ;;  %s542_s6 = inlined_call_operand.<no memory space> [shape: f32[1,1], index: 6, kind: input, shape index: {}]   ;;  %s543_s4 = inlined_call_operand.vmem [shape: f32[1,128], index: 4, kind: input, shape index: {}]   ;;  %s544_s7 = inlined_call_operand.vmem [shape: f32[2,1], index: 7, kind: output, shape index: {}]  }
   0x1   :  { %358 = vmatprep.subr.bf16.mxu1 %v422_v0  ;;  %v69_v1 = vld [vmem:[%s537_s3] sm:$0x3]  ;;  %360 = vmatprep.mubr.msk.bf16.mxu1 %vm423_vm1, %v422_v0  ;;  %v398_v22 = vld [vmem:[%s539_s2 + $0x18] sm:$0xff]   ;;  %v399_v27 = vld [vmem:[%s539_s2 + $0x10] sm:$0xff]   ;;  %vm142_vm7 = vcmask 523264   ;;  %v12_v43 = vstv %s542_s6  ;;  %vm320_vm10 = vcmask 1024  }
   0x2   :  { %v44_v2 = vld [vmem:[%s538_s1] sm:$0x3]  ;;  %v76_v3 = vsel %vm74_vm0, %v69_v1, 0  ;;  %376 = vmatprep.subr.bf16.mxu0 %v422_v0  ;;  %392 = vmatprep.mubr.msk.bf16.mxu0 %vm423_vm1, %v422_v0  ;;  %v400_v30 = vld [vmem:[%s539_s2 + $0x8] sm:$0xff]   ;;  %v402_v35 = vld [vmem:[%s541_s5 + $0x38] sm:$0xff]  }
   0x3   :  { %v45_v4 = vmin.f32 %v44_v2, 20.0  ;;  %359 = vmatpush3.bf16.msra.mxu1 %v76_v3  ;;  %v29_v6 = vld [vmem:[%s540_s0] sm:$0x3]  ;;  %vm46_vm3 = vcmp.gt.f32.partialorder %v44_v2, 20.0  ;;  %377 = vmatpush3.bf16.msra.mxu0 %v402_v35  ;;  %v403_v36 = vld [vmem:[%s541_s5 + $0x30] sm:$0xff]   ;;  %v404_v37 = vld [vmem:[%s541_s5 + $0x28] sm:$0xff]  }
   0x4   :  { %364 = vmatprep.subr.bf16.mxu1 %v422_v0  ;;  %v30_v7 = vmin.f32 %v29_v6, 20.0  ;;  %vm31_vm6 = vcmp.gt.f32.partialorder %v29_v6, 20.0  ;;  %v401_v32 = vld [vmem:[%s539_s2] sm:$0xff]   ;;  %378 = vmatprep.subr.bf16.mxu0 %v422_v0  ;;  %v406_v39 = vld [vmem:[%s541_s5 + $0x18] sm:$0xff]   ;;  %v407_v40 = vld [vmem:[%s541_s5 + $0x10] sm:$0xff]  }
   0x5   :  { %v47_v5 = vmul.f32 1.442695, %v45_v4  ;;  %v405_v38 = vld [vmem:[%s541_s5 + $0x20] sm:$0xff]   ;;  %v408_v41 = vld [vmem:[%s541_s5 + $0x8] sm:$0xff]   ;;  %13 = vst [vmem:[#allocation2] sm:$0x1] %v12_v43 }
   0x6   :  { %v32_v8 = vmul.f32 1.442695, %v30_v7  ;;  %v409_v42 = vld [vmem:[%s541_s5] sm:$0xff]  }
   0x7   :  { %410 = vpow2.f32 %v47_v5  ;;  %379 = vmatpush3.bf16.msra.mxu0 %v403_v36  ;;  %v332_v49 = vld [vmem:[%s543_s4] ss:$0 sm:$0xff] }
   0x8   :  { %412 = vpow2.f32 %v32_v8  ;;  %380 = vmatprep.subr.bf16.mxu0 %v422_v0 }
   0xb   :  { %381 = vmatpush3.bf16.msra.mxu0 %v404_v37 }
   0xc   :  { %382 = vmatprep.subr.bf16.mxu0 %v422_v0  ;;  %v333_v4 = vld [vmem:[#allocation2] ss:$0 sm:$0xff] }
   0xf   :  { %383 = vmatpush3.bf16.msra.mxu0 %v405_v38 }
  0x10   :  { %384 = vmatprep.subr.bf16.mxu0 %v422_v0 }
  0x13   :  { %385 = vmatpush3.bf16.msra.mxu0 %v406_v39 }
  0x14   :  { %v411_v9 = vpop.eup %410  ;;  %386 = vmatprep.subr.bf16.mxu0 %v422_v0 }
  0x15   :  { %v49_v10 = vadd.f32 1.0, %v411_v9  ;;  %v413_v11 = vpop.eup %412  ;;  %v52_v13 = vmul.f32 -0.5, %v411_v9  ;;  %v55_v15 = vand.u32 2147483647, %v411_v9 }
  0x16   :  { %v34_v12 = vadd.f32 1.0, %v413_v11  ;;  %v37_v19 = vmul.f32 -0.5, %v413_v11  ;;  %v40_v26 = vand.u32 2147483647, %v413_v11 }
  0x17   :  { %414 = vlog2.f32 %v49_v10  ;;  %v53_v14 = vadd.f32 1.0, %v52_v13  ;;  %vm56_vm2 = vcmp.lt.f32.partialorder %v55_v15, 0.0004427343  ;;  %387 = vmatpush3.bf16.msra.mxu0 %v407_v40 }
  0x18   :  { %416 = vlog2.f32 %v34_v12  ;;  %v38_v24 = vadd.f32 1.0, %v37_v19  ;;  %vm41_vm5 = vcmp.lt.f32.partialorder %v40_v26, 0.0004427343  ;;  %388 = vmatprep.subr.bf16.mxu0 %v422_v0 }
  0x19   :  { %v54_v16 = vmul.f32 %v411_v9, %v53_v14 }
  0x1a   :  { %v39_v29 = vmul.f32 %v413_v11, %v38_v24 }
  0x1b   :  { %389 = vmatpush3.bf16.msra.mxu0 %v408_v41 }
  0x1c   :  { %390 = vmatprep.subr.bf16.mxu0 %v422_v0 }
  0x1f   :  { %391 = vmatpush3.bf16.msra.mxu0 %v409_v42 }
  0x24   :  { %v415_v17 = vpop.eup %414 }
  0x25   :  { %v51_v18 = vmul.f32 0.6931472, %v415_v17  ;;  %v417_v25 = vpop.eup %416 }
  0x26   :  { %v36_v28 = vmul.f32 0.6931472, %v417_v25 }
  0x27   :  { %v57_v20 = vsel %vm56_vm2, %v54_v16, %v51_v18 }
  0x28   :  { %v58_v21 = vsel %vm46_vm3, %v44_v2, %v57_v20  ;;  %v42_v31 = vsel %vm41_vm5, %v39_v29, %v36_v28 }
  0x29   :  { %v68_v23 = vpack.c.bf16 %v58_v21, %v58_v21  ;;  %v43_v33 = vsel %vm31_vm6, %v29_v6, %v42_v31 }
  0x2a   :  { %v59_v34 = vpack.c.bf16 %v43_v33, %v43_v33 }
  0x2b   :  { %361 = vmatmul.mubr.msk.bf16.vlgmr.msra.gmra.mxu1 %vm70_vm4, %v68_v23 }
  0x2c   :  { %365 = vmatpush3.bf16.msra.mxu1 %v398_v22  ;;  %372 = vmatprep.mubr.msk.bf16.mxu1 %vm423_vm1, %v422_v0 }
  0x2d   :  { %366 = vmatprep.subr.bf16.mxu1 %v422_v0 }
  0x30   :  { %367 = vmatpush3.bf16.msra.mxu1 %v399_v27 }
  0x31   :  { %368 = vmatprep.subr.bf16.mxu1 %v422_v0 }
  0x34   :  { %369 = vmatpush3.bf16.msra.mxu1 %v400_v30 }
  0x35   :  { %370 = vmatprep.subr.bf16.mxu1 %v422_v0 }
  0x38   :  { %371 = vmatpush3.bf16.msra.mxu1 %v401_v32 }
  0x3b   :  { %373 = vmatmul.mubr.msk.bf16.vlgmr.msra.gmra.mxu1 %vm142_vm7, %v59_v34 }
  0xeb   :  { %v112_v44 = vpop.f32.mrf.mxu1 }
  0xed   :  { %v362_v45 = vpop.f32.mrf.mxu1 }
  0xef   :  { %v115_v46 = vpop.f32.mrf.mxu1 }
  0xf1   :  { %v363_v47 = vpop.f32.mrf.mxu1 }
  0xfb   :  { %v180_v48 = vpop.f32.mrf.mxu1 }
  0xfc   :  { %v181_v50 = vadd.f32 %v180_v48, %v112_v44 }
  0xfd   :  { %v374_v51 = vpop.f32.mrf.mxu1 }
  0xfe   :  { %v193_v52 = vadd.f32 %v332_v49, %v181_v50 }
  0xff   :  { %v183_v53 = vpop.f32.mrf.mxu1 }
 0x100   :  { %v194_v54 = vmin.f32 %v193_v52, 20.0  ;;  %vm195_vm9 = vcmp.gt.f32.partialorder %v193_v52, 20.0 }
 0x101   :  { %v375_v55 = vpop.f32.mrf.mxu1 }
 0x102   :  { %v196_v56 = vmul.f32 1.442695, %v194_v54 }
 0x104   :  { %418 = vpow2.f32 %v196_v56 }
 0x111   :  { %v419_v57 = vpop.eup %418 }
 0x112   :  { %v198_v58 = vadd.f32 1.0, %v419_v57  ;;  %v201_v59 = vmul.f32 -0.5, %v419_v57  ;;  %v204_v61 = vand.u32 2147483647, %v419_v57 }
 0x114   :  { %420 = vlog2.f32 %v198_v58  ;;  %v202_v60 = vadd.f32 1.0, %v201_v59  ;;  %vm205_vm8 = vcmp.lt.f32.partialorder %v204_v61, 0.0004427343 }
 0x116   :  { %v203_v0 = vmul.f32 %v419_v57, %v202_v60 }
 0x121   :  { %v421_v62 = vpop.eup %420 }
 0x122   :  { %v200_v63 = vmul.f32 0.6931472, %v421_v62 }
 0x124   :  { %v206_v1 = vsel %vm205_vm8, %v203_v0, %v200_v63 }
 0x125   :  { %v207_v2 = vsel %vm195_vm9, %v193_v52, %v206_v1 }
 0x126   :  { %v208_v3 = vpack.c.bf16 %v207_v2, %v207_v2 }
 0x128   :  { %393 = vmatmul.mubr.bf16.vlgmr.msra.gmra.mxu0 %v208_v3 }
 0x1e8   :  { %v314_v5 = vpop.f32.mrf.mxu0 }
 0x1e9   :  { %v315_v6 = vadd.f32 %v333_v4, %v314_v5 }
 0x1ea   :  { %v394_v7 = vpop.f32.mrf.mxu0 }
 0x1eb   :  { %321 = vst.msk [vmem:[%s544_s7] sm:$0x3] %vm320_vm10, %v315_v6 }
 0x1ec   :  { %v317_v8 = vpop.f32.mrf.mxu0 }
 0x1ee   :  { %v395_v9 = vpop.f32.mrf.mxu0 }

// kernel: crystal_graph_conv_net_forward.6
= control target key start
LH: loop header
LB: loop body
LE: loop exit
PB: predicated region body
PF: predicated region fallthrough
CT: control target
= control target key end

     0   :  { %s7982_s25 = smov 0   ;;  %s11386_s0 = inlined_call_operand.vmem [shape: f32[128,64], index: 0, kind: input, shape index: {}]   ;;  %s11387_s1 = inlined_call_operand.vmem [shape: bf16[1024,64], index: 1, kind: input, shape index: {}]   ;;  %s11388_s2 = inlined_call_operand.vmem [shape: bf16[1024,8], index: 2, kind: input, shape index: {}]   ;;  %s11389_s3 = inlined_call_operand.vmem [shape: bf16[64,64], index: 3, kind: input, shape index: {}]   ;;  %s11390_s4 = inlined_call_operand.vmem [shape: bf16[64,64], index: 4, kind: input, shape index: {}]   ;;  %s11391_s5 = inlined_call_operand.vmem [shape: bf16[64,64], index: 5, kind: input, shape index: {}]   ;;  %s11392_s6 = inlined_call_operand.vmem [shape: bf16[64,64], index: 6, kind: input, shape index: {}]   ;;  %s11393_s7 = inlined_call_operand.vmem [shape: bf16[8,64], index: 7, kind: input, shape index: {}]   ;;  %s11394_s8 = inlined_call_operand.vmem [shape: bf16[8,64], index: 8, kind: input, shape index: {}]   ;;  %s11395_s9 = inlined_call_operand.vmem [shape: f32[1,64], index: 9, kind: input, shape index: {}]   ;;  %s11396_s10 = inlined_call_operand.vmem [shape: f32[1,64], index: 10, kind: input, shape index: {}]   ;;  %s11397_s11 = inlined_call_operand.vmem [shape: f32[1,64], index: 11, kind: input, shape index: {}]   ;;  %s11398_s12 = inlined_call_operand.vmem [shape: f32[1,64], index: 12, kind: input, shape index: {}]   ;;  %s11399_s13 = inlined_call_operand.vmem [shape: f32[128,64], index: 13, kind: output, shape index: {}]  }
   0x1 LB: > { %s6493_s26 = sadd.s32 4294967295, %s7909_s25   ;;  %p6497_p0 = scmp.ge.s32.totalorder %s7909_s25, 1  ;;  %s7909_s25 = sphi %s7982_s25, %s23_s25  }
   0x2   : > { %p410_p1 = scmp.lt.s32.totalorder %s7909_s25, 3 }
   0x4   : > { %p411_p2 = pnand %p6497_p0, %p410_p1 }
   0x6   : > { %414 = sbr.rel (%p411_p2) target bundleno = 964 (0x3c4), region = 72 }
   0xb   : > { %v7265_v0 = vld [vmem:[%s11389_s3 + $0x18] sm:$0xff]   ;;  %s6498_s29 = sshll.u32 %s6493_s26, 3  ;;  %v7267_v2 = vld [vmem:[%s11389_s3 + $0x10] sm:$0xff]   ;;  %v7269_v4 = vld [vmem:[%s11389_s3 + $0x8] sm:$0xff]   ;;  %s6500_s30 = sshll.u32 %s6493_s26, 6  ;;  %vm668_vm0 = vcmask 523264  }
   0xc   : > { %v7266_v1 = vld [vmem:[%s11390_s4 + $0x18] sm:$0xff]   ;;  %p465_p3 = scmp.lt.s32.totalorder %s6498_s29, 15  ;;  %6946 = vmatprep.subr.bf16.mxu0 %v7265_v0  ;;  %v7268_v3 = vld [vmem:[%s11390_s4 + $0x10] sm:$0xff]   ;;  %v7270_v5 = vld [vmem:[%s11390_s4 + $0x8] sm:$0xff]   ;;  %p471_p4 = scmp.lt.s32.totalorder %s6500_s30, 127  ;;  %vm1116_vm1 = vcmask 1043456  }
   0xd   : > { %6962 = vmatprep.subr.bf16.mxu1 %v7266_v1  ;;  %6947 = vmatpush3.bf16.msra.mxu0 %v7265_v0  ;;  %v7271_v6 = vld [vmem:[%s11389_s3] sm:$0xff]   ;;  %v7273_v14 = vld [vmem:[%s11391_s5 + $0x18] sm:$0xff]   ;;  %v7274_v19 = vld [vmem:[%s11391_s5 + $0x10] sm:$0xff]   ;;  %vm1019_vm2 = vcmask 64512  }
   0xe   : > { %s11735_s29 = smov (!%p465_p3, %s6498_s29), 15  ;;  %6963 = vmatpush3.bf16.msra.mxu1 %v7266_v1  ;;  %6948 = vmatprep.subr.bf16.mxu0 %v7267_v2  ;;  %v7272_v9 = vld [vmem:[%s11390_s4] sm:$0xff]   ;;  %s11737_s30 = smov (!%p471_p4, %s6500_s30), 127  ;;  %v7275_v24 = vld [vmem:[%s11391_s5 + $0x8] sm:$0xff]   ;;  %v7281_v29 = vld [vmem:[%s11392_s6 + $0x18] sm:$0xff]  }
   0xf   : > { %6964 = vmatprep.subr.bf16.mxu1 %v7268_v3  ;;  %s6499_s23 = sshll.u32 %s11735_s29, 3  ;;  %v858_v13 = vld [vmem:[%s11393_s7] sm:$0xf]  ;;  %s6501_s21 = sshll.u32 %s11737_s30, 2  ;;  %v7298_v36 = vld [vmem:[%s11392_s6 + $0x10] sm:$0xff]   ;;  %v7315_v46 = vld [vmem:[%s11392_s6 + $0x8] sm:$0xff]  }
  0x10   : > { %s8016_s28 = scalar_lea.vmem %s11386_s0, %s6499_s23  ;;  %s8041_s27 = scalar_lea.vmem %s11388_s2, %s6501_s21  ;;  %v1118_v18 = vsel %vm1116_vm1, %v858_v13, 0  ;;  %v1986_v23 = vld [vmem:[%s11394_s8] sm:$0xf] }
  0x11   : > { %6949 = vmatpush3.bf16.msra.mxu0 %v7267_v2  ;;  %v489_v7 = vld [vmem:[%s8016_s28] sm:$0xff]  ;;  %v490_v8 = vld [vmem:[%s8016_s28 + $0x8] sm:$0xff]  ;;  %v491_v11 = vld [vmem:[%s8016_s28 + $0x10] sm:$0xff]  ;;  %s8046_s16 = scalar_lea.vmem %s11387_s1, %s6501_s21  ;;  %v1988_v32 = vsel %vm1116_vm1, %v1986_v23, 0  ;;  %s9912_s30 = scalar_lea.vmem %s11399_s13, %s6499_s23 }
  0x12   : > { %6965 = vmatpush3.bf16.msra.mxu1 %v7268_v3  ;;  %6950 = vmatprep.subr.bf16.mxu0 %v7269_v4  ;;  %v497_v10 = vpack.c.bf16 %v490_v8, %v489_v7  ;;  %v492_v12 = vld [vmem:[%s8016_s28 + $0x18] sm:$0xff]  ;;  %v493_v15 = vld [vmem:[%s8016_s28 + $0x20] sm:$0xff]  ;;  %v494_v16 = vld [vmem:[%s8016_s28 + $0x28] sm:$0xff] }
  0x13   : > { %6966 = vmatprep.subr.bf16.mxu1 %v7270_v5  ;;  %v498_v17 = vpack.c.bf16 %v492_v12, %v491_v11  ;;  %v499_v20 = vpack.c.bf16 %v494_v16, %v493_v15  ;;  %v495_v21 = vld [vmem:[%s8016_s28 + $0x30] sm:$0xff]  ;;  %v496_v22 = vld [vmem:[%s8016_s28 + $0x38] sm:$0xff]  ;;  %v8067_v26 = vld [vmem:[%s8041_s27] sm:$0xff]  }
  0x14   : > { %6954 = vmatprep.mubr.msk.bf16.mxu0 %vm668_vm0, %v497_v10  ;;  %6970 = vmatprep.mubr.msk.bf16.mxu1 %vm668_vm0, %v497_v10  ;;  %v500_v25 = vpack.c.bf16 %v496_v22, %v495_v21  ;;  %v8070_v27 = vld [vmem:[%s8046_s16] sm:$0xff]   ;;  %v8085_v30 = vld [vmem:[%s8041_s27 + $0x8] sm:$0xff]   ;;  %v8092_v33 = vld [vmem:[%s8041_s27 + $0x10] sm:$0xff]  }
  0x15   : > { %6951 = vmatpush3.bf16.msra.mxu0 %v7269_v4  ;;  %v7276_v28 = vld [vmem:[%s11391_s5] sm:$0xff]   ;;  %v8088_v31 = vld [vmem:[%s8046_s16 + $0x8] sm:$0xff]   ;;  %v8095_v34 = vld [vmem:[%s8046_s16 + $0x10] sm:$0xff]  }
  0x16   : > { %6967 = vmatpush3.bf16.msra.mxu1 %v7270_v5  ;;  %6952 = vmatprep.subr.bf16.mxu0 %v7271_v6  ;;  %v8104_v35 = vld [vmem:[%s8041_s27 + $0x18] sm:$0xff]   ;;  %v8115_v38 = vld [vmem:[%s8041_s27 + $0x20] sm:$0xff]   ;;  %v8129_v40 = vld [vmem:[%s8041_s27 + $0x28] sm:$0xff]  }
  0x17   : > { %6968 = vmatprep.subr.bf16.mxu1 %v7272_v9  ;;  %v8112_v37 = vld [vmem:[%s8046_s16 + $0x18] sm:$0xff]   ;;  %v8118_v39 = vld [vmem:[%s8046_s16 + $0x20] sm:$0xff]   ;;  %v8132_v41 = vld [vmem:[%s8046_s16 + $0x28] sm:$0xff]  }
  0x18   : > { %v8135_v42 = vld [vmem:[%s8041_s27 + $0x30] sm:$0xff]   ;;  %v8149_v44 = vld [vmem:[%s8041_s27 + $0x38] sm:$0xff]   ;;  %v8158_v47 = vld [vmem:[%s8041_s27 + $0x40] sm:$0xff]  }
  0x19   : > { %6953 = vmatpush3.bf16.msra.mxu0 %v7271_v6  ;;  %v8138_v43 = vld [vmem:[%s8046_s16 + $0x30] sm:$0xff]   ;;  %v8152_v45 = vld [vmem:[%s8046_s16 + $0x38] sm:$0xff]   ;;  %v8161_v48 = vld [vmem:[%s8046_s16 + $0x40] sm:$0xff]  }
  0x1a   : > { %6969 = vmatpush3.bf16.msra.mxu1 %v7272_v9  ;;  %7254 = vmatprep.subr.msk.bf16.mxu0 %vm1116_vm1, %v858_v13  ;;  %v8172_v49 = vld [vmem:[%s8041_s27 + $0x48] sm:$0xff]   ;;  %v8178_v51 = vld [vmem:[%s8041_s27 + $0x50] sm:$0xff]   ;;  %v8192_v53 = vld [vmem:[%s8041_s27 + $0x58] sm:$0xff]  }
  0x1b   : > { %7044 = vmatprep.subr.bf16.mxu1 %v7273_v14  ;;  %v8175_v50 = vld [vmem:[%s8046_s16 + $0x48] sm:$0xff]   ;;  %v8181_v52 = vld [vmem:[%s8046_s16 + $0x50] sm:$0xff]   ;;  %v8195_v54 = vld [vmem:[%s8046_s16 + $0x58] sm:$0xff]  }
  0x1c   : > { %6955 = vmatmul.mubr.msk.bf16.vlgmr.msra.gmra.mxu0 %vm668_vm0, %v498_v17  ;;  %v8198_v55 = vld [vmem:[%s8041_s27 + $0x60] sm:$0xff]   ;;  %v8215_v58 = vld [vmem:[%s8041_s27 + $0x68] sm:$0xff]   ;;  %v8221_v60 = vld [vmem:[%s8041_s27 + $0x70] sm:$0xff]  }
  0x1d   : > { %6971 = vmatmul.mubr.msk.bf16.vlgmr.msra.gmra.mxu1 %vm668_vm0, %v498_v17  ;;  %6979 = vmatpush3.bf16.msra.mxu0 %v1118_v18  ;;  %v7332_v56 = vld [vmem:[%s11392_s6] sm:$0xff]   ;;  %v8218_v59 = vld [vmem:[%s8046_s16 + $0x68] sm:$0xff]   ;;  %v8224_v61 = vld [vmem:[%s8046_s16 + $0x70] sm:$0xff]  }
  0x1e   : > { %7045 = vmatpush3.bf16.msra.mxu1 %v7273_v14  ;;  %6958 = vmatprep.mubr.msk.bf16.mxu0 %vm668_vm0, %v499_v20  ;;  %v8204_v57 = vld [vmem:[%s8046_s16 + $0x60] sm:$0xff]   ;;  %v8235_v62 = vld [vmem:[%s8041_s27 + $0x78] sm:$0xff]   ;;  %v8255_v2 = vld [vmem:[%s8041_s27 + $0x88] sm:$0xff]  }
  0x1f   : > { %7046 = vmatprep.subr.bf16.mxu1 %v7274_v19  ;;  %6974 = vmatprep.mubr.msk.bf16.mxu1 %vm668_vm0, %v499_v20  ;;  %v8238_v63 = vld [vmem:[%s8046_s16 + $0x78] sm:$0xff]   ;;  %v8241_v0 = vld [vmem:[%s8041_s27 + $0x80] sm:$0xff]   ;;  %v8258_v3 = vld [vmem:[%s8046_s16 + $0x88] sm:$0xff]  }
  0x20   : > { %7255 = vmatprep.subr.msk.bf16.mxu0 %vm1116_vm1, %v1986_v23  ;;  %v8244_v1 = vld [vmem:[%s8046_s16 + $0x80] sm:$0xff]   ;;  %v8261_v4 = vld [vmem:[%s8041_s27 + $0x90] sm:$0xff]   ;;  %v8275_v6 = vld [vmem:[%s8041_s27 + $0x98] sm:$0xff]  }
  0x21   : > { %v8264_v5 = vld [vmem:[%s8046_s16 + $0x90] sm:$0xff]   ;;  %v8278_v7 = vld [vmem:[%s8046_s16 + $0x98] sm:$0xff]   ;;  %v8281_v8 = vld [vmem:[%s8041_s27 + $0xa0] sm:$0xff]  }
  0x22   : > { %7047 = vmatpush3.bf16.msra.mxu1 %v7274_v19  ;;  %v8284_v9 = vld [vmem:[%s8046_s16 + $0xa0] sm:$0xff]   ;;  %v8295_v10 = vld [vmem:[%s8041_s27 + $0xa8] sm:$0xff]   ;;  %v8301_v12 = vld [vmem:[%s8041_s27 + $0xb0] sm:$0xff]  }
  0x23   : > { %7048 = vmatprep.subr.bf16.mxu1 %v7275_v24  ;;  %v8298_v11 = vld [vmem:[%s8046_s16 + $0xa8] sm:$0xff]   ;;  %v8304_v13 = vld [vmem:[%s8046_s16 + $0xb0] sm:$0xff]   ;;  %v8315_v14 = vld [vmem:[%s8041_s27 + $0xb8] sm:$0xff]  }
  0x24   : > { %6959 = vmatmul.mubr.msk.bf16.gmra.mxu0 %vm668_vm0, %v500_v25  ;;  %v8318_v15 = vld [vmem:[%s8046_s16 + $0xb8] sm:$0xff]   ;;  %v8321_v16 = vld [vmem:[%s8041_s27 + $0xc0] sm:$0xff]   ;;  %v8335_v18 = vld [vmem:[%s8041_s27 + $0xc8] sm:$0xff]  }
  0x25   : > { %6975 = vmatmul.mubr.msk.bf16.gmra.mxu1 %vm668_vm0, %v500_v25  ;;  %6980 = vmatprep.mubr.msk.bf16.mxu0 %vm1019_vm2, %v8067_v26  ;;  %v8324_v17 = vld [vmem:[%s8046_s16 + $0xc0] sm:$0xff]   ;;  %v8338_v19 = vld [vmem:[%s8046_s16 + $0xc8] sm:$0xff]   ;;  %v8341_v20 = vld [vmem:[%s8041_s27 + $0xd0] sm:$0xff]  }
  0x26   : > { %7049 = vmatpush3.bf16.msra.mxu1 %v7275_v24  ;;  %7052 = vmatprep.mubr.msk.bf16.mxu1 %vm668_vm0, %v8070_v27  ;;  %v8344_v21 = vld [vmem:[%s8046_s16 + $0xd0] sm:$0xff]   ;;  %v8355_v22 = vld [vmem:[%s8041_s27 + $0xd8] sm:$0xff]   ;;  %v8361_v24 = vld [vmem:[%s8041_s27 + $0xe0] sm:$0xff]  }
  0x27   : > { %7050 = vmatprep.subr.bf16.mxu1 %v7276_v28  ;;  %v8358_v23 = vld [vmem:[%s8046_s16 + $0xd8] sm:$0xff]   ;;  %v8364_v25 = vld [vmem:[%s8046_s16 + $0xe0] sm:$0xff]  }
  0x2a   : > { %7051 = vmatpush3.bf16.msra.mxu1 %v7276_v28  ;;  %v8375_v28 = vld [vmem:[%s8041_s27 + $0xe8] sm:$0xff]  }
  0x2b   : > { %7182 = vmatprep.subr.bf16.mxu1 %v7281_v29 }
  0x2c   : > { %6981 = vmatmul.mubr.msk.bf16.vlgmr.msra.gmra.mxu0 %vm1019_vm2, %v8085_v30 }
  0x2d   : > { %7053 = vmatmul.mubr.msk.bf16.vlgmr.msra.gmra.mxu1 %vm668_vm0, %v8088_v31  ;;  %7117 = vmatpush3.bf16.msra.mxu0 %v1988_v32  ;;  %v8381_v32 = vld [vmem:[%s8041_s27 + $0xf0] sm:$0xff]  }
  0x2e   : > { %7183 = vmatpush3.bf16.msra.mxu1 %v7281_v29  ;;  %6984 = vmatprep.mubr.msk.bf16.mxu0 %vm1019_vm2, %v8092_v33  ;;  %v8378_v29 = vld [vmem:[%s8046_s16 + $0xe8] sm:$0xff]  }
  0x2f   : > { %7056 = vmatprep.mubr.msk.bf16.mxu1 %vm668_vm0, %v8095_v34  ;;  %7184 = vmatprep.subr.bf16.mxu1 %v7298_v36 }
  0x32   : > { %7185 = vmatpush3.bf16.msra.mxu1 %v7298_v36  ;;  %v8384_v36 = vld [vmem:[%s8046_s16 + $0xf0] sm:$0xff]  }
  0x33   : > { %7186 = vmatprep.subr.bf16.mxu1 %v7315_v46 }
  0x34   : > { %6985 = vmatmul.mubr.msk.bf16.gmra.mxu0 %vm1019_vm2, %v8104_v35 }
  0x35   : > { %7057 = vmatmul.mubr.msk.bf16.gmra.mxu1 %vm668_vm0, %v8112_v37  ;;  %6988 = vmatprep.mubr.msk.bf16.mxu0 %vm1019_vm2, %v8115_v38 }
  0x36   : > { %7060 = vmatprep.mubr.msk.bf16.mxu1 %vm668_vm0, %v8118_v39  ;;  %7187 = vmatpush3.bf16.msra.mxu1 %v7315_v46  ;;  %v8395_v46 = vld [vmem:[%s8041_s27 + $0xf8] sm:$0xff]  }
  0x37   : > { %7188 = vmatprep.subr.bf16.mxu1 %v7332_v56  ;;  %11441 = vst [vmem:[#allocation2_spill] sm:$0xff] %v8395_v46 }
  0x3a   : > { %7189 = vmatpush3.bf16.msra.mxu1 %v7332_v56  ;;  %v8398_v56 = vld [vmem:[%s8046_s16 + $0xf8] sm:$0xff]  }
  0x3b   : > { %11442 = vst [vmem:[#allocation3_spill] sm:$0xff] %v8398_v56 }
  0x3c   : > { %6989 = vmatmul.mubr.msk.bf16.gmra.mxu0 %vm1019_vm2, %v8129_v40 }
  0x3d   : > { %7061 = vmatmul.mubr.msk.bf16.gmra.mxu1 %vm668_vm0, %v8132_v41  ;;  %6992 = vmatprep.mubr.msk.bf16.mxu0 %vm1019_vm2, %v8135_v42 }
  0x3e   : > { %7064 = vmatprep.mubr.msk.bf16.mxu1 %vm668_vm0, %v8138_v43 }
  0x44   : > { %6993 = vmatmul.mubr.msk.bf16.gmra.mxu0 %vm1019_vm2, %v8149_v44 }
  0x45   : > { %7065 = vmatmul.mubr.msk.bf16.gmra.mxu1 %vm668_vm0, %v8152_v45  ;;  %6996 = vmatprep.mubr.msk.bf16.mxu0 %vm1019_vm2, %v8158_v47 }
  0x46   : > { %7068 = vmatprep.mubr.msk.bf16.mxu1 %vm668_vm0, %v8161_v48 }
  0x4c   : > { %6997 = vmatmul.mubr.msk.bf16.gmra.mxu0 %vm1019_vm2, %v8172_v49 }
  0x4d   : > { %7069 = vmatmul.mubr.msk.bf16.gmra.mxu1 %vm668_vm0, %v8175_v50  ;;  %7000 = vmatprep.mubr.msk.bf16.mxu0 %vm1019_vm2, %v8178_v51 }
  0x4e   : > { %7072 = vmatprep.mubr.msk.bf16.mxu1 %vm668_vm0, %v8181_v52 }
  0x54   : > { %7001 = vmatmul.mubr.msk.bf16.gmra.mxu0 %vm1019_vm2, %v8192_v53 }
  0x55   : > { %7073 = vmatmul.mubr.msk.bf16.gmra.mxu1 %vm668_vm0, %v8195_v54  ;;  %7004 = vmatprep.mubr.msk.bf16.mxu0 %vm1019_vm2, %v8198_v55 }
  0x56   : > { %7076 = vmatprep.mubr.msk.bf16.mxu1 %vm668_vm0, %v8204_v57 }
  0x5c   : > { %7005 = vmatmul.mubr.msk.bf16.gmra.mxu0 %vm1019_vm2, %v8215_v58 }
  0x5d   : > { %7077 = vmatmul.mubr.msk.bf16.gmra.mxu1 %vm668_vm0, %v8218_v59  ;;  %7008 = vmatprep.mubr.msk.bf16.mxu0 %vm1019_vm2, %v8221_v60 }
  0x5e   : > { %7080 = vmatprep.mubr.msk.bf16.mxu1 %vm668_vm0, %v8224_v61 }
  0x64   : > { %7009 = vmatmul.mubr.msk.bf16.gmra.mxu0 %vm1019_vm2, %v8235_v62 }
  0x65   : > { %7081 = vmatmul.mubr.msk.bf16.gmra.mxu1 %vm668_vm0, %v8238_v63  ;;  %7012 = vmatprep.mubr.msk.bf16.mxu0 %vm1019_vm2, %v8241_v0 }
  0x66   : > { %7084 = vmatprep.mubr.msk.bf16.mxu1 %vm668_vm0, %v8244_v1 }
  0x6c   : > { %7013 = vmatmul.mubr.msk.bf16.gmra.mxu0 %vm1019_vm2, %v8255_v2 }
  0x6d   : > { %7085 = vmatmul.mubr.msk.bf16.gmra.mxu1 %vm668_vm0, %v8258_v3  ;;  %7016 = vmatprep.mubr.msk.bf16.mxu0 %vm1019_vm2, %v8261_v4 }
  0x6e   : > { %7088 = vmatprep.mubr.msk.bf16.mxu1 %vm668_vm0, %v8264_v5 }
  0x74   : > { %7017 = vmatmul.mubr.msk.bf16.gmra.mxu0 %vm1019_vm2, %v8275_v6 }
  0x75   : > { %7089 = vmatmul.mubr.msk.bf16.gmra.mxu1 %vm668_vm0, %v8278_v7  ;;  %7020 = vmatprep.mubr.msk.bf16.mxu0 %vm1019_vm2, %v8281_v8 }
  0x76   : > { %7092 = vmatprep.mubr.msk.bf16.mxu1 %vm668_vm0, %v8284_v9 }
  0x7c   : > { %7021 = vmatmul.mubr.msk.bf16.gmra.mxu0 %vm1019_vm2, %v8295_v10 }
  0x7d   : > { %7093 = vmatmul.mubr.msk.bf16.gmra.mxu1 %vm668_vm0, %v8298_v11  ;;  %7024 = vmatprep.mubr.msk.bf16.mxu0 %vm1019_vm2, %v8301_v12 }
  0x7e   : > { %7096 = vmatprep.mubr.msk.bf16.mxu1 %vm668_vm0, %v8304_v13 }
  0x84   : > { %7025 = vmatmul.mubr.msk.bf16.gmra.mxu0 %vm1019_vm2, %v8315_v14 }
  0x85   : > { %7097 = vmatmul.mubr.msk.bf16.gmra.mxu1 %vm668_vm0, %v8318_v15  ;;  %7028 = vmatprep.mubr.msk.bf16.mxu0 %vm1019_vm2, %v8321_v16 }
  0x86   : > { %7100 = vmatprep.mubr.msk.bf16.mxu1 %vm668_vm0, %v8324_v17 }
  0x8c   : > { %7029 = vmatmul.mubr.msk.bf16.gmra.mxu0 %vm1019_vm2, %v8335_v18 }
  0x8d   : > { %7101 = vmatmul.mubr.msk.bf16.gmra.mxu1 %vm668_vm0, %v8338_v19  ;;  %7032 = vmatprep.mubr.msk.bf16.mxu0 %vm1019_vm2, %v8341_v20 }
  0x8e   : > { %7104 = vmatprep.mubr.msk.bf16.mxu1 %vm668_vm0, %v8344_v21 }
  0x94   : > { %7033 = vmatmul.mubr.msk.bf16.gmra.mxu0 %vm1019_vm2, %v8355_v22 }
  0x95   : > { %7105 = vmatmul.mubr.msk.bf16.gmra.mxu1 %vm668_vm0, %v8358_v23  ;;  %7036 = vmatprep.mubr.msk.bf16.mxu0 %vm1019_vm2, %v8361_v24 }
  0x96   : > { %7108 = vmatprep.mubr.msk.bf16.mxu1 %vm668_vm0, %v8364_v25 }
  0x9c   : > { %7037 = vmatmul.mubr.msk.bf16.gmra.mxu0 %vm1019_vm2, %v8375_v28 }
  0x9d   : > { %7109 = vmatmul.mubr.msk.bf16.gmra.mxu1 %vm668_vm0, %v8378_v29  ;;  %7040 = vmatprep.mubr.msk.bf16.mxu0 %vm1019_vm2, %v8381_v32 }
  0x9e   : > { %7112 = vmatprep.mubr.msk.bf16.mxu1 %vm668_vm0, %v8384_v36 }
  0xa4   : > { %7041 = vmatmul.mubr.msk.bf16.gmra.mxu0 %vm1019_vm2, %v8395_v46 }
  0xa5   : > { %7113 = vmatmul.mubr.msk.bf16.gmra.mxu1 %vm668_vm0, %v8398_v56  ;;  %7118 = vmatprep.mubr.msk.bf16.mxu0 %vm1019_vm2, %v8067_v26  ;;  %v6506_v26 = vld [vmem:[%s11395_s9] ss:$0 sm:$0xff] }
  0xa6   : > { %7190 = vmatprep.mubr.msk.bf16.mxu1 %vm668_vm0, %v8070_v27  ;;  %v8462_v27 = vld [vmem:[%s11396_s10] ss:$0 sm:$0xff] }
  0xac   : > { %7119 = vmatmul.mubr.msk.bf16.vlgmr.msra.gmra.mxu0 %vm1019_vm2, %v8085_v30 }
  0xad   : > { %7191 = vmatmul.mubr.msk.bf16.vlgmr.msra.gmra.mxu1 %vm668_vm0, %v8088_v31  ;;  %7122 = vmatprep.mubr.msk.bf16.mxu0 %vm1019_vm2, %v8092_v33 }
  0xae   : > { %7194 = vmatprep.mubr.msk.bf16.mxu1 %vm668_vm0, %v8095_v34 }
  0xb4   : > { %7123 = vmatmul.mubr.msk.bf16.gmra.mxu0 %vm1019_vm2, %v8104_v35 }
  0xb5   : > { %7195 = vmatmul.mubr.msk.bf16.gmra.mxu1 %vm668_vm0, %v8112_v37  ;;  %7126 = vmatprep.mubr.msk.bf16.mxu0 %vm1019_vm2, %v8115_v38 }
  0xb6   : > { %7198 = vmatprep.mubr.msk.bf16.mxu1 %vm668_vm0, %v8118_v39 }
  0xbc   : > { %7127 = vmatmul.mubr.msk.bf16.gmra.mxu0 %vm1019_vm2, %v8129_v40 }
  0xbd   : > { %7199 = vmatmul.mubr.msk.bf16.gmra.mxu1 %vm668_vm0, %v8132_v41  ;;  %7130 = vmatprep.mubr.msk.bf16.mxu0 %vm1019_vm2, %v8135_v42 }
  0xbe   : > { %7202 = vmatprep.mubr.msk.bf16.mxu1 %vm668_vm0, %v8138_v43 }
  0xc4   : > { %7131 = vmatmul.mubr.msk.bf16.gmra.mxu0 %vm1019_vm2, %v8149_v44 }
  0xc5   : > { %7203 = vmatmul.mubr.msk.bf16.gmra.mxu1 %vm668_vm0, %v8152_v45  ;;  %7134 = vmatprep.mubr.msk.bf16.mxu0 %vm1019_vm2, %v8158_v47 }
  0xc6   : > { %7206 = vmatprep.mubr.msk.bf16.mxu1 %vm668_vm0, %v8161_v48 }
  0xcc   : > { %7135 = vmatmul.mubr.msk.bf16.gmra.mxu0 %vm1019_vm2, %v8172_v49 }
  0xcd   : > { %7207 = vmatmul.mubr.msk.bf16.gmra.mxu1 %vm668_vm0, %v8175_v50  ;;  %7138 = vmatprep.mubr.msk.bf16.mxu0 %vm1019_vm2, %v8178_v51 }
  0xce   : > { %7210 = vmatprep.mubr.msk.bf16.mxu1 %vm668_vm0, %v8181_v52 }
  0xd4   : > { %7139 = vmatmul.mubr.msk.bf16.gmra.mxu0 %vm1019_vm2, %v8192_v53 }
  0xd5   : > { %7211 = vmatmul.mubr.msk.bf16.gmra.mxu1 %vm668_vm0, %v8195_v54  ;;  %7142 = vmatprep.mubr.msk.bf16.mxu0 %vm1019_vm2, %v8198_v55  ;;  %v7911_v54 = vmov 1966171168  }
  0xd6   : > { %7214 = vmatprep.mubr.msk.bf16.mxu1 %vm668_vm0, %v8204_v57  ;;  %v2602_v55 = vunpack.c.l.s4 %v7911_v54  ;;  %v2604_v57 = vlaneseq }
  0xdc   : > { %v6956_v30 = vpop.f32.mrf.mxu0  ;;  %7143 = vmatmul.mubr.msk.bf16.gmra.mxu0 %vm1019_vm2, %v8215_v58 }
  0xdd   : > { %v8466_v31 = vadd.f32 %v6956_v30, %v6506_v26  ;;  %v6972_v33 = vpop.f32.mrf.mxu1  ;;  %7215 = vmatmul.mubr.msk.bf16.gmra.mxu1 %vm668_vm0, %v8218_v59  ;;  %7146 = vmatprep.mubr.msk.bf16.mxu0 %vm1019_vm2, %v8221_v60 }
  0xde   : > { %v8473_v34 = vadd.f32 %v6972_v33, %v8462_v27  ;;  %v715_v35 = vpop.f32.mrf.mxu0  ;;  %7218 = vmatprep.mubr.msk.bf16.mxu1 %vm668_vm0, %v8224_v61 }
  0xdf   : > { %v819_v37 = vpop.f32.mrf.mxu1 }
  0xe0   : > { %v6957_v38 = vpop.f32.mrf.mxu0 }
  0xe1   : > { %v6973_v39 = vpop.f32.mrf.mxu1  ;;  %v8481_v44 = vadd.f32 %v6957_v38, %v6506_v26  ;;  %v716_v38 = vadd.f32 %v6506_v26, %v715_v35 }
  0xe2   : > { %v718_v40 = vpop.f32.mrf.mxu0  ;;  %v8484_v45 = vadd.f32 %v6973_v39, %v8462_v27 }
  0xe3   : > { %v822_v41 = vpop.f32.mrf.mxu1  ;;  %v8488_v48 = vadd.f32 %v6506_v26, %v718_v40 }
  0xe4   : > { %v6960_v42 = vpop.f32.mrf.mxu0  ;;  %7147 = vmatmul.mubr.msk.bf16.gmra.mxu0 %vm1019_vm2, %v8235_v62  ;;  %v8491_v49 = vadd.f32 %v8462_v27, %v822_v41  ;;  %v2603_v62 = vunpack.c.0.s8 %v2602_v55 }
  0xe5   : > { %v6976_v43 = vpop.f32.mrf.mxu1  ;;  %7219 = vmatmul.mubr.msk.bf16.gmra.mxu1 %vm668_vm0, %v8238_v63  ;;  %7150 = vmatprep.mubr.msk.bf16.mxu0 %vm1019_vm2, %v8241_v0  ;;  %v8493_v50 = vadd.f32 %v6960_v42, %v6506_v26  ;;  %v2605_v63 = vshrl.u32 %v2604_v57, 7  ;;  %v2698_v42 = vcombine.high %v8466_v31, %v8466_v31  ;;  %v820_v57 = vadd.f32 %v8462_v27, %v819_v37 }
  0xe6   : > { %v731_v47 = vpop.f32.mrf.mxu0  ;;  %7222 = vmatprep.mubr.msk.bf16.mxu1 %vm668_vm0, %v8244_v1 }
  0xe7   : > { %v835_v51 = vpop.f32.mrf.mxu1  ;;  %v8524_v39 = vadd.f32 %v6506_v26, %v731_v47 }
  0xe8   : > { %v6961_v52 = vpop.f32.mrf.mxu0  ;;  %v8531_v41 = vadd.f32 %v8462_v27, %v835_v51 }
  0xe9   : > { %v6977_v53 = vpop.f32.mrf.mxu1 }
  0xea   : > { %v734_v58 = vpop.f32.mrf.mxu0  ;;  %11444 = vst [vmem:[#allocation5_spill] sm:$0xff] %v8531_v41  ;;  %v8542_v35 = vadd.f32 %v6977_v53, %v8462_v27  ;;  %v2600_v53 = vcombine.high %v716_v38, %v716_v38 }
  0xeb   : > { %v8497_v59 = vpop.f32.mrf.mxu1  ;;  %v8544_v47 = vadd.f32 %v6506_v26, %v734_v58 }
  0xec   : > { %v8499_v60 = vpop.f32.mrf.mxu0  ;;  %7151 = vmatmul.mubr.msk.bf16.gmra.mxu0 %vm1019_vm2, %v8255_v2  ;;  %v8518_v2 = vadd.f32 %v6976_v43, %v8462_v27  ;;  %v8539_v43 = vadd.f32 %v6961_v52, %v6506_v26  ;;  %11446 = vst [vmem:[#allocation7_spill] sm:$0xff] %v8542_v35 }
  0xed   : > { %v8503_v61 = vpop.f32.mrf.mxu1  ;;  %7223 = vmatmul.mubr.msk.bf16.gmra.mxu1 %vm668_vm0, %v8258_v3  ;;  %7154 = vmatprep.mubr.msk.bf16.mxu0 %vm1019_vm2, %v8261_v4  ;;  %v8522_v3 = vsub.s32 %v2603_v62, %v2605_v63  ;;  %11447 = vst [vmem:[#allocation8_spill] sm:$0xff] %v8544_v47  ;;  %v8587_v47 = vsub.s32 0, %v2605_v63 }
  0xee   : > { %v8507_v0 = vpop.f32.mrf.mxu0  ;;  %7226 = vmatprep.mubr.msk.bf16.mxu1 %vm668_vm0, %v8264_v5  ;;  %11443 = vst [vmem:[#allocation4_spill] sm:$0xff] %v8518_v2  ;;  %11445 = vst [vmem:[#allocation6_spill] sm:$0xff] %v8539_v43  ;;  %v3384_v2 = vcombine.high %v820_v57, %v820_v57 }
  0xef   : > { %v8511_v1 = vpop.f32.mrf.mxu1  ;;  %v2705_v51 = vrot.slane %v8466_v31, %v8522_v3  ;;  %v2607_v55 = vrot.slane %v716_v38, %v8522_v3  ;;  %v3489_v26 = vrot.slane %v8473_v34, %v8522_v3  ;;  %v8569_v58 = vrot.slane %v2698_v42, %v8522_v3 }
  0xf0   : > { %v8515_v30 = vpop.f32.mrf.mxu0  ;;  %v8579_v41 = vrot.slane %v2600_v53, %v8522_v3  ;;  %v3391_v42 = vrot.slane %v820_v57, %v8522_v3 }
  0xf1   : > { %v8520_v33 = vpop.f32.mrf.mxu1  ;;  %11448 = vst [vmem:[#allocation9_spill] sm:$0xff] %v8569_v58  ;;  %v2713_v35 = vcombine.high %v2705_v51, %v2705_v51  ;;  %v3497_v37 = vcombine.high %v3489_v26, %v3489_v26  ;;  %v8584_v43 = vrot.slane %v2705_v51, %v8522_v3  ;;  %v8597_v53 = vrot.slane %v8569_v58, %v8522_v3 }
  0xf2   : > { %v8526_v40 = vpop.f32.mrf.mxu0  ;;  %v8600_v46 = vrot.slane %v3489_v26, %v8522_v3  ;;  %v2623_v51 = vrot.slane %v2607_v55, %v8522_v3 }
  0xf3   : > { %v8528_v4 = vpop.f32.mrf.mxu1  ;;  %11450 = vst [vmem:[#allocation11_spill] sm:$0xff] %v8597_v53  ;;  %v8608_v63 = vrot.slane %v2713_v35, %v8522_v3  ;;  %v2630_v35 = vrot.slane %v8579_v41, %v8522_v3 }
  0xf4   : > { %v8533_v5 = vpop.f32.mrf.mxu0  ;;  %7155 = vmatmul.mubr.msk.bf16.gmra.mxu0 %vm1019_vm2, %v8275_v6  ;;  %v3482_v6 = vcombine.high %v8473_v34, %v8473_v34  ;;  %v2615_v34 = vcombine.high %v2607_v55, %v2607_v55  ;;  %11451 = vst [vmem:[#allocation12_spill] sm:$0xff] %v8600_v46  ;;  %v8622_v55 = vrot.slane %v3497_v37, %v8522_v3 }
  0xf5   : > { %v8546_v54 = vpop.f32.mrf.mxu1  ;;  %7227 = vmatmul.mubr.msk.bf16.gmra.mxu1 %vm668_vm0, %v8278_v7  ;;  %7158 = vmatprep.mubr.msk.bf16.mxu0 %vm1019_vm2, %v8281_v8  ;;  %v8640_v37 = vadd.f32 %v8462_v27, %v8497_v59  ;;  %v2995_v58 = vrot.slane %v2623_v51, %v8587_v47  ;;  %v2656_v27 = vrot.slane %v8488_v48, %v8522_v3 }
  0xf6   : > { %v8555_v52 = vpop.f32.mrf.mxu0  ;;  %7230 = vmatprep.mubr.msk.bf16.mxu1 %vm668_vm0, %v8284_v9  ;;  %v8574_v8 = vrot.slane %v3482_v6, %v8522_v3  ;;  %v2637_v26 = vrot.slane %v2615_v34, %v8522_v3  ;;  %11453 = vst [vmem:[#allocation14_spill] sm:$0xff] %v8622_v55  ;;  %v3399_v34 = vcombine.high %v3391_v42, %v3391_v42 }
  0xf7   : > { %v8562_v7 = vpop.f32.mrf.mxu1  ;;  %11456 = vst [vmem:[#allocation17_spill] sm:$0xff] %v8640_v37  ;;  %v2645_v55 = vcombine.high %v2623_v51, %v2623_v51  ;;  %v1735_v59 = vadd.f32 %v8520_v33, %v8515_v30  ;;  %v2649_v33 = vcombine.high %v8488_v48, %v8488_v48  ;;  %v3531_v48 = vcombine.high %v8484_v45, %v8484_v45 }
  0xf8   : > { %v8566_v31 = vpop.f32.mrf.mxu0  ;;  %11449 = vst [vmem:[#allocation10_spill] sm:$0xff] %v8574_v8  ;;  %v8614_v6 = vrot.slane %v8574_v8, %v8522_v3 }
  0xf9   : > { %v8571_v62 = vpop.f32.mrf.mxu1  ;;  %v3003_v37 = vrot.slane %v2645_v55, %v8587_v47 }
  0xfa   : > { %v8576_v38 = vpop.f32.mrf.mxu0  ;;  %11452 = vst [vmem:[#allocation13_spill] sm:$0xff] %v8614_v6  ;;  %v1732_v6 = vadd.f32 %v8503_v61, %v8499_v60  ;;  %v2647_v60 = vcombine.high %v2637_v26, %v2637_v26 }
  0xfb   : > { %v8581_v9 = vpop.f32.mrf.mxu1 }
  0xfc   : > { %v8589_v56 = vpop.f32.mrf.mxu0  ;;  %7159 = vmatmul.mubr.msk.bf16.gmra.mxu0 %vm1019_vm2, %v8295_v10  ;;  %v8629_v10 = vrot.slane %v3384_v2, %v8522_v3  ;;  %v2747_v2 = vcombine.high %v8481_v44, %v8481_v44 }
  0xfd   : > { %v8603_v57 = vpop.f32.mrf.mxu1  ;;  %7231 = vmatmul.mubr.msk.bf16.gmra.mxu1 %vm668_vm0, %v8298_v11  ;;  %7162 = vmatprep.mubr.msk.bf16.mxu0 %vm1019_vm2, %v8301_v12  ;;  %v2616_v11 = vcombine.high %v8579_v41, %v8579_v41  ;;  %v8636_v12 = vrot.slane %v3391_v42, %v8522_v3 }
  0xfe   : > { %v8617_v46 = vpop.f32.mrf.mxu0  ;;  %11454 = vst [vmem:[#allocation15_spill] sm:$0xff] %v8629_v10  ;;  %7234 = vmatprep.mubr.msk.bf16.mxu1 %vm668_vm0, %v8304_v13  ;;  %v1724_v13 = vadd.f32 %v8511_v1, %v8507_v0  ;;  %v1727_v0 = vadd.f32 %v8528_v4, %v8526_v40  ;;  %v2999_v1 = vrot.slane %v2637_v26, %v8587_v47 }
  0xff   : > { %v8631_v8 = vpop.f32.mrf.mxu1  ;;  %11455 = vst [vmem:[#allocation16_spill] sm:$0xff] %v8636_v12  ;;  %v8653_v12 = vrot.slane %v8481_v44, %v8522_v3  ;;  %v8673_v30 = vrot.slane %v8629_v10, %v8522_v3  ;;  %v8682_v40 = vadd.f32 %v3003_v37, %v1732_v6  ;;  %v1748_v26 = vadd.f32 %v8546_v54, %v8533_v5 }
 0x100   : > { %v8644_v41 = vpop.f32.mrf.mxu0  ;;  %v8662_v53 = vadd.f32 %v2995_v58, %v1724_v13  ;;  %v3007_v58 = vrot.slane %v2647_v60, %v8587_v47  ;;  %v8684_v4 = vadd.f32 %v2999_v1, %v1727_v0  ;;  %v2664_v60 = vcombine.high %v2656_v27, %v2656_v27 }
 0x101   : > { %v7063_v42 = vpop.f32.mrf.mxu1  ;;  %11457 = vst [vmem:[#allocation18_spill] sm:$0xff] %v8673_v30  ;;  %v8704_v5 = vrot.slane %v3399_v34, %v8522_v3  ;;  %v2646_v54 = vcombine.high %v2630_v35, %v2630_v35  ;;  %v1751_v34 = vadd.f32 %v8571_v62, %v8566_v31 }
 0x102   : > { %v8659_v61 = vpop.f32.mrf.mxu0  ;;  %v8697_v6 = vadd.f32 %v3007_v58, %v1735_v59  ;;  %v1740_v59 = vadd.f32 %v8562_v7, %v8555_v52  ;;  %v2644_v58 = vrot.slane %v2616_v11, %v8522_v3  ;;  %v2686_v10 = vrot.slane %v2664_v60, %v8522_v3 }
 0x103   : > { %v8667_v44 = vpop.f32.mrf.mxu1  ;;  %v1764_v7 = vadd.f32 %v8603_v57, %v8589_v56  ;;  %v1756_v56 = vadd.f32 %v8631_v8, %v8617_v46  ;;  %v8756_v46 = vrot.slane %v3531_v48, %v8522_v3 }
 0x104   : > { %v8678_v55 = vpop.f32.mrf.mxu0  ;;  %7163 = vmatmul.mubr.msk.bf16.gmra.mxu0 %vm1019_vm2, %v8315_v14  ;;  %v2672_v14 = vrot.slane %v2656_v27, %v8522_v3  ;;  %v8714_v27 = vrot.slane %v2649_v33, %v8522_v3  ;;  %v1743_v33 = vadd.f32 %v8581_v9, %v8576_v38  ;;  %v2648_v11 = vcombine.high %v2644_v58, %v2644_v58 }
 0x105   : > { %v8688_v13 = vpop.f32.mrf.mxu1  ;;  %7235 = vmatmul.mubr.msk.bf16.gmra.mxu1 %vm668_vm0, %v8318_v15  ;;  %7166 = vmatprep.mubr.msk.bf16.mxu0 %vm1019_vm2, %v8321_v16  ;;  %v8707_v15 = vrot.slane %v2747_v2, %v8522_v3  ;;  %v8711_v16 = vrot.slane %v8484_v45, %v8522_v3  ;;  %v2762_v2 = vcombine.high %v8653_v12, %v8653_v12 }
 0x106   : > { %v8699_v37 = vpop.f32.mrf.mxu0  ;;  %7238 = vmatprep.mubr.msk.bf16.mxu1 %vm668_vm0, %v8324_v17  ;;  %v3011_v17 = vrot.slane %v2630_v35, %v8587_v47  ;;  %v3019_v45 = vrot.slane %v2646_v54, %v8587_v47  ;;  %v2694_v31 = vcombine.high %v2672_v14, %v2672_v14  ;;  %v8734_v35 = vrot.slane %v8653_v12, %v8522_v3 }
 0x107   : > { %v1771_v0 = vpop.f32.mrf.mxu1  ;;  %v3015_v30 = vrot.slane %v2644_v58, %v8587_v47  ;;  %v2679_v9 = vrot.slane %v8714_v27, %v8522_v3  ;;  %v3027_v57 = vrot.slane %v2672_v14, %v8587_v47  ;;  %v3023_v12 = vrot.slane %v2648_v11, %v8587_v47  ;;  %11458 = vst [vmem:[#allocation19_spill] sm:$0xff] %v8756_v46 }
 0x108   : > { %v6995_v1 = vpop.f32.mrf.mxu0  ;;  %v8728_v52 = vadd.f32 %v3011_v17, %v1740_v59  ;;  %v8736_v54 = vadd.f32 %v3019_v45, %v1748_v26  ;;  %v3035_v60 = vrot.slane %v2694_v31, %v8587_v47  ;;  %v1767_v17 = vadd.f32 %v7063_v42, %v8644_v41 }
 0x109   : > { %v7067_v51 = vpop.f32.mrf.mxu1  ;;  %v8748_v26 = vadd.f32 %v3015_v30, %v1743_v33  ;;  %v8760_v14 = vadd.f32 %v3027_v57, %v1756_v56  ;;  %v3546_v41 = vcombine.high %v8711_v16, %v8711_v16  ;;  %v1759_v42 = vadd.f32 %v8667_v44, %v8659_v61 }
 0x10a   : > { %v1205_v62 = vpop.f32.mrf.mxu0  ;;  %v8758_v8 = vadd.f32 %v3035_v60, %v1764_v7  ;;  %v2665_v33 = vcombine.high %v8714_v27, %v8714_v27  ;;  %v3031_v7 = vrot.slane %v2686_v10, %v8587_v47  ;;  %v1780_v61 = vadd.f32 %v8688_v13, %v8678_v55 }
 0x10b   : > { %v1774_v38 = vpop.f32.mrf.mxu1  ;;  %v2695_v44 = vcombine.high %v2679_v9, %v2679_v9  ;;  %v3433_v27 = vcombine.high %v8491_v49, %v8491_v49  ;;  %v3043_v55 = vrot.slane %v2679_v9, %v8587_v47  ;;  %v1783_v13 = vadd.f32 %v7067_v51, %v6995_v1 }
 0x10c   : > { %v6998_v59 = vpop.f32.mrf.mxu0  ;;  %7167 = vmatmul.mubr.msk.bf16.gmra.mxu0 %vm1019_vm2, %v8335_v18  ;;  %v2696_v18 = vcombine.high %v2686_v10, %v2686_v10  ;;  %v8793_v56 = vadd.f32 %v3031_v7, %v1759_v42  ;;  %v1772_v10 = vadd.f32 %v1771_v0, %v8699_v37  ;;  %v2894_v42 = vcombine.high %v8493_v50, %v8493_v50 }
 0x10d   : > { %v7070_v45 = vpop.f32.mrf.mxu1  ;;  %7239 = vmatmul.mubr.msk.bf16.gmra.mxu1 %vm668_vm0, %v8338_v19  ;;  %7170 = vmatprep.mubr.msk.bf16.mxu0 %vm1019_vm2, %v8341_v20  ;;  %v8768_v19 = vrot.slane %v8711_v16, %v8522_v3  ;;  %v8770_v20 = vadd.f32 %v3023_v12, %v1751_v34  ;;  %v8782_v16 = vrot.slane %v8707_v15, %v8522_v3  ;;  %v6724_v37 = vmul.f32 -1.442695, %v8662_v53 }
 0x10e   : > { %v1218_v58 = vpop.f32.mrf.mxu0  ;;  %7242 = vmatprep.mubr.msk.bf16.mxu1 %vm668_vm0, %v8344_v21  ;;  %v3039_v21 = vrot.slane %v2696_v18, %v8587_v47  ;;  %v8785_v34 = vrot.slane %v2762_v2, %v8522_v3  ;;  %v8800_v2 = vrot.slane %v8491_v49, %v8522_v3  ;;  %v3051_v12 = vrot.slane %v2695_v44, %v8587_v47 }
 0x10f   : > { %11459 = vst [vmem:[#allocation20_spill] sm:$0xff] %v8768_v19  ;;  %v1787_v30 = vpop.f32.mrf.mxu1  ;;  %v2693_v0 = vrot.slane %v2665_v33, %v8522_v3  ;;  %v8816_v9 = vadd.f32 %v3043_v55, %v1772_v10  ;;  %v1775_v51 = vadd.f32 %v1774_v38, %v1205_v62  ;;  %v2901_v53 = vrot.slane %v8493_v50, %v8522_v3 }
 0x110   : > { %v6999_v31 = vpop.f32.mrf.mxu0  ;;  %v8791_v60 = vadd.f32 %v3039_v21, %v1767_v17  ;;  %v8814_v49 = vadd.f32 %v3051_v12, %v1780_v61  ;;  %v1796_v44 = vadd.f32 %v7070_v45, %v6998_v59  ;;  %v8831_v62 = vrot.slane %v8756_v46, %v8522_v3 }
 0x111   : > { %v7071_v11 = vpop.f32.mrf.mxu1  ;;  %v2697_v33 = vcombine.high %v2693_v0, %v2693_v0  ;;  %v3047_v7 = vrot.slane %v2693_v0, %v8587_v47  ;;  %v8843_v59 = vrot.slane %v8800_v2, %v8522_v3  ;;  %7345 = vpow2.f32 %v6724_v37 }
 0x112   : > { %v8796_v57 = vpop.f32.mrf.mxu0  ;;  %11460 = vst [vmem:[#allocation21_spill] sm:$0xff] %v8831_v62  ;;  %v2743_v10 = vcombine.high %v8584_v43, %v8584_v43  ;;  %v1788_v12 = vadd.f32 %v1787_v30, %v1218_v58  ;;  %v2909_v0 = vcombine.high %v2901_v53, %v2901_v53  ;;  %v6727_v17 = vmul.f32 -1.442695, %v8697_v6 }
 0x113   : > { %v1790_v18 = vpop.f32.mrf.mxu1  ;;  %v8846_v45 = vadd.f32 %v3047_v7, %v1775_v51  ;;  %v3059_v37 = vrot.slane %v8584_v43, %v8587_v47  ;;  %v2745_v7 = vcombine.high %v8608_v63, %v8608_v63  ;;  %v2796_v6 = vcombine.high %v8524_v39, %v8524_v39 }
 0x114   : > { %v8810_v21 = vpop.f32.mrf.mxu0  ;;  %7171 = vmatmul.mubr.msk.bf16.gmra.mxu0 %vm1019_vm2, %v8355_v22 }
 0x115   : > { %v7074_v1 = vpop.f32.mrf.mxu1  ;;  %7243 = vmatmul.mubr.msk.bf16.gmra.mxu1 %vm668_vm0, %v8358_v23  ;;  %7174 = vmatprep.mubr.msk.bf16.mxu0 %vm1019_vm2, %v8361_v24  ;;  %v8834_v23 = vrot.slane %v3546_v41, %v8522_v3  ;;  %v8837_v24 = vrot.slane %v3433_v27, %v8522_v3  ;;  %v8849_v41 = vrot.slane %v2894_v42, %v8522_v3  ;;  %v6726_v27 = vmul.f32 -1.442695, %v8682_v40 }
 0x116   : > { %v8825_v22 = vpop.f32.mrf.mxu0  ;;  %7246 = vmatprep.mubr.msk.bf16.mxu1 %vm668_vm0, %v8364_v25  ;;  %v3055_v25 = vrot.slane %v2697_v33, %v8587_v47  ;;  %v8860_v33 = vrot.slane %v2901_v53, %v8522_v3  ;;  %v3067_v42 = vrot.slane %v2743_v10, %v8587_v47  ;;  %v1799_v40 = vadd.f32 %v7071_v11, %v6999_v31 }
 0x117   : > { %11461 = vst [vmem:[#allocation22_spill] sm:$0xff] %v8834_v23  ;;  %v1803_v38 = vpop.f32.mrf.mxu1  ;;  %v8870_v43 = vadd.f32 %v3059_v37, %v1788_v12  ;;  %7347 = vpow2.f32 %v6726_v27  ;;  %v6728_v31 = vmul.f32 -1.442695, %v8728_v52  ;;  %v3071_v53 = vrot.slane %v2745_v7, %v8587_v47 }
 0x118   : > { %v7003_v61 = vpop.f32.mrf.mxu0  ;;  %v8855_v50 = vadd.f32 %v3055_v25, %v1783_v13  ;;  %v6725_v13 = vmul.f32 -1.442695, %v8684_v4  ;;  %v8875_v11 = vadd.f32 %v3067_v42, %v1796_v44  ;;  %7349 = vpow2.f32 %v6727_v17  ;;  %v11462_v42 = vld [vmem:[#allocation11_spill] sm:$0xff] }
 0x119   : > { %v7075_v55 = vpop.f32.mrf.mxu1  ;;  %v6730_v4 = vmul.f32 -1.442695, %v8736_v54  ;;  %v1791_v12 = vadd.f32 %v1790_v18, %v8796_v57  ;;  %v8896_v54 = vadd.f32 %v3071_v53, %v1799_v40  ;;  %v8903_v27 = vrot.slane %v2909_v0, %v8522_v3 }
 0x11a   : > { %v1237_v51 = vpop.f32.mrf.mxu0  ;;  %7351 = vpow2.f32 %v6725_v13  ;;  %v6734_v37 = vmul.f32 -1.442695, %v8758_v8  ;;  %v8909_v7 = vrot.slane %v2796_v6, %v8522_v3  ;;  %v1804_v13 = vadd.f32 %v1803_v38, %v8825_v22  ;;  %v11463_v6 = vld [vmem:[#allocation9_spill] sm:$0xff]  ;;  %v11465_v22 = vld [vmem:[#allocation2_spill] sm:$0xff] }
 0x11b   : > { %v1806_v58 = vpop.f32.mrf.mxu1  ;;  %7353 = vpow2.f32 %v6728_v31  ;;  %v3075_v8 = vrot.slane %v11462_v42, %v8587_v47  ;;  %v1815_v31 = vadd.f32 %v7075_v55, %v7003_v61 }
 0x11c   : > { %v7006_v25 = vpop.f32.mrf.mxu0  ;;  %7175 = vmatmul.mubr.msk.bf16.gmra.mxu0 %vm1019_vm2, %v8375_v28  ;;  %v3063_v28 = vrot.slane %v8608_v63, %v8587_v47  ;;  %v6729_v63 = vmul.f32 -1.442695, %v8748_v26  ;;  %7355 = vpow2.f32 %v6730_v4  ;;  %v6731_v26 = vmul.f32 -1.442695, %v8770_v20 }
 0x11d   : > { %v7078_v10 = vpop.f32.mrf.mxu1  ;;  %7247 = vmatmul.mubr.msk.bf16.gmra.mxu1 %vm668_vm0, %v8378_v29  ;;  %7178 = vmatprep.mubr.msk.bf16.mxu0 %vm1019_vm2, %v8381_v32  ;;  %v8892_v29 = vrot.slane %v8849_v41, %v8522_v3  ;;  %v2803_v32 = vrot.slane %v8524_v39, %v8522_v3  ;;  %v2744_v39 = vcombine.high %v11462_v42, %v11462_v42  ;;  %v11466_v42 = vld [vmem:[#allocation3_spill] sm:$0xff] }
 0x11e   : > { %v1250_v52 = vpop.f32.mrf.mxu0  ;;  %7250 = vmatprep.mubr.msk.bf16.mxu1 %vm668_vm0, %v8384_v36  ;;  %v8899_v18 = vadd.f32 %v3063_v28, %v1791_v12  ;;  %v1812_v36 = vadd.f32 %v7074_v1, %v8810_v21  ;;  %v6732_v1 = vmul.f32 -1.442695, %v8760_v14  ;;  %7357 = vpow2.f32 %v6729_v63  ;;  %v7346_v14 = vpop.eup %7345 }
 0x11f   : > { %v1819_v57 = vpop.f32.mrf.mxu1  ;;  %v3083_v0 = vrot.slane %v2744_v39, %v8587_v47  ;;  %v2811_v12 = vcombine.high %v2803_v32, %v2803_v32  ;;  %v11464_v4 = vcombine.high %v11463_v6, %v11463_v6  ;;  %v1807_v20 = vadd.f32 %v1806_v58, %v1237_v51 }
 0x120   : > { %v7007_v17 = vpop.f32.mrf.mxu0  ;;  %7359 = vpow2.f32 %v6734_v37  ;;  %v8925_v39 = vadd.f32 %v3075_v8, %v1804_v13  ;;  %v1828_v61 = vadd.f32 %v7078_v10, %v7006_v25  ;;  %v8930_v63 = vrot.slane %v2803_v32, %v8522_v3 }
 0x121   : > { %v7079_v40 = vpop.f32.mrf.mxu1  ;;  %v2742_v28 = vrot.slane %v11464_v4, %v8522_v3  ;;  %v8923_v38 = vadd.f32 %v3083_v0, %v1812_v36  ;;  %7361 = vpow2.f32 %v6731_v26  ;;  %v11467_v4 = vld [vmem:[#allocation8_spill] sm:$0xff]  ;;  %v6735_v36 = vmul.f32 -1.442695, %v8791_v60 }
 0x122   : > { %v1253_v21 = vpop.f32.mrf.mxu0  ;;  %v2845_v37 = vcombine.high %v11467_v4, %v11467_v4  ;;  %7363 = vpow2.f32 %v6732_v1  ;;  %v2792_v25 = vcombine.high %v8734_v35, %v8734_v35  ;;  %v4352_v13 = vadd.f32 1.0, %v7346_v14 }
 0x123   : > { %v1822_v53 = vpop.f32.mrf.mxu1  ;;  %v2746_v51 = vcombine.high %v2742_v28, %v2742_v28  ;;  %v3079_v58 = vrot.slane %v2742_v28, %v8587_v47  ;;  %v1820_v26 = vadd.f32 %v1819_v57, %v1250_v52  ;;  %v6733_v28 = vmul.f32 -1.442695, %v8793_v56 }
 0x124   : > { %v7010_v30 = vpop.f32.mrf.mxu0  ;;  %7179 = vmatmul.mubr.msk.bf16.gmra.mxu0 %vm1019_vm2, %v11465_v22  ;;  %v3099_v22 = vrot.slane %v2792_v25, %v8587_v47  ;;  %v3091_v1 = vrot.slane %v8734_v35, %v8587_v47  ;;  %v7348_v44 = vpop.eup %7347  ;;  %v8949_v14 = vrot.slane %v8909_v7, %v8522_v3  ;;  %v8952_v52 = vrot.slane %v2811_v12, %v8522_v3 }
 0x125   : > { %v7082_v55 = vpop.f32.mrf.mxu1  ;;  %7251 = vmatmul.mubr.msk.bf16.gmra.mxu1 %vm668_vm0, %v11466_v42  ;;  %v3087_v0 = vrot.slane %v2746_v51, %v8587_v47  ;;  %v8939_v32 = vadd.f32 %v3079_v58, %v1807_v20  ;;  %v1831_v42 = vadd.f32 %v7079_v40, %v7007_v17  ;;  %v7350_v20 = vpop.eup %7349  ;;  %7365 = vpow2.f32 %v6735_v36 }
 0x126   : > { %v1266_v6 = vpop.f32.mrf.mxu0  ;;  %v6738_v35 = vmul.f32 -1.442695, %v8814_v49  ;;  %v8957_v17 = vadd.f32 %v3099_v22, %v1828_v61  ;;  %v8959_v40 = vadd.f32 %v3091_v1, %v1820_v26  ;;  %v8963_v58 = vrot.slane %v11467_v4, %v8522_v3 }
 0x127   : > { %v1835_v10 = vpop.f32.mrf.mxu1  ;;  %v8954_v57 = vadd.f32 %v3087_v0, %v1815_v31  ;;  %7367 = vrcp.f32 %v4352_v13  ;;  %v2794_v12 = vcombine.high %v8785_v34, %v8785_v34  ;;  %v1823_v31 = vadd.f32 %v1822_v53, %v1253_v21  ;;  %v7352_v0 = vpop.eup %7351 }
 0x128   : > { %v7011_v8 = vpop.f32.mrf.mxu0  ;;  %v8968_v36 = vrot.slane %v2845_v37, %v8522_v3  ;;  %v4354_v49 = vadd.f32 1.0, %v7348_v44  ;;  %7369 = vpow2.f32 %v6733_v28  ;;  %v3095_v61 = vrot.slane %v8785_v34, %v8587_v47  ;;  %v7354_v22 = vpop.eup %7353 }
 0x129   : > { %v7083_v60 = vpop.f32.mrf.mxu1  ;;  %v4355_v1 = vadd.f32 1.0, %v7350_v20  ;;  %v6736_v4 = vmul.f32 -1.442695, %v8816_v9  ;;  %v3103_v13 = vrot.slane %v2794_v12, %v8587_v47  ;;  %v1844_v48 = vadd.f32 %v7082_v55, %v7010_v30  ;;  %v7356_v21 = vpop.eup %7355 }
 0x12a   : > { %v1269_v56 = vpop.f32.mrf.mxu0  ;;  %7371 = vpow2.f32 %v6738_v35  ;;  %v8974_v53 = vadd.f32 %v3095_v61, %v1823_v31  ;;  %v2793_v44 = vcombine.high %v8782_v16, %v8782_v16  ;;  %v1836_v37 = vadd.f32 %v1835_v10, %v1266_v6 }
 0x12b   : > { %v1838_v51 = vpop.f32.mrf.mxu1  ;;  %v4353_v62 = vadd.f32 1.0, %v7352_v0  ;;  %v8978_v34 = vadd.f32 %v3103_v13, %v1831_v42  ;;  %v3107_v20 = vrot.slane %v8782_v16, %v8587_v47  ;;  %v1847_v9 = vadd.f32 %v7083_v60, %v7011_v8  ;;  %v7358_v12 = vpop.eup %7357 }
 0x12c   : > { %v7014_v25 = vpop.f32.mrf.mxu0  ;;  %7373 = vrcp.f32 %v4354_v49  ;;  %v4356_v30 = vadd.f32 1.0, %v7354_v22  ;;  %v3115_v55 = vrot.slane %v2793_v44, %v8587_v47  ;;  %v11468_v35 = vcombine.high %v8707_v15, %v8707_v15 }
 0x12d   : > { %v7086_v26 = vpop.f32.mrf.mxu1  ;;  %v7360_v10 = vpop.eup %7359  ;;  %7375 = vpow2.f32 %v6736_v4  ;;  %v6739_v42 = vmul.f32 -1.442695, %v8855_v50  ;;  %v8988_v0 = vadd.f32 %v3107_v20, %v1836_v37  ;;  %v1839_v16 = vadd.f32 %v1838_v51, %v1269_v56 }
 0x12e   : > { %v1282_v46 = vpop.f32.mrf.mxu0  ;;  %v2791_v31 = vrot.slane %v11468_v35, %v8522_v3  ;;  %v7362_v60 = vpop.eup %7361  ;;  %7377 = vrcp.f32 %v4355_v1  ;;  %v4358_v49 = vadd.f32 1.0, %v7356_v21  ;;  %v8990_v61 = vadd.f32 %v3115_v55, %v1844_v48 }
 0x12f   : > { %v1851_v28 = vpop.f32.mrf.mxu1  ;;  %v7364_v44 = vpop.eup %7363  ;;  %7379 = vrcp.f32 %v4353_v62  ;;  %v4357_v15 = vadd.f32 1.0, %v7358_v12  ;;  %v1860_v19 = vadd.f32 %v7086_v26, %v7014_v25  ;;  %v4362_v50 = vadd.f32 1.0, %v7360_v10 }
 0x130   : > { %v7015_v23 = vpop.f32.mrf.mxu0  ;;  %v2795_v22 = vcombine.high %v2791_v31, %v2791_v31  ;;  %v3111_v35 = vrot.slane %v2791_v31, %v8587_v47  ;;  %7381 = vrcp.f32 %v4356_v30  ;;  %v6737_v37 = vmul.f32 -1.442695, %v8846_v45 }
 0x131   : > { %v7087_v6 = vpop.f32.mrf.mxu1  ;;  %7383 = vpow2.f32 %v6739_v42  ;;  %v2841_v48 = vcombine.high %v8930_v63, %v8930_v63  ;;  %v1852_v21 = vadd.f32 %v1851_v28, %v1282_v46  ;;  %v4359_v20 = vadd.f32 1.0, %v7362_v60 }
 0x132   : > { %v1285_v8 = vpop.f32.mrf.mxu0  ;;  %v3119_v56 = vrot.slane %v2795_v22, %v8587_v47  ;;  %v8995_v1 = vadd.f32 %v3111_v35, %v1839_v16  ;;  %7385 = vrcp.f32 %v4358_v49  ;;  %v3123_v25 = vrot.slane %v8930_v63, %v8587_v47  ;;  %v7366_v45 = vpop.eup %7365 }
 0x133   : > { %v1854_v13 = vpop.f32.mrf.mxu1  ;;  %v2860_v30 = vcombine.high %v8963_v58, %v8963_v58  ;;  %7387 = vrcp.f32 %v4357_v15  ;;  %v6742_v55 = vmul.f32 -1.442695, %v8875_v11  ;;  %v3131_v31 = vrot.slane %v2841_v48, %v8587_v47 }
 0x134   : > { %v7018_v4 = vpop.f32.mrf.mxu0  ;;  %v8999_v12 = vadd.f32 %v3119_v56, %v1847_v9  ;;  %v9007_v46 = vpop.eup %7367  ;;  %7389 = vrcp.f32 %v4362_v50  ;;  %v4360_v28 = vadd.f32 1.0, %v7364_v44  ;;  %v6740_v9 = vmul.f32 -1.442695, %v8870_v43 }
 0x135   : > { %v7090_v51 = vpop.f32.mrf.mxu1  ;;  %v9010_v42 = vadd.f32 %v3123_v25, %v1852_v21  ;;  %v7370_v16 = vpop.eup %7369  ;;  %7391 = vpow2.f32 %v6737_v37  ;;  %v9012_v60 = vadd.f32 %v3131_v31, %v1860_v19  ;;  %v1863_v49 = vadd.f32 %v7087_v6, %v7015_v23 }
 0x136   : > { %v1298_v62 = vpop.f32.mrf.mxu0  ;;  %v2843_v11 = vcombine.high %v8952_v52, %v8952_v52  ;;  %7393 = vrcp.f32 %v4359_v20  ;;  %v6743_v15 = vmul.f32 -1.442695, %v8896_v54  ;;  %v1855_v35 = vadd.f32 %v1854_v13, %v1285_v8 }
 0x137   : > { %v1867_v26 = vpop.f32.mrf.mxu1  ;;  %v3127_v44 = vrot.slane %v8952_v52, %v8587_v47  ;;  %v7372_v50 = vpop.eup %7371  ;;  %v4363_v56 = vadd.f32 1.0, %v7366_v45  ;;  %7395 = vpow2.f32 %v6742_v55  ;;  %v6741_v37 = vmul.f32 -1.442695, %v8899_v18 }
 0x138   : > { %v7019_v10 = vpop.f32.mrf.mxu0  ;;  %v3135_v19 = vrot.slane %v2843_v11, %v8587_v47  ;;  %7397 = vrcp.f32 %v4360_v28  ;;  %v4361_v6 = vadd.f32 1.0, %v7370_v16  ;;  %v1876_v21 = vadd.f32 %v7090_v51, %v7018_v4 }
 0x139   : > { %v7091_v63 = vpop.f32.mrf.mxu1  ;;  %v9021_v48 = vadd.f32 %v3127_v44, %v1855_v35  ;;  %v9023_v54 = vpop.eup %7373  ;;  %7399 = vpow2.f32 %v6740_v9  ;;  %v2842_v52 = vcombine.high %v8949_v14, %v8949_v14  ;;  %v1868_v13 = vadd.f32 %v1867_v26, %v1298_v62 }
 0x13a   : > { %v1301_v22 = vpop.f32.mrf.mxu0  ;;  %v9025_v8 = vadd.f32 %v3135_v19, %v1863_v49  ;;  %v7376_v18 = vpop.eup %7375  ;;  %v2868_v45 = vrot.slane %v8963_v58, %v8522_v3  ;;  %v4366_v55 = vadd.f32 1.0, %v7372_v50  ;;  %7401 = vpow2.f32 %v6743_v15 }
 0x13b   : > { %v1870_v43 = vpop.f32.mrf.mxu1  ;;  %v3139_v4 = vrot.slane %v8949_v14, %v8587_v47  ;;  %v9033_v31 = vpop.eup %7377  ;;  %v9037_v28 = vrot.slane %v8968_v36, %v8522_v3  ;;  %7403 = vrcp.f32 %v4363_v56  ;;  %v6746_v62 = vmul.f32 -1.442695, %v8923_v38 }
 0x13c   : > { %v7022_v23 = vpop.f32.mrf.mxu0  ;;  %v3147_v26 = vrot.slane %v2842_v52, %v8587_v47  ;;  %v9041_v16 = vpop.eup %7379  ;;  %7405 = vpow2.f32 %v6741_v37  ;;  %v6744_v49 = vmul.f32 -1.442695, %v8925_v39  ;;  %v1879_v14 = vadd.f32 %v7091_v63, %v7019_v10 }
 0x13d   : > { %v7094_v20 = vpop.f32.mrf.mxu1  ;;  %v9044_v11 = vadd.f32 %v3139_v4, %v1868_v13  ;;  %v9046_v35 = vpop.eup %7381  ;;  %7407 = vrcp.f32 %v4361_v6  ;;  %v4364_v44 = vadd.f32 1.0, %v7376_v18  ;;  %v11470_v38 = vcombine.high %v8909_v7, %v8909_v7 }
 0x13e   : > { %v1314_v25 = vpop.f32.mrf.mxu0  ;;  %11469 = vst [vmem:[#allocation11_spill] sm:$0xff] %v9046_v35  ;;  %v9048_v50 = vadd.f32 %v3147_v26, %v1876_v21  ;;  %v7384_v52 = vpop.eup %7383  ;;  %v9058_v39 = vrot.slane %v2860_v30, %v8522_v3  ;;  %7409 = vrcp.f32 %v4366_v55  ;;  %v1871_v10 = vadd.f32 %v1870_v43, %v1301_v22 }
 0x13f   : > { %v1883_v51 = vpop.f32.mrf.mxu1  ;;  %v2840_v56 = vrot.slane %v11470_v38, %v8522_v3  ;;  %v1892_v63 = vadd.f32 %v7094_v20, %v7022_v23  ;;  %v9060_v6 = vpop.eup %7385  ;;  %7411 = vpow2.f32 %v6746_v62  ;;  %v6747_v21 = vmul.f32 -1.442695, %v8954_v57 }
 0x140   : > { %v7023_v9 = vpop.f32.mrf.mxu0  ;;  %v6745_v7 = vmul.f32 -1.442695, %v8939_v32  ;;  %v9064_v4 = vpop.eup %7387  ;;  %7413 = vpow2.f32 %v6744_v49  ;;  %v2890_v30 = vcombine.high %v2868_v45, %v2868_v45  ;;  %v1884_v26 = vadd.f32 %v1883_v51, %v1314_v25 }
 0x141   : > { %v7095_v15 = vpop.f32.mrf.mxu1  ;;  %v2844_v13 = vcombine.high %v2840_v56, %v2840_v56  ;;  %11471 = vst [vmem:[#allocation9_spill] sm:$0xff] %v9064_v4  ;;  %v3143_v58 = vrot.slane %v2840_v56, %v8587_v47  ;;  %v9067_v22 = vpop.eup %7389  ;;  %7415 = vrcp.f32 %v4364_v44  ;;  %v4367_v43 = vadd.f32 1.0, %v7384_v52 }
 0x142   : > { %v1317_v19 = vpop.f32.mrf.mxu0  ;;  %11472 = vst [vmem:[#allocation2_spill] sm:$0xff] %v9067_v22  ;;  %v3155_v57 = vrot.slane %v2868_v45, %v8587_v47  ;;  %v7392_v32 = vpop.eup %7391  ;;  %v6750_v62 = vmul.f32 -1.442695, %v8957_v17  ;;  %v3163_v49 = vrot.slane %v2890_v30, %v8587_v47  ;;  %v1895_v56 = vadd.f32 %v7095_v15, %v7023_v9  ;;  %v11475_v30 = vld [vmem:[#allocation6_spill] sm:$0xff] }
 0x143   : > { %v1886_v37 = vpop.f32.mrf.mxu1  ;;  %v3151_v23 = vrot.slane %v2844_v13, %v8587_v47  ;;  %v9072_v38 = vadd.f32 %v3143_v58, %v1871_v10  ;;  %v9075_v25 = vpop.eup %7393  ;;  %7417 = vpow2.f32 %v6747_v21  ;;  %v2892_v45 = vcombine.high %v9058_v39, %v9058_v39 }
 0x144   : > { %v7026_v18 = vpop.f32.mrf.mxu0  ;;  %11473 = vst [vmem:[#allocation3_spill] sm:$0xff] %v9075_v25  ;;  %v9079_v44 = vadd.f32 %v3155_v57, %v1884_v26  ;;  %v7396_v13 = vpop.eup %7395  ;;  %7419 = vpow2.f32 %v6745_v7  ;;  %v6748_v17 = vmul.f32 -1.442695, %v8959_v40  ;;  %v9084_v10 = vadd.f32 %v3163_v49, %v1892_v63 }
 0x145   : > { %v7098_v55 = vpop.f32.mrf.mxu1  ;;  %v9077_v51 = vadd.f32 %v3151_v23, %v1879_v14  ;;  %v1887_v58 = vadd.f32 %v1886_v37, %v1317_v19  ;;  %v9086_v15 = vpop.eup %7397  ;;  %v2861_v21 = vcombine.high %v8968_v36, %v8968_v36  ;;  %7421 = vrcp.f32 %v4367_v43 }
 0x146   : > { %v1330_v20 = vpop.f32.mrf.mxu0  ;;  %11474 = vst [vmem:[#allocation8_spill] sm:$0xff] %v9086_v15  ;;  %v4365_v26 = vadd.f32 1.0, %v7392_v32  ;;  %v7400_v57 = vpop.eup %7399  ;;  %7423 = vpow2.f32 %v6750_v62  ;;  %v6751_v7 = vmul.f32 -1.442695, %v8978_v34  ;;  %v6749_v40 = vmul.f32 -1.442695, %v8974_v53 }
 0x147   : > { %v1899_v4 = vpop.f32.mrf.mxu1  ;;  %v3167_v19 = vrot.slane %v2892_v45, %v8587_v47  ;;  %v7402_v37 = vpop.eup %7401  ;;  %v4370_v49 = vadd.f32 1.0, %v7396_v13  ;;  %v3159_v14 = vrot.slane %v9058_v39, %v8587_v47  ;;  %v1908_v15 = vadd.f32 %v7098_v55, %v7026_v18 }
 0x148   : > { %v7027_v52 = vpop.f32.mrf.mxu0  ;;  %v2891_v36 = vcombine.high %v9037_v28, %v9037_v28  ;;  %v9099_v32 = vpop.eup %7403  ;;  %7425 = vpow2.f32 %v6748_v17  ;;  %v1900_v34 = vadd.f32 %v1899_v4, %v1330_v20  ;;  %v3171_v53 = vrot.slane %v9037_v28, %v8587_v47 }
 0x149   : > { %v7099_v9 = vpop.f32.mrf.mxu1  ;;  %v9101_v62 = vadd.f32 %v3167_v19, %v1895_v56  ;;  %v7406_v22 = vpop.eup %7405  ;;  %7427 = vrcp.f32 %v4365_v26  ;;  %v4368_v13 = vadd.f32 1.0, %v7400_v57  ;;  %v9105_v25 = vadd.f32 %v3159_v14, %v1887_v58 }
 0x14a   : > { %v1333_v23 = vpop.f32.mrf.mxu0  ;;  %v3179_v39 = vrot.slane %v2891_v36, %v8587_v47  ;;  %v9108_v55 = vpop.eup %7407  ;;  %v4371_v35 = vadd.f32 1.0, %v7402_v37  ;;  %7429 = vpow2.f32 %v6751_v7  ;;  %v9110_v17 = vadd.f32 %v3171_v53, %v1900_v34 }
 0x14b   : > { %v1902_v63 = vpop.f32.mrf.mxu1  ;;  %11476 = vst [vmem:[#allocation6_spill] sm:$0xff] %v9108_v55  ;;  %v1911_v56 = vadd.f32 %v7099_v9, %v7027_v52  ;;  %v9112_v20 = vpop.eup %7409  ;;  %v9116_v28 = vrot.slane %v11475_v30, %v8522_v3  ;;  %7431 = vrcp.f32 %v4370_v49  ;;  %v2889_v14 = vrot.slane %v2861_v21, %v8522_v3 }
 0x14c   : > { %v7030_v43 = vpop.f32.mrf.mxu0  ;;  %11477 = vst [vmem:[#allocation23_spill] sm:$0xff] %v9112_v20  ;;  %v9118_v58 = vadd.f32 %v3179_v39, %v1908_v15  ;;  %v7412_v57 = vpop.eup %7411  ;;  %v4369_v19 = vadd.f32 1.0, %v7406_v22  ;;  %7433 = vpow2.f32 %v6749_v40  ;;  %v1903_v7 = vadd.f32 %v1902_v63, %v1333_v23 }
 0x14d   : > { %v7102_v45 = vpop.f32.mrf.mxu1  ;;  %v7414_v52 = vpop.eup %7413  ;;  %7435 = vrcp.f32 %v4368_v13  ;;  %v6754_v9 = vmul.f32 -1.442695, %v8990_v61  ;;  %v2893_v34 = vcombine.high %v2889_v14, %v2889_v14  ;;  %v3175_v53 = vrot.slane %v2889_v14, %v8587_v47 }
 0x14e   : > { %v1346_v18 = vpop.f32.mrf.mxu0  ;;  %v1924_v37 = vadd.f32 %v7102_v45, %v7030_v43  ;;  %v9123_v49 = vpop.eup %7415  ;;  %7437 = vrcp.f32 %v4371_v35  ;;  %v6752_v15 = vmul.f32 -1.442695, %v8988_v0  ;;  %v2939_v22 = vcombine.high %v8860_v33, %v8860_v33 }
 0x14f   : > { %v1915_v4 = vpop.f32.mrf.mxu1  ;;  %11478 = vst [vmem:[#allocation24_spill] sm:$0xff] %v9123_v49  ;;  %v4374_v40 = vadd.f32 1.0, %v7412_v57  ;;  %v3183_v63 = vrot.slane %v2893_v34, %v8587_v47  ;;  %v9129_v43 = vadd.f32 %v3175_v53, %v1903_v7  ;;  %v3187_v61 = vrot.slane %v8860_v33, %v8587_v47  ;;  %v11480_v33 = vld [vmem:[#allocation4_spill] sm:$0xff] }
 0x150   : > { %v7031_v26 = vpop.f32.mrf.mxu0  ;;  %v1916_v21 = vadd.f32 %v1915_v4, %v1346_v18  ;;  %v7418_v13 = vpop.eup %7417  ;;  %7439 = vrcp.f32 %v4369_v19  ;;  %v4372_v39 = vadd.f32 1.0, %v7414_v52  ;;  %v3195_v35 = vrot.slane %v2939_v22, %v8587_v47 }
 0x151   : > { %v7103_v36 = vpop.f32.mrf.mxu1  ;;  %v7420_v49 = vpop.eup %7419  ;;  %7441 = vpow2.f32 %v6754_v9  ;;  %v6755_v18 = vmul.f32 -1.442695, %v8999_v12  ;;  %v9135_v4 = vadd.f32 %v3183_v63, %v1911_v56  ;;  %v11481_v12 = vcombine.high %v11475_v30, %v11475_v30 }
 0x152   : > { %v1349_v20 = vpop.f32.mrf.mxu0  ;;  %v1927_v0 = vadd.f32 %v7103_v36, %v7031_v26  ;;  %v9137_v57 = vadd.f32 %v3187_v61, %v1916_v21  ;;  %v9139_v34 = vpop.eup %7421  ;;  %7443 = vpow2.f32 %v6752_v15  ;;  %v9143_v19 = vadd.f32 %v3195_v35, %v1924_v37 }
 0x153   : > { %v1918_v23 = vpop.f32.mrf.mxu1  ;;  %11479 = vst [vmem:[#allocation25_spill] sm:$0xff] %v9139_v34  ;;  %v2941_v26 = vcombine.high %v8903_v27, %v8903_v27  ;;  %v7424_v52 = vpop.eup %7423  ;;  %v9151_v56 = vrot.slane %v11481_v12, %v8522_v3  ;;  %v2958_v9 = vcombine.high %v9116_v28, %v9116_v28  ;;  %7445 = vrcp.f32 %v4374_v40 }
 0x154   : > { %v7034_v45 = vpop.f32.mrf.mxu0  ;;  %v4375_v22 = vadd.f32 1.0, %v7418_v13  ;;  %7447 = vrcp.f32 %v4372_v39  ;;  %v4373_v37 = vadd.f32 1.0, %v7420_v49  ;;  %v6753_v15 = vmul.f32 -1.442695, %v8995_v1 }
 0x155   : > { %v7106_v14 = vpop.f32.mrf.mxu1  ;;  %v3199_v63 = vrot.slane %v2941_v26, %v8587_v47  ;;  %v7426_v35 = vpop.eup %7425  ;;  %7449 = vpow2.f32 %v6755_v18  ;;  %v1919_v53 = vadd.f32 %v1918_v23, %v1349_v20  ;;  %v3191_v30 = vrot.slane %v8903_v27, %v8587_v47 }
 0x156   : > { %v1362_v7 = vpop.f32.mrf.mxu0  ;;  %v1940_v12 = vadd.f32 %v7106_v14, %v7034_v45  ;;  %v9159_v55 = vpop.eup %7427  ;;  %v4378_v40 = vadd.f32 1.0, %v7424_v52  ;;  %v2940_v49 = vcombine.high %v8892_v29, %v8892_v29  ;;  %7451 = vrcp.f32 %v4375_v22 }
 0x157   : > { %v1931_v36 = vpop.f32.mrf.mxu1  ;;  %11482 = vst [vmem:[#allocation4_spill] sm:$0xff] %v9159_v55  ;;  %v9161_v13 = vadd.f32 %v3199_v63, %v1927_v0  ;;  %v7430_v26 = vpop.eup %7429  ;;  %v6758_v18 = vmul.f32 -1.442695, %v9012_v60  ;;  %v9166_v20 = vadd.f32 %v3191_v30, %v1919_v53  ;;  %v3203_v27 = vrot.slane %v8892_v29, %v8587_v47 }
 0x158   : > { %v7035_v21 = vpop.f32.mrf.mxu0  ;;  %v1932_v1 = vadd.f32 %v1931_v36, %v1362_v7  ;;  %v9170_v45 = vpop.eup %7431  ;;  %v2966_v0 = vrot.slane %v9116_v28, %v8522_v3  ;;  %7453 = vrcp.f32 %v4373_v37  ;;  %v4376_v14 = vadd.f32 1.0, %v7426_v35 }
 0x159   : > { %v7107_v61 = vpop.f32.mrf.mxu1  ;;  %11483 = vst [vmem:[#allocation26_spill] sm:$0xff] %v9170_v45  ;;  %v3211_v7 = vrot.slane %v2940_v49, %v8587_v47  ;;  %v7434_v52 = vpop.eup %7433  ;;  %7455 = vpow2.f32 %v6753_v15  ;;  %v6756_v60 = vmul.f32 -1.442695, %v9010_v42  ;;  %v6759_v30 = vmul.f32 -1.442695, %v9025_v8 }
 0x15a   : > { %v1365_v34 = vpop.f32.mrf.mxu0  ;;  %v9176_v53 = vadd.f32 %v3203_v27, %v1932_v1  ;;  %v1943_v22 = vadd.f32 %v7107_v61, %v7035_v21  ;;  %v9178_v29 = vpop.eup %7435  ;;  %7457 = vrcp.f32 %v4378_v40  ;;  %v11485_v28 = vcombine.high %v8849_v41, %v8849_v41 }
 0x15b   : > { %v1934_v39 = vpop.f32.mrf.mxu1  ;;  %11484 = vst [vmem:[#allocation27_spill] sm:$0xff] %v9178_v29  ;;  %v9181_v45 = vadd.f32 %v3211_v7, %v1940_v12  ;;  %v9187_v15 = vpop.eup %7437  ;;  %7459 = vpow2.f32 %v6758_v18  ;;  %v6757_v21 = vmul.f32 -1.442695, %v9021_v48  ;;  %v2980_v8 = vrot.slane %v2958_v9, %v8522_v3 }
 0x15c   : > { %v7038_v23 = vpop.f32.mrf.mxu0  ;;  %v2938_v37 = vrot.slane %v11485_v28, %v8522_v3  ;;  %11486 = vst [vmem:[#allocation28_spill] sm:$0xff] %v9187_v15  ;;  %v1935_v61 = vadd.f32 %v1934_v39, %v1365_v34  ;;  %7461 = vrcp.f32 %v4376_v14  ;;  %v4379_v12 = vadd.f32 1.0, %v7430_v26 }
 0x15d   : > { %v7110_v36 = vpop.f32.mrf.mxu1  ;;  %v9193_v27 = vpop.eup %7439  ;;  %7463 = vpow2.f32 %v6756_v60  ;;  %v6762_v41 = vmul.f32 -1.442695, %v9048_v50  ;;  %v2988_v34 = vcombine.high %v2966_v0, %v2966_v0  ;;  %v6760_v26 = vmul.f32 -1.442695, %v9044_v11 }
 0x15e   : > { %v1378_v63 = vpop.f32.mrf.mxu0  ;;  %v2942_v49 = vcombine.high %v2938_v37, %v2938_v37  ;;  %11487 = vst [vmem:[#allocation29_spill] sm:$0xff] %v9193_v27  ;;  %v3207_v7 = vrot.slane %v2938_v37, %v8587_v47  ;;  %v1956_v28 = vadd.f32 %v7110_v36, %v7038_v23  ;;  %v7442_v18 = vpop.eup %7441  ;;  %7465 = vpow2.f32 %v6759_v30 }
 0x15f   : > { %v1947_v35 = vpop.f32.mrf.mxu1  ;;  %v7444_v14 = vpop.eup %7443  ;;  %7467 = vpow2.f32 %v6757_v21  ;;  %v3219_v60 = vrot.slane %v2966_v0, %v8587_v47  ;;  %v4377_v23 = vadd.f32 1.0, %v7434_v52  ;;  %v3227_v30 = vrot.slane %v2988_v34, %v8587_v47 }
 0x160   : > { %v7039_v40 = vpop.f32.mrf.mxu0  ;;  %v3215_v48 = vrot.slane %v2942_v49, %v8587_v47  ;;  %v1948_v39 = vadd.f32 %v1947_v35, %v1378_v63  ;;  %v9199_v15 = vadd.f32 %v3207_v7, %v1935_v61  ;;  %v9202_v27 = vpop.eup %7445  ;;  %v2973_v35 = vrot.slane %v9151_v56, %v8522_v3 }
 0x161   : > { %v7111_v1 = vpop.f32.mrf.mxu1  ;;  %11488 = vst [vmem:[#allocation30_spill] sm:$0xff] %v9202_v27  ;;  %v9207_v63 = vpop.eup %7447  ;;  %7469 = vrcp.f32 %v4379_v12  ;;  %v4382_v11 = vadd.f32 1.0, %v7442_v18  ;;  %v6763_v52 = vmul.f32 -1.442695, %v9077_v51  ;;  %v2990_v7 = vcombine.high %v2980_v8, %v2980_v8 }
 0x162   : > { %v1381_v42 = vpop.f32.mrf.mxu0  ;;  %v9204_v36 = vadd.f32 %v3215_v48, %v1943_v22  ;;  %v1959_v37 = vadd.f32 %v7111_v1, %v7039_v40  ;;  %11489 = vst [vmem:[#allocation31_spill] sm:$0xff] %v9207_v63  ;;  %v9211_v21 = vadd.f32 %v3219_v60, %v1948_v39  ;;  %v7450_v61 = vpop.eup %7449  ;;  %7471 = vpow2.f32 %v6762_v41 }
 0x163   : > { %v1950_v9 = vpop.f32.mrf.mxu1  ;;  %v9214_v22 = vadd.f32 %v3227_v30, %v1956_v28  ;;  %7473 = vpow2.f32 %v6760_v26  ;;  %v6761_v40 = vmul.f32 -1.442695, %v9072_v38  ;;  %v3223_v34 = vrot.slane %v2980_v8, %v8587_v47  ;;  %v9218_v12 = vpop.eup %7451 }
 0x164   : > { %v7042_v50 = vpop.f32.mrf.mxu0  ;;  %11490 = vst [vmem:[#allocation32_spill] sm:$0xff] %v9211_v21  ;;  %v1951_v1 = vadd.f32 %v1950_v9, %v1381_v42  ;;  %11491 = vst [vmem:[#allocation33_spill] sm:$0xff] %v9218_v12  ;;  %7475 = vrcp.f32 %v4377_v23  ;;  %v6766_v18 = vmul.f32 -1.442695, %v9084_v10  ;;  %v3231_v41 = vrot.slane %v2990_v7, %v8587_v47 }
 0x165   : > { %v7114_v49 = vpop.f32.mrf.mxu1  ;;  %v9222_v28 = vpop.eup %7453  ;;  %v9226_v26 = vrot.slane %v11480_v33, %v8522_v3  ;;  %7477 = vrcp.f32 %v4382_v11  ;;  %v2989_v42 = vcombine.high %v2973_v35, %v2973_v35  ;;  %v6764_v60 = vmul.f32 -1.442695, %v9079_v44 }
 0x166   : > { %v1394_v0 = vpop.f32.mrf.mxu0  ;;  %v1972_v39 = vadd.f32 %v7114_v49, %v7042_v50  ;;  %11492 = vst [vmem:[#allocation34_spill] sm:$0xff] %v9222_v28  ;;  %v9228_v38 = vadd.f32 %v3223_v34, %v1951_v1  ;;  %v7456_v9 = vpop.eup %7455  ;;  %7479 = vpow2.f32 %v6763_v52  ;;  %v9231_v10 = vadd.f32 %v3231_v41, %v1959_v37 }
 0x167   : > { %v1963_v48 = vpop.f32.mrf.mxu1  ;;  %v9233_v30 = vpop.eup %7457  ;;  %v4380_v49 = vadd.f32 1.0, %v7444_v14  ;;  %7481 = vpow2.f32 %v6761_v40  ;;  %v3243_v7 = vrot.slane %v2989_v42, %v8587_v47  ;;  %v3235_v11 = vrot.slane %v2973_v35, %v8587_v47 }
 0x168   : > { %v7043_v63 = vpop.f32.mrf.mxu0  ;;  %11493 = vst [vmem:[#allocation35_spill] sm:$0xff] %v9228_v38  ;;  %11494 = vst [vmem:[#allocation36_spill] sm:$0xff] %v9231_v10  ;;  %v1964_v23 = vadd.f32 %v1963_v48, %v1394_v0  ;;  %v7460_v34 = vpop.eup %7459  ;;  %7483 = vpow2.f32 %v6766_v18  ;;  %v6767_v52 = vmul.f32 -1.442695, %v9101_v62  ;;  %v11496_v44 = vcombine.high %v9151_v56, %v9151_v56 }
 0x169   : > { %v7115_v51 = vpop.f32.mrf.mxu1  ;;  %11495 = vst [vmem:[#allocation37_spill] sm:$0xff] %v9233_v30  ;;  %v9244_v48 = vpop.eup %7461  ;;  %v4383_v14 = vadd.f32 1.0, %v7450_v61  ;;  %v4381_v40 = vadd.f32 1.0, %v7456_v9  ;;  %v9246_v41 = vadd.f32 %v3243_v7, %v1972_v39  ;;  %7485 = vpow2.f32 %v6764_v60 }
 0x16a   : > { %v1397_v8 = vpop.f32.mrf.mxu0  ;;  %v1975_v28 = vadd.f32 %v7115_v51, %v7043_v63  ;;  %v2987_v37 = vrot.slane %v11496_v44, %v8522_v3  ;;  %11497 = vst [vmem:[#allocation38_spill] sm:$0xff] %v9244_v48  ;;  %v9248_v35 = vadd.f32 %v3235_v11, %v1964_v23  ;;  %v7464_v18 = vpop.eup %7463  ;;  %v9255_v44 = vrot.slane %v8837_v24, %v8522_v3 }
 0x16b   : > { %v1966_v50 = vpop.f32.mrf.mxu1  ;;  %11498 = vst [vmem:[#allocation39_spill] sm:$0xff] %v9246_v41  ;;  %v7466_v56 = vpop.eup %7465  ;;  %v11500_v61 = vcombine.high %v11480_v33, %v11480_v33  ;;  %7487 = vrcp.f32 %v4380_v49  ;;  %v4386_v9 = vadd.f32 1.0, %v7460_v34  ;;  %v3693_v33 = vcombine.high %v9226_v26, %v9226_v26 }
 0x16c   : > { %v9237_v1 = vpop.f32.mrf.mxu0  ;;  %11499 = vst [vmem:[#allocation40_spill] sm:$0xff] %v9248_v35  ;;  %v2991_v62 = vcombine.high %v2987_v37, %v2987_v37  ;;  %v1967_v63 = vadd.f32 %v1966_v50, %v1397_v8  ;;  %v3239_v51 = vrot.slane %v2987_v37, %v8587_v47  ;;  %v7468_v60 = vpop.eup %7467  ;;  %7489 = vpow2.f32 %v6767_v52 }
 0x16d   : > { %v7192_v0 = vpop.f32.mrf.mxu1  ;;  %v9261_v39 = vrot.slane %v11500_v61, %v8522_v3  ;;  %v6765_v8 = vmul.f32 -1.442695, %v9105_v25  ;;  %v11503_v37 = vcombine.high %v8800_v2, %v8800_v2  ;;  %7491 = vrcp.f32 %v4383_v14  ;;  %v11505_v25 = vld [vmem:[#allocation5_spill] sm:$0xff] }
 0x16e   : > { %v9250_v42 = vpop.f32.mrf.mxu0  ;;  %v3247_v50 = vrot.slane %v2991_v62, %v8587_v47  ;;  %v9265_v7 = vadd.f32 %v3239_v51, %v1967_v63  ;;  %v4384_v49 = vadd.f32 1.0, %v7464_v18  ;;  %v9275_v52 = vpop.eup %7469  ;;  %v3580_v62 = vcombine.high %v11505_v25, %v11505_v25 }
 0x16f   : > { %v2337_v30 = vpop.f32.mrf.mxu1  ;;  %11501 = vst [vmem:[#allocation41_spill] sm:$0xff] %v9261_v39  ;;  %v9271_v35 = vrot.slane %v11503_v37, %v8522_v3  ;;  %11504 = vst [vmem:[#allocation43_spill] sm:$0xff] %v9275_v52  ;;  %7493 = vrcp.f32 %v4381_v40  ;;  %v4387_v63 = vadd.f32 1.0, %v7466_v56  ;;  %v9285_v37 = vrot.slane %v9226_v26, %v8522_v3  ;;  %v11509_v40 = vld [vmem:[#allocation16_spill] sm:$0xff] }
 0x170   : > { %v7121_v23 = vpop.f32.mrf.mxu0  ;;  %11502 = vst [vmem:[#allocation42_spill] sm:$0xff] %v9265_v7  ;;  %v9279_v51 = vadd.f32 %v3247_v50, %v1975_v28  ;;  %v7472_v7 = vpop.eup %7471  ;;  %7495 = vrcp.f32 %v4386_v9  ;;  %v4385_v14 = vadd.f32 1.0, %v7468_v60  ;;  %v9289_v52 = vrot.slane %v9261_v39, %v8522_v3 }
 0x171   : > { %v7193_v11 = vpop.f32.mrf.mxu1  ;;  %11507 = vst [vmem:[#allocation44_spill] sm:$0xff] %v9285_v37  ;;  %v7474_v41 = vpop.eup %7473  ;;  %7497 = vpow2.f32 %v6765_v8  ;;  %v6770_v28 = vmul.f32 -1.442695, %v9118_v58  ;;  %v3429_v56 = vcombine.high %v11509_v40, %v11509_v40  ;;  %v9297_v26 = vrot.slane %v3693_v33, %v8522_v3 }
 0x172   : > { %v2027_v34 = vpop.f32.mrf.mxu0  ;;  %11506 = vst [vmem:[#allocation5_spill] sm:$0xff] %v9279_v51  ;;  %11508 = vst [vmem:[#allocation45_spill] sm:$0xff] %v9289_v52  ;;  %v9294_v2 = vpop.eup %7475  ;;  %v9301_v9 = vrot.slane %v11505_v25, %v8522_v3  ;;  %7499 = vrcp.f32 %v4384_v49  ;;  %v6768_v60 = vmul.f32 -1.442695, %v9110_v17  ;;  %v9307_v58 = vrot.slane %v3580_v62, %v8522_v3 }
 0x173   : > { %v2340_v61 = vpop.f32.mrf.mxu1  ;;  %11510 = vst [vmem:[#allocation16_spill] sm:$0xff] %v9294_v2  ;;  %11511 = vst [vmem:[#allocation46_spill] sm:$0xff] %v9297_v26  ;;  %v9304_v8 = vpop.eup %7477  ;;  %7501 = vrcp.f32 %v4387_v63  ;;  %v4390_v39 = vadd.f32 1.0, %v7472_v7  ;;  %v2346_v52 = vadd.f32 %v7192_v0, %v9237_v1  ;;  %v11514_v26 = vld [vmem:[#allocation7_spill] sm:$0xff]  ;;  %v4388_v25 = vadd.f32 1.0, %v7474_v41 }
 0x174   : > { %v7124_v18 = vpop.f32.mrf.mxu0  ;;  %11512 = vst [vmem:[#allocation47_spill] sm:$0xff] %v9304_v8  ;;  %11513 = vst [vmem:[#allocation48_spill] sm:$0xff] %v9307_v58  ;;  %v7480_v33 = vpop.eup %7479  ;;  %7503 = vrcp.f32 %v4385_v14  ;;  %v3431_v17 = vcombine.high %v8704_v5, %v8704_v5  ;;  %v6771_v8 = vmul.f32 -1.442695, %v9135_v4  ;;  %v3787_v62 = vrot.slane %v3429_v56, %v8587_v47 }
 0x175   : > { %v7196_v50 = vpop.f32.mrf.mxu1  ;;  %v7482_v49 = vpop.eup %7481  ;;  %7505 = vpow2.f32 %v6770_v28  ;;  %v2338_v7 = vadd.f32 %v2337_v30, %v9250_v42  ;;  %v9319_v1 = vrot.slane %v11514_v26, %v8522_v3  ;;  %v2349_v0 = vadd.f32 %v7193_v11, %v7121_v23 }
 0x176   : > { %v2040_v51 = vpop.f32.mrf.mxu0  ;;  %v7484_v63 = vpop.eup %7483  ;;  %7507 = vpow2.f32 %v6768_v60  ;;  %v2341_v14 = vadd.f32 %v2340_v61, %v2027_v34  ;;  %v4391_v48 = vadd.f32 1.0, %v7480_v33  ;;  %v9321_v12 = vadd.f32 %v3787_v62, %v2346_v52  ;;  %v11516_v33 = vld [vmem:[#allocation18_spill] sm:$0xff] }
 0x177   : > { %v2353_v37 = vpop.f32.mrf.mxu1  ;;  %7509 = vrcp.f32 %v4390_v39  ;;  %v3779_v4 = vrot.slane %v11509_v40, %v8587_v47  ;;  %v7486_v28 = vpop.eup %7485  ;;  %v4389_v30 = vadd.f32 1.0, %v7482_v49  ;;  %v3791_v42 = vrot.slane %v3431_v17, %v8587_v47 }
 0x178   : > { %v7125_v41 = vpop.f32.mrf.mxu0  ;;  %7511 = vrcp.f32 %v4388_v25  ;;  %v3783_v56 = vrot.slane %v8704_v5, %v8587_v47  ;;  %v9328_v60 = vpop.eup %7487  ;;  %v4394_v39 = vadd.f32 1.0, %v7484_v63  ;;  %v2362_v40 = vadd.f32 %v7196_v50, %v7124_v18 }
 0x179   : > { %v7197_v2 = vpop.f32.mrf.mxu1  ;;  %11515 = vst [vmem:[#allocation7_spill] sm:$0xff] %v9328_v60  ;;  %7513 = vpow2.f32 %v6771_v8  ;;  %v9332_v11 = vadd.f32 %v3779_v4, %v2338_v7  ;;  %v7490_v34 = vpop.eup %7489  ;;  %v9334_v52 = vadd.f32 %v3791_v42, %v2349_v0  ;;  %v3430_v25 = vcombine.high %v11516_v33, %v11516_v33 }
 0x17a   : > { %v9336_v61 = vadd.f32 %v3783_v56, %v2341_v14  ;;  %v2043_v17 = vpop.f32.mrf.mxu0  ;;  %v9340_v49 = vpop.eup %7491  ;;  %7515 = vrcp.f32 %v4391_v48  ;;  %v4392_v62 = vadd.f32 1.0, %v7486_v28  ;;  %v4546_v63 = vmin.f32 %v9321_v12, 20.0 }
 0x17b   : > { %v2356_v5 = vpop.f32.mrf.mxu1  ;;  %11517 = vst [vmem:[#allocation18_spill] sm:$0xff] %v9340_v49  ;;  %v2354_v8 = vadd.f32 %v2353_v37, %v2040_v51  ;;  %7517 = vrcp.f32 %v4389_v30  ;;  %v6769_v18 = vmul.f32 -1.442695, %v9129_v43  ;;  %v3803_v50 = vrot.slane %v3430_v25, %v8587_v47  ;;  %v11520_v43 = vld [vmem:[#allocation15_spill] sm:$0xff] }
 0x17c   : > { %v9343_v7 = vpop.eup %7493  ;;  %7519 = vrcp.f32 %v4394_v39  ;;  %v4395_v4 = vadd.f32 1.0, %v7490_v34  ;;  %v4544_v48 = vmin.f32 %v9332_v11, 20.0  ;;  %v3795_v28 = vrot.slane %v11516_v33, %v8587_v47  ;;  %v7128_v0 = vpop.f32.mrf.mxu0 }
 0x17d   : > { %11518 = vst [vmem:[#allocation49_spill] sm:$0xff] %v9343_v7  ;;  %v9349_v14 = vpop.eup %7495  ;;  %v4547_v37 = vmin.f32 %v9334_v52, 20.0  ;;  %v4545_v42 = vmin.f32 %v9336_v61, 20.0  ;;  %v9356_v56 = vadd.f32 %v3803_v50, %v2362_v40  ;;  %v11521_v30 = vcombine.high %v11520_v43, %v11520_v43  ;;  %v7200_v39 = vpop.f32.mrf.mxu1 }
 0x17e   : > { %11519 = vst [vmem:[#allocation50_spill] sm:$0xff] %v9349_v14  ;;  %v7498_v51 = vpop.eup %7497  ;;  %7521 = vrcp.f32 %v4392_v62  ;;  %v4676_v23 = vmul.f32 1.442695, %v4546_v63  ;;  %v9364_v14 = vadd.f32 %v3795_v28, %v2354_v8  ;;  %v2357_v33 = vadd.f32 %v2356_v5, %v2043_v17  ;;  %v2056_v49 = vpop.f32.mrf.mxu0 }
 0x17f   : > { %v3428_v25 = vrot.slane %v11521_v30, %v8522_v3  ;;  %v9362_v34 = vpop.eup %7499  ;;  %v9370_v40 = vrot.slane %v9301_v9, %v8522_v3  ;;  %v9374_v50 = vrot.slane %v9307_v58, %v8522_v3  ;;  %7523 = vpow2.f32 %v6769_v18  ;;  %v2369_v60 = vpop.f32.mrf.mxu1 }
 0x180   : > { %11522 = vst [vmem:[#allocation15_spill] sm:$0xff] %v9362_v34  ;;  %v9366_v7 = vpop.eup %7501  ;;  %v6774_v43 = vmul.f32 -1.442695, %v9143_v19  ;;  %v4672_v62 = vmul.f32 1.442695, %v4544_v48  ;;  %v2365_v63 = vadd.f32 %v7197_v2, %v7125_v41  ;;  %7525 = vrcp.f32 %v4395_v4 }
 0x181   : > { %11523 = vst [vmem:[#allocation51_spill] sm:$0xff] %v9366_v7  ;;  %11524 = vst [vmem:[#allocation52_spill] sm:$0xff] %v9370_v40  ;;  %v9377_v30 = vpop.eup %7503  ;;  %v3432_v8 = vcombine.high %v3428_v25, %v3428_v25  ;;  %v3799_v17 = vrot.slane %v3428_v25, %v8587_v47  ;;  %v4678_v28 = vmul.f32 1.442695, %v4547_v37  ;;  %v4674_v7 = vmul.f32 1.442695, %v4545_v42 }
 0x182   : > { %11525 = vst [vmem:[#allocation53_spill] sm:$0xff] %v9374_v50  ;;  %11526 = vst [vmem:[#allocation54_spill] sm:$0xff] %v9377_v30  ;;  %v7506_v5 = vpop.eup %7505  ;;  %v4550_v34 = vmin.f32 %v9356_v56, 20.0  ;;  %7527 = vpow2.f32 %v4676_v23  ;;  %v4548_v19 = vmin.f32 %v9364_v14, 20.0  ;;  %v4393_v41 = vadd.f32 1.0, %v7498_v51 }
 0x183   : > { %v9381_v58 = vpop.eup %7507  ;;  %v3807_v18 = vrot.slane %v3432_v8, %v8587_v47  ;;  %v9385_v48 = vadd.f32 %v3799_v17, %v2357_v33  ;;  %7529 = vpow2.f32 %v6774_v43  ;;  %v2378_v4 = vadd.f32 %v7200_v39, %v7128_v0  ;;  %v7129_v43 = vpop.f32.mrf.mxu0 }
 0x184   : > { %v9387_v2 = vpop.eup %7509  ;;  %v3478_v37 = vcombine.high %v8843_v59, %v8843_v59  ;;  %v11529_v23 = vcombine.high %v11514_v26, %v11514_v26  ;;  %v6772_v8 = vmul.f32 -1.442695, %v9137_v57  ;;  %7531 = vpow2.f32 %v4672_v62 }
 0x185   : > { %11527 = vst [vmem:[#allocation55_spill] sm:$0xff] %v9387_v2  ;;  %v9391_v42 = vpop.eup %7511  ;;  %v9400_v33 = vadd.f32 %v3807_v18, %v2365_v63  ;;  %7533 = vpow2.f32 %v4678_v28  ;;  %v4684_v0 = vmul.f32 1.442695, %v4550_v34  ;;  %v4549_v51 = vmin.f32 %v9385_v48, 20.0 }
 0x186   : > { %11528 = vst [vmem:[#allocation56_spill] sm:$0xff] %v9391_v42  ;;  %v9397_v25 = vrot.slane %v11529_v23, %v8522_v3  ;;  %v9402_v17 = vpop.eup %7513  ;;  %v3819_v39 = vrot.slane %v3478_v37, %v8587_v47  ;;  %v7201_v42 = vpop.f32.mrf.mxu1  ;;  %7535 = vpow2.f32 %v4674_v7  ;;  %v4680_v2 = vmul.f32 1.442695, %v4548_v19  ;;  %v11536_v37 = vld [vmem:[#allocation17_spill] sm:$0xff] }
 0x187   : > { %v4551_v26 = vmin.f32 %v9400_v33, 20.0  ;;  %v2370_v23 = vadd.f32 %v2369_v60, %v2056_v49  ;;  %v9407_v30 = vpop.eup %7515  ;;  %v11532_v57 = vcombine.high %v9301_v9, %v9301_v9  ;;  %7537 = vrcp.f32 %v4393_v41  ;;  %v2059_v41 = vpop.f32.mrf.mxu0 }
 0x188   : > { %11530 = vst [vmem:[#allocation57_spill] sm:$0xff] %v9397_v25  ;;  %11531 = vst [vmem:[#allocation58_spill] sm:$0xff] %v9407_v30  ;;  %v6775_v34 = vmul.f32 -1.442695, %v9161_v13  ;;  %v9416_v63 = vadd.f32 %v3819_v39, %v2378_v4  ;;  %v9418_v28 = vpop.eup %7517  ;;  %7539 = vpow2.f32 %v6772_v8  ;;  %v3811_v60 = vrot.slane %v8843_v59, %v8587_v47  ;;  %v2372_v4 = vpop.f32.mrf.mxu1 }
 0x189   : > { %v9413_v62 = vrot.slane %v11532_v57, %v8522_v3  ;;  %11534 = vst [vmem:[#allocation60_spill] sm:$0xff] %v9418_v28  ;;  %v4686_v7 = vmul.f32 1.442695, %v4551_v26  ;;  %v3480_v49 = vcombine.high %v9271_v35, %v9271_v35  ;;  %v9424_v19 = vpop.eup %7519  ;;  %v3742_v9 = vcombine.high %v9319_v1, %v9319_v1 }
 0x18a   : > { %11535 = vst [vmem:[#allocation61_spill] sm:$0xff] %v9424_v19  ;;  %7541 = vpow2.f32 %v4684_v0  ;;  %v4682_v18 = vmul.f32 1.442695, %v4549_v51  ;;  %v4554_v13 = vmin.f32 %v9416_v63, 20.0  ;;  %v3629_v8 = vcombine.high %v11536_v37, %v11536_v37 }
 0x18b   : > { %11533 = vst [vmem:[#allocation59_spill] sm:$0xff] %v9413_v62  ;;  %7543 = vpow2.f32 %v4680_v2  ;;  %v9431_v39 = vadd.f32 %v3811_v60, %v2370_v23  ;;  %v2381_v59 = vadd.f32 %v7201_v42, %v7129_v43  ;;  %v9433_v26 = vpop.eup %7521  ;;  %v4398_v57 = vadd.f32 1.0, %v7506_v5 }
 0x18c   : > { %11537 = vst [vmem:[#allocation17_spill] sm:$0xff] %v9433_v26  ;;  %7545 = vpow2.f32 %v6775_v34  ;;  %v6773_v19 = vmul.f32 -1.442695, %v9166_v20  ;;  %v4692_v28 = vmul.f32 1.442695, %v4554_v13  ;;  %v9436_v0 = vpop.eup %7523  ;;  %v3823_v30 = vrot.slane %v3480_v49, %v8587_v47 }
 0x18d   : > { %11538 = vst [vmem:[#allocation62_spill] sm:$0xff] %v9436_v0  ;;  %7547 = vpow2.f32 %v4686_v7  ;;  %v4552_v51 = vmin.f32 %v9431_v39, 20.0  ;;  %v2373_v50 = vadd.f32 %v2372_v4, %v2059_v41  ;;  %v9444_v42 = vrot.slane %v9319_v1, %v8522_v3  ;;  %v9450_v20 = vpop.eup %7525 }
 0x18e   : > { %v9448_v5 = vrot.slane %v9397_v25, %v8522_v3  ;;  %7549 = vpow2.f32 %v4682_v18  ;;  %11541 = vst [vmem:[#allocation65_spill] sm:$0xff] %v9450_v20  ;;  %v9452_v23 = vadd.f32 %v3823_v30, %v2381_v59  ;;  %v3815_v34 = vrot.slane %v9271_v35, %v8587_v47 }
 0x18f   : > { %11539 = vst [vmem:[#allocation63_spill] sm:$0xff] %v9444_v42  ;;  %7551 = vpow2.f32 %v4692_v28  ;;  %v4688_v43 = vmul.f32 1.442695, %v4552_v51  ;;  %v7528_v7 = vpop.eup %7527  ;;  %v9457_v60 = vrot.slane %v3742_v9, %v8522_v3  ;;  %v9461_v1 = vrot.slane %v11536_v37, %v8522_v3 }
 0x190   : > { %11540 = vst [vmem:[#allocation64_spill] sm:$0xff] %v9448_v5  ;;  %v4396_v49 = vadd.f32 1.0, %v9381_v58  ;;  %7553 = vpow2.f32 %v6773_v19  ;;  %v9464_v18 = vpop.eup %7529  ;;  %v9467_v28 = vrot.slane %v3629_v8, %v8522_v3  ;;  %v4818_v30 = vadd.f32 1.0, %v7528_v7  ;;  %v7132_v58 = vpop.f32.mrf.mxu0 }
 0x191   : > { %11542 = vst [vmem:[#allocation66_spill] sm:$0xff] %v9457_v60  ;;  %11543 = vst [vmem:[#allocation67_spill] sm:$0xff] %v9464_v18  ;;  %7555 = vrcp.f32 %v4398_v57  ;;  %v9469_v13 = vadd.f32 %v3815_v34, %v2373_v50  ;;  %v9471_v35 = vpop.eup %7531  ;;  %v9474_v9 = vmul.f32 -1.442695, %v9181_v45  ;;  %v9477_v41 = vmul.f32 -1.442695, %v9176_v53  ;;  %v7204_v19 = vpop.f32.mrf.mxu1 }
 0x192   : > { %11544 = vst [vmem:[#allocation68_spill] sm:$0xff] %v9467_v28  ;;  %v4821_v4 = vmul.f32 -0.5, %v7528_v7  ;;  %7557 = vpow2.f32 %v4688_v43  ;;  %v9479_v37 = vpop.eup %7533  ;;  %v4800_v8 = vadd.f32 1.0, %v9471_v35  ;;  %v4555_v50 = vmin.f32 %v9452_v23, 20.0 }
 0x193   : > { %7559 = vlog2.f32 %v4818_v30  ;;  %v3479_v59 = vcombine.high %v9255_v44, %v9255_v44  ;;  %v9485_v57 = vpop.eup %7535  ;;  %v9488_v45 = vmul.f32 -1.442695, %v9204_v36  ;;  %v9491_v53 = vmul.f32 -1.442695, %v9199_v15 }
 0x194   : > { %7561 = vrcp.f32 %v4396_v49  ;;  %v4827_v51 = vadd.f32 1.0, %v9479_v37  ;;  %v9494_v43 = vpop.eup %7537  ;;  %v4809_v34 = vadd.f32 1.0, %v9485_v57  ;;  %v4553_v30 = vmin.f32 %v9469_v13, 20.0 }
 0x195   : > { %11545 = vst [vmem:[#allocation69_spill] sm:$0xff] %v9488_v45  ;;  %11546 = vst [vmem:[#allocation70_spill] sm:$0xff] %v9491_v53  ;;  %7563 = vlog2.f32 %v4800_v8  ;;  %v2394_v2 = vadd.f32 %v7204_v19, %v7132_v58  ;;  %v9498_v25 = vpop.eup %7539  ;;  %v4822_v5 = vadd.f32 1.0, %v4821_v4  ;;  %v4824_v49 = vand.u32 2147483647, %v7528_v7 }
 0x196   : > { %11547 = vst [vmem:[#allocation71_spill] sm:$0xff] %v9494_v43  ;;  %11548 = vst [vmem:[#allocation72_spill] sm:$0xff] %v9498_v25  ;;  %v4803_v36 = vmul.f32 -0.5, %v9471_v35  ;;  %7565 = vlog2.f32 %v4827_v51  ;;  %v4830_v15 = vmul.f32 -0.5, %v9479_v37  ;;  %v9502_v42 = vmul.f32 1.442695, %v4555_v50 }
 0x197   : > { %v7542_v60 = vpop.eup %7541  ;;  %7567 = vlog2.f32 %v4809_v34  ;;  %v3835_v8 = vrot.slane %v3479_v59, %v8587_v47  ;;  %v4806_v20 = vand.u32 2147483647, %v9471_v35  ;;  %v4812_v58 = vmul.f32 -0.5, %v9485_v57 }
 0x198   : > { %v7544_v43 = vpop.eup %7543  ;;  %v4854_v19 = vadd.f32 1.0, %v7542_v60  ;;  %v4857_v26 = vmul.f32 -0.5, %v7542_v60  ;;  %v4833_v62 = vand.u32 2147483647, %v9479_v37  ;;  %v9510_v40 = vmul.f32 1.442695, %v4553_v30 }
 0x199   : > { %v9507_v4 = vpop.eup %7545  ;;  %v4836_v51 = vadd.f32 1.0, %v7544_v43  ;;  %v9512_v25 = vadd.f32 %v3835_v8, %v2394_v2  ;;  %v4823_v34 = vmul.f32 %v7528_v7, %v4822_v5  ;;  %vm9516_vm3 = vcmp.lt.f32.partialorder %v4824_v49, 0.0004427343 }
 0x19a   : > { %11549 = vst [vmem:[#allocation73_spill] sm:$0xff] %v9507_v4  ;;  %v9514_v50 = vpop.eup %7547  ;;  %v4804_v38 = vadd.f32 1.0, %v4803_v36  ;;  %7569 = vlog2.f32 %v4854_v19  ;;  %v4839_v28 = vmul.f32 -0.5, %v7544_v43  ;;  %vm4610_vm4 = vcmp.gt.f32.partialorder %v9321_v12, 20.0 }
 0x19b   : > { %v9520_v18 = vpop.eup %7549  ;;  %v4831_v4 = vadd.f32 1.0, %v4830_v15  ;;  %v4815_v30 = vand.u32 2147483647, %v9485_v57  ;;  %7571 = vlog2.f32 %v4836_v51  ;;  %v4863_v2 = vadd.f32 1.0, %v9514_v50 }
 0x19c   : > { %v9525_v8 = vpop.eup %7551  ;;  %vm9527_vm5 = vcmp.lt.f32.partialorder %v4806_v20, 0.0004427343  ;;  %v4813_v7 = vadd.f32 1.0, %v4812_v58  ;;  %v4858_v49 = vadd.f32 1.0, %v4857_v26  ;;  %v4860_v36 = vand.u32 2147483647, %v7542_v60 }
 0x19d   : > { %v4866_v19 = vmul.f32 -0.5, %v9514_v50  ;;  %v9532_v27 = vpop.eup %7553  ;;  %vm4608_vm6 = vcmp.gt.f32.partialorder %v9332_v11, 20.0  ;;  %vm9535_vm7 = vcmp.lt.f32.partialorder %v4833_v62, 0.0004427343  ;;  %v4840_v51 = vadd.f32 1.0, %v4839_v28 }
 0x19e   : > { %11554 = vst [vmem:[#allocation74_spill] sm:$0xff] %v9532_v27  ;;  %7573 = vlog2.f32 %v4863_v2  ;;  %v4845_v20 = vadd.f32 1.0, %v9520_v18  ;;  %v4848_v0 = vmul.f32 -0.5, %v9520_v18  ;;  %v9541_v10 = vpop.eup %7555  ;;  %v4805_v26 = vmul.f32 %v9471_v35, %v4804_v38 }
 0x19f   : > { %11557 = vst [vmem:[#allocation75_spill] sm:$0xff] %v9541_v10  ;;  %vm4611_vm8 = vcmp.gt.f32.partialorder %v9334_v52, 20.0  ;;  %v4842_v58 = vand.u32 2147483647, %v7544_v43  ;;  %v4867_v27 = vadd.f32 1.0, %v4866_v19  ;;  %v4890_v21 = vadd.f32 1.0, %v9525_v8  ;;  %v9546_v62 = vpop.eup %7557 }
 0x1a0   : > { %v4832_v29 = vmul.f32 %v9479_v37, %v4831_v4  ;;  %vm4609_vm9 = vcmp.gt.f32.partialorder %v9336_v61, 20.0  ;;  %7575 = vlog2.f32 %v4845_v20  ;;  %v4849_v28 = vadd.f32 1.0, %v4848_v0  ;;  %v7560_v55 = vpop.eup %7559 }
 0x1a1   : > { %v4893_v2 = vmul.f32 -0.5, %v9525_v8  ;;  %v4814_v10 = vmul.f32 %v9485_v57, %v4813_v7  ;;  %vm9552_vm10 = vcmp.lt.f32.partialorder %v4815_v30, 0.0004427343  ;;  %v4859_v35 = vmul.f32 %v7542_v60, %v4858_v49  ;;  %v9557_v53 = vpop.eup %7561 }
 0x1a2   : > { %v4869_v19 = vand.u32 2147483647, %v9514_v50  ;;  %v4820_v45 = vmul.f32 0.6931472, %v7560_v55  ;;  %vm9559_vm11 = vcmp.lt.f32.partialorder %v4860_v36, 0.0004427343  ;;  %v9563_v0 = vmul.f32 %v7544_v43, %v4840_v51  ;;  %v7564_v57 = vpop.eup %7563 }
 0x1a3   : > { %v4851_v4 = vand.u32 2147483647, %v9520_v18  ;;  %v4894_v20 = vadd.f32 1.0, %v4893_v2  ;;  %vm4614_vm12 = vcmp.gt.f32.partialorder %v9356_v56, 20.0  ;;  %vm9567_vm13 = vcmp.lt.f32.partialorder %v4842_v58, 0.0004427343  ;;  %v7566_v43 = vpop.eup %7565 }
 0x1a4   : > { %v9572_v60 = vmul.f32 %v9514_v50, %v4867_v27  ;;  %7577 = vlog2.f32 %v4890_v21  ;;  %v4872_v55 = vadd.f32 1.0, %v9546_v62  ;;  %v4875_v7 = vmul.f32 -0.5, %v9546_v62  ;;  %v7568_v2 = vpop.eup %7567 }
 0x1a5   : > { %v4826_v49 = vsel %vm9516_vm3, %v4823_v34, %v4820_v45  ;;  %v4802_v36 = vmul.f32 0.6931472, %v7564_v57  ;;  %v9579_v51 = vmul.f32 %v9520_v18, %v4849_v28  ;;  %v4896_v58 = vand.u32 2147483647, %v9525_v8  ;;  %v11569_v57 = vld [vmem:[#allocation3_spill] sm:$0xff] }
 0x1a6   : > { %v5378_v27 = vsel %vm4610_vm4, %v9321_v12, %v4826_v49  ;;  %v4829_v21 = vmul.f32 0.6931472, %v7566_v43  ;;  %vm4612_vm14 = vcmp.gt.f32.partialorder %v9364_v14, 20.0  ;;  %v4878_v50 = vand.u32 2147483647, %v9546_v62 }
 0x1a7   : > { %7579 = vpow2.f32 %v9502_v42  ;;  %v5442_v45 = vmul.f32 %v9023_v54, %v5378_v27  ;;  %v4808_v18 = vsel %vm9527_vm5, %v4805_v26, %v4802_v36  ;;  %v4811_v34 = vmul.f32 0.6931472, %v7568_v2  ;;  %v7570_v42 = vpop.eup %7569 }
 0x1a8   : > { %v9592_v59 = vmul.f32 %v9525_v8, %v4894_v20  ;;  %v5376_v12 = vsel %vm4608_vm6, %v9332_v11, %v4808_v18  ;;  %v4835_v28 = vsel %vm9535_vm7, %v4832_v29, %v4829_v21  ;;  %vm9599_vm15 = vcmp.lt.f32.partialorder %v4869_v19, 0.0004427343  ;;  %v7572_v29 = vpop.eup %7571 }
 0x1a9   : > { %7581 = vlog2.f32 %v4872_v55  ;;  %v9603_v54 = vadd.f32 1.0, %v4875_v7  ;;  %v5518_v5 = vsel %vm668_vm0, %v5442_v45, 0.0  ;;  %v5440_v26 = vmul.f32 %v9007_v46, %v5376_v12 }
 0x1aa   : > { %v5379_v20 = vsel %vm4611_vm8, %v9334_v52, %v4835_v28  ;;  %v4817_v11 = vsel %vm9552_vm10, %v4814_v10, %v4811_v34  ;;  %vm4615_vm1 = vcmp.gt.f32.partialorder %v9400_v33, 20.0  ;;  %v5519_v15 = vrot.slane %v5518_v5, 4 }
 0x1ab   : > { %v5443_v19 = vmul.f32 %v9033_v31, %v5379_v20  ;;  %v5377_v55 = vsel %vm4609_vm9, %v9336_v61, %v4817_v11  ;;  %v4856_v7 = vmul.f32 0.6931472, %v7570_v42  ;;  %v5504_v46 = vsel %vm668_vm0, %v5440_v26, 0.0  ;;  %v7574_v52 = vpop.eup %7573  ;;  %v11568_v11 = vld [vmem:[#allocation11_spill] sm:$0xff] }
 0x1ac   : > { %v5441_v43 = vmul.f32 %v9041_v16, %v5377_v55  ;;  %v4838_v49 = vmul.f32 0.6931472, %v7572_v29  ;;  %7583 = vpow2.f32 %v9510_v40  ;;  %v5520_v10 = vadd.f32 %v5519_v15, %v5518_v5 }
 0x1ad   : > { %v5505_v38 = vrot.slane %v5504_v46, 4  ;;  %v5525_v36 = vsel %vm668_vm0, %v5443_v19, 0.0  ;;  %v4862_v31 = vsel %vm9559_vm11, %v4859_v35, %v4856_v7  ;;  %vm9623_vm2 = vcmp.lt.f32.partialorder %v4851_v4, 0.0004427343  ;;  %v7576_v21 = vpop.eup %7575 }
 0x1ae   : > { %v5526_v61 = vrot.slane %v5525_v36, 4  ;;  %v5511_v27 = vsel %vm668_vm0, %v5441_v43, 0.0  ;;  %v5382_v16 = vsel %vm4614_vm12, %v9356_v56, %v4862_v31  ;;  %v4844_v40 = vsel %vm9567_vm13, %v9563_v0, %v4838_v49 }
 0x1af   : > { %v5521_v45 = vrot.slane %v5520_v10, 2  ;;  %v5506_v18 = vadd.f32 %v5505_v38, %v5504_v46  ;;  %v5512_v37 = vrot.slane %v5511_v27, 4  ;;  %v5446_v35 = vmul.f32 %v9060_v6, %v5382_v16  ;;  %v9652_v46 = vld [vmem:[%s11397_s11] ss:$0 sm:$0xff] }
 0x1b0   : > { %vm4613_vm3 = vcmp.gt.f32.partialorder %v9385_v48, 20.0  ;;  %v5527_v4 = vadd.f32 %v5526_v61, %v5525_v36  ;;  %v5380_v34 = vsel %vm4612_vm14, %v9364_v14, %v4844_v40  ;;  %v4865_v12 = vmul.f32 0.6931472, %v7574_v52 }
 0x1b1   : > { %v4847_v28 = vmul.f32 0.6931472, %v7576_v21  ;;  %v5522_v56 = vadd.f32 %v5521_v45, %v5520_v10  ;;  %v5507_v42 = vrot.slane %v5506_v18, 2  ;;  %v5513_v5 = vadd.f32 %v5512_v37, %v5511_v27  ;;  %v7578_v30 = vpop.eup %7577 }
 0x1b2   : > { %v5546_v0 = vsel %vm668_vm0, %v5446_v35, 0.0  ;;  %v5528_v26 = vrot.slane %v5527_v4, 2  ;;  %v5444_v29 = vmul.f32 %v11568_v11, %v5380_v34  ;;  %v4871_v6 = vsel %vm9599_vm15, %v9572_v60, %v4865_v12 }
 0x1b3   : > { %v5547_v20 = vrot.slane %v5546_v0, 4  ;;  %v5523_v15 = vrot.slane %v5522_v56, 1  ;;  %v5508_v19 = vadd.f32 %v5507_v42, %v5506_v18  ;;  %v5514_v55 = vrot.slane %v5513_v5, 2 }
 0x1b4   : > { %v5383_v14 = vsel %vm4615_vm1, %v9400_v33, %v4871_v6  ;;  %v9647_v7 = vpop.eup %7579  ;;  %v5529_v43 = vadd.f32 %v5528_v26, %v5527_v4  ;;  %v5532_v52 = vsel %vm668_vm0, %v5444_v29, 0.0  ;;  %v9659_v33 = vld [vmem:[%s11398_s12] ss:$0 sm:$0xff]  ;;  %vm6159_vm4 = vcmask 1041409  }
 0x1b5   : > { %v5548_v49 = vadd.f32 %v5547_v20, %v5546_v0  ;;  %v5447_v60 = vmul.f32 %v11569_v57, %v5383_v14  ;;  %v5524_v10 = vadd.f32 %v5523_v15, %v5522_v56  ;;  %v5509_v38 = vrot.slane %v5508_v19, 1  ;;  %v11572_v20 = vld [vmem:[#allocation9_spill] sm:$0xff] }
 0x1b6   : > { %v5515_v36 = vadd.f32 %v5514_v55, %v5513_v5  ;;  %v5533_v31 = vrot.slane %v5532_v52, 4  ;;  %v7582_v61 = vpop.eup %7581  ;;  %v5530_v27 = vrot.slane %v5529_v43, 1  ;;  %v4853_v21 = vsel %vm9623_vm2, %v9579_v51, %v4847_v28 }
 0x1b7   : > { %v5549_v16 = vrot.slane %v5548_v49, 2  ;;  %v5553_v40 = vsel %vm668_vm0, %v5447_v60, 0.0  ;;  %vm9667_vm5 = vcmp.lt.f32.partialorder %v4896_v58, 0.0004427343  ;;  %v5961_v18 = vmul.f32 %v9652_v46, %v5524_v10 }
 0x1b8   : > { %v5510_v37 = vadd.f32 %v5509_v38, %v5508_v19  ;;  %v5516_v35 = vrot.slane %v5515_v36, 1  ;;  %vm6162_vm6 = vcmask 1042434   ;;  %v5534_v4 = vadd.f32 %v5533_v31, %v5532_v52 }
 0x1b9   : > { %vm4618_vm7 = vcmp.gt.f32.partialorder %v9416_v63, 20.0  ;;  %v5531_v34 = vadd.f32 %v5530_v27, %v5529_v43  ;;  %v5550_v12 = vadd.f32 %v5549_v16, %v5548_v49  ;;  %vm6165_vm8 = vcmask 1043459   ;;  %v9676_v51 = vpop.eup %7583 }
 0x1ba   : > { %v5554_v56 = vrot.slane %v5553_v40, 4  ;;  %v5381_v8 = vsel %vm4613_vm3, %v9385_v48, %v4853_v21  ;;  %v6032_v58 = vadd.f32 %v9659_v33, %v5961_v18  ;;  %v5959_v2 = vmul.f32 %v9652_v46, %v5510_v37 }
 0x1bb   : > { %v5517_v28 = vadd.f32 %v5516_v35, %v5515_v36  ;;  %v5535_v42 = vrot.slane %v5534_v4, 2  ;;  %vm4616_vm9 = vcmp.gt.f32.partialorder %v9431_v39, 20.0  ;;  %v5962_v5 = vmul.f32 %v9652_v46, %v5531_v34  ;;  %v11575_v35 = vld [vmem:[#allocation2_spill] sm:$0xff] }
 0x1bc   : > { %v5551_v0 = vrot.slane %v5550_v12, 1  ;;  %v5555_v26 = vadd.f32 %v5554_v56, %v5553_v40  ;;  %v5445_v11 = vmul.f32 %v11572_v20, %v5381_v8  ;;  %v4877_v48 = vmul.f32 %v9546_v62, %v9603_v54  ;;  %v2385_v56 = vpop.f32.mrf.mxu1 }
 0x1bd   : > { %v5960_v29 = vmul.f32 %v9652_v46, %v5517_v28  ;;  %v5536_v6 = vadd.f32 %v5535_v42, %v5534_v4  ;;  %vm9688_vm10 = vcmp.lt.f32.partialorder %v4878_v50, 0.0004427343  ;;  %v6161_v19 = vrot.slane %v6032_v58, 6 }
 0x1be   : > { %v6033_v55 = vadd.f32 %v9659_v33, %v5962_v5  ;;  %v5556_v14 = vrot.slane %v5555_v26, 2  ;;  %v5539_v43 = vsel %vm668_vm0, %v5445_v11, 0.0  ;;  %v4892_v60 = vmul.f32 0.6931472, %v7578_v30 }
 0x1bf   : > { %v6031_v49 = vadd.f32 %v9659_v33, %v5960_v29  ;;  %v5537_v52 = vrot.slane %v5536_v6, 1  ;;  %v5540_v57 = vrot.slane %v5539_v43, 4  ;;  %v6030_v10 = vadd.f32 %v9659_v33, %v5959_v2 }
 0x1c0   : > { %v5552_v54 = vadd.f32 %v5551_v0, %v5550_v12  ;;  %v5557_v38 = vadd.f32 %v5556_v14, %v5555_v26  ;;  %v4874_v62 = vmul.f32 0.6931472, %v7582_v61  ;;  %v4898_v27 = vsel %vm9667_vm5, %v9592_v59, %v4892_v60  ;;  %v2072_v12 = vpop.f32.mrf.mxu0 }
 0x1c1   : > { %v6158_v50 = vrot.slane %v6031_v49, 7  ;;  %v5538_v36 = vadd.f32 %v5537_v52, %v5536_v6  ;;  %v5541_v31 = vadd.f32 %v5540_v57, %v5539_v43  ;;  %v6164_v16 = vrot.slane %v6033_v55, 5 }
 0x1c2   : > { %v5558_v40 = vrot.slane %v5557_v38, 1  ;;  %v5386_v21 = vsel %vm4618_vm7, %v9416_v63, %v4898_v27  ;;  %v4880_v30 = vsel %vm9688_vm10, %v4877_v48, %v4874_v62  ;;  %v9708_v34 = vadd.f32 1.0, %v9402_v17  ;;  %v11576_v17 = vld [vmem:[#allocation8_spill] sm:$0xff]  ;;  %v7133_v15 = vpop.f32.mrf.mxu0 }
 0x1c3   : > { %v6160_v18 = vsel %vm6159_vm4, %v6158_v50, %v6030_v10  ;;  %v5963_v61 = vmul.f32 %v9652_v46, %v5538_v36  ;;  %v5542_v37 = vrot.slane %v5541_v31, 2  ;;  %v5450_v4 = vmul.f32 %v11575_v35, %v5386_v21 }
 0x1c4   : > { %v6163_v59 = vsel %vm6162_vm6, %v6161_v19, %v6160_v18  ;;  %v5559_v45 = vadd.f32 %v5558_v40, %v5557_v38  ;;  %v5384_v63 = vsel %vm4616_vm9, %v9431_v39, %v4880_v30  ;;  %vm6168_vm11 = vcmask 1044484   ;;  %v7205_v19 = vpop.f32.mrf.mxu1  ;;  %v2075_v50 = vpop.f32.mrf.mxu0 }
 0x1c5   : > { %v6034_v8 = vadd.f32 %v9659_v33, %v5963_v61  ;;  %v6166_v58 = vsel %vm6165_vm8, %v6164_v16, %v6163_v59  ;;  %v5543_v2 = vadd.f32 %v5542_v37, %v5541_v31  ;;  %v5574_v28 = vsel %vm668_vm0, %v5450_v4, 0.0 }
 0x1c6   : > { %v5575_v42 = vrot.slane %v5574_v28, 4  ;;  %v5448_v5 = vmul.f32 %v11576_v17, %v5384_v63  ;;  %v4899_v0 = vadd.f32 1.0, %v9647_v7  ;;  %v5965_v26 = vmul.f32 %v9652_v46, %v5552_v54  ;;  %v2388_v36 = vpop.f32.mrf.mxu1 }
 0x1c7   : > { %v6167_v20 = vrot.slane %v6034_v8, 4  ;;  %v5544_v11 = vrot.slane %v5543_v2, 1  ;;  %v4558_v39 = vmin.f32 %v9512_v25, 20.0  ;;  %v5966_v29 = vmul.f32 %v9652_v46, %v5559_v45  ;;  %v7136_v45 = vpop.f32.mrf.mxu0 }
 0x1c8   : > { %v5576_v6 = vadd.f32 %v5575_v42, %v5574_v28  ;;  %v5560_v48 = vsel %vm668_vm0, %v5448_v5, 0.0  ;;  %7585 = vlog2.f32 %v4899_v0  ;;  %vm6171_vm12 = vcmask 1045509   ;;  %v7208_v63 = vpop.f32.mrf.mxu1 }
 0x1c9   : > { %7587 = vpow2.f32 %v9474_v9  ;;  %v6169_v55 = vsel %vm6168_vm11, %v6167_v20, %v6166_v58  ;;  %v5545_v14 = vadd.f32 %v5544_v11, %v5543_v2  ;;  %v5561_v43 = vrot.slane %v5560_v48, 4  ;;  %v7889_v11 = vld [vmem:[%s8016_s28] sm:$0xff] }
 0x1ca   : > { %7589 = vpow2.f32 %v9477_v41  ;;  %v5577_v49 = vrot.slane %v5576_v6, 2  ;;  %v4881_v52 = vadd.f32 1.0, %v9676_v51  ;;  %v6036_v57 = vadd.f32 %v9659_v33, %v5965_v26  ;;  %v11580_v26 = vld [vmem:[#allocation12_spill] sm:$0xff] }
 0x1cb   : > { %v5964_v60 = vmul.f32 %v9652_v46, %v5545_v14  ;;  %v4902_v10 = vmul.f32 -0.5, %v9647_v7  ;;  %v2386_v54 = vadd.f32 %v2385_v56, %v2072_v12  ;;  %v6037_v38 = vadd.f32 %v9659_v33, %v5966_v29  ;;  %v2401_v14 = vpop.f32.mrf.mxu1 }
 0x1cc   : > { %v5562_v9 = vadd.f32 %v5561_v43, %v5560_v48  ;;  %7591 = vlog2.f32 %v4881_v52  ;;  %v4700_v62 = vmul.f32 1.442695, %v4558_v39  ;;  %v4905_v31 = vand.u32 2147483647, %v9647_v7 }
 0x1cd   : > { %v6035_v41 = vadd.f32 %v9659_v33, %v5964_v60  ;;  %v4884_v27 = vmul.f32 -0.5, %v9676_v51  ;;  %v3827_v16 = vrot.slane %v9255_v44, %v8587_v47  ;;  %vm6174_vm13 = vcmask 1046534   ;;  %v7209_v56 = vpop.f32.mrf.mxu1 }
 0x1ce   : > { %vm6177_vm14 = vcmask 1047559   ;;  %v5578_v40 = vadd.f32 %v5577_v49, %v5576_v6  ;;  %7593 = vpow2.f32 %v4700_v62  ;;  %v6173_v21 = vrot.slane %v6036_v57, 2 }
 0x1cf   : > { %v6170_v30 = vrot.slane %v6035_v41, 3  ;;  %v4903_v18 = vadd.f32 1.0, %v4902_v10  ;;  %v9736_v61 = vadd.f32 %v3827_v16, %v2386_v54  ;;  %v6176_v37 = vrot.slane %v6037_v38, 1 }
 0x1d0   : > { %v5563_v35 = vrot.slane %v5562_v9, 2  ;;  %vm4619_vm15 = vcmp.gt.f32.partialorder %v9452_v23, 20.0  ;;  %v11577_v4 = vcombine.high %v8837_v24, %v8837_v24  ;;  %v2389_v44 = vadd.f32 %v2388_v36, %v2075_v50 }
 0x1d1   : > { %v6172_v12 = vsel %vm6171_vm12, %v6170_v30, %v6169_v55  ;;  %vm9744_vm1 = vcmp.lt.f32.partialorder %v4905_v31, 0.0004427343  ;;  %v4885_v8 = vadd.f32 1.0, %v4884_v27  ;;  %v4556_v58 = vmin.f32 %v9736_v61, 20.0  ;;  %v2088_v55 = vpop.f32.mrf.mxu0 }
 0x1d2   : > { %v3477_v59 = vrot.slane %v11577_v4, %v8522_v3  ;;  %v6175_v2 = vsel %vm6174_vm13, %v6173_v21, %v6172_v12  ;;  %v5579_v28 = vrot.slane %v5578_v40, 1  ;;  %v2397_v0 = vadd.f32 %v7205_v19, %v7133_v15 }
 0x1d3   : > { %v6178_v17 = vsel %vm6177_vm14, %v6176_v37, %v6175_v2  ;;  %v4696_v5 = vmul.f32 1.442695, %v4556_v58  ;;  %v3527_v20 = vcombine.high %v11580_v26, %v11580_v26  ;;  %v5564_v29 = vadd.f32 %v5563_v35, %v5562_v9  ;;  %v7137_v12 = vpop.f32.mrf.mxu0 }
 0x1d4   : > { %v3481_v42 = vcombine.high %v3477_v59, %v3477_v59  ;;  %v3831_v24 = vrot.slane %v3477_v59, %v8587_v47  ;;  %v9755_v39 = vadd.f32 %v7889_v11, %v6178_v17  ;;  %v2410_v48 = vadd.f32 %v7208_v63, %v7136_v45 }
 0x1d5   : > { %v7586_v43 = vpop.eup %7585  ;;  %v4904_v49 = vmul.f32 %v9647_v7, %v4903_v18  ;;  %v4887_v52 = vand.u32 2147483647, %v9676_v51  ;;  %7595 = vpow2.f32 %v4696_v5  ;;  %v4886_v10 = vmul.f32 %v9676_v51, %v4885_v8  ;;  %v2091_v11 = vpop.f32.mrf.mxu0 }
 0x1d6   : > { %v9757_v6 = vadd.f32 %v3831_v24, %v2389_v44  ;;  %v3839_v15 = vrot.slane %v3481_v42, %v8587_v47  ;;  %v9762_v19 = vpop.eup %7587  ;;  %v6293_v57 = vmin.f32 %v9755_v39, 20.0  ;;  %v4901_v60 = vmul.f32 0.6931472, %v7586_v43 }
 0x1d7   : > { %v3851_v54 = vrot.slane %v3527_v20, %v8587_v47  ;;  %v9767_v38 = vpop.eup %7589  ;;  %v5580_v9 = vadd.f32 %v5579_v28, %v5578_v40  ;;  %v2402_v50 = vadd.f32 %v2401_v14, %v2088_v55  ;;  %v5565_v41 = vrot.slane %v5564_v29, 1  ;;  %v11581_v28 = vld [vmem:[#allocation6_spill] sm:$0xff] }
 0x1d8   : > { %v9769_v62 = vadd.f32 %v3839_v15, %v2397_v0  ;;  %v4557_v7 = vmin.f32 %v9757_v6, 20.0  ;;  %v6309_v36 = vmul.f32 1.442695, %v6293_v57  ;;  %v4907_v31 = vsel %vm9744_vm1, %v4904_v49, %v4901_v60 }
 0x1d9   : > { %v9774_v27 = vadd.f32 %v3851_v54, %v2410_v48  ;;  %v7592_v16 = vpop.eup %7591  ;;  %v5387_v51 = vsel %vm4619_vm15, %v9452_v23, %v4907_v31  ;;  %v3843_v30 = vrot.slane %v11580_v26, %v8587_v47  ;;  %vm4888_vm2 = vcmp.lt.f32.partialorder %v4887_v52, 0.0004427343  ;;  %v11582_v48 = vld [vmem:[#allocation69_spill] sm:$0xff] }
 0x1da   : > { %v4559_v21 = vmin.f32 %v9769_v62, 20.0  ;;  %v4698_v40 = vmul.f32 1.442695, %v4557_v7  ;;  %7597 = vpow2.f32 %v6309_v36  ;;  %v5451_v18 = vmul.f32 %v9099_v32, %v5387_v51 }
 0x1db   : > { %v4883_v37 = vmul.f32 0.6931472, %v7592_v16  ;;  %v4562_v35 = vmin.f32 %v9774_v27, 20.0  ;;  %v9784_v4 = vpop.eup %7593  ;;  %v9786_v44 = vadd.f32 %v3843_v30, %v2402_v50  ;;  %vm4617_vm3 = vcmp.gt.f32.partialorder %v9469_v13, 20.0  ;;  %v11584_v50 = vld [vmem:[#allocation14_spill] sm:$0xff] }
 0x1dc   : > { %v4702_v59 = vmul.f32 1.442695, %v4559_v21  ;;  %7599 = vpow2.f32 %v4698_v40  ;;  %v5581_v23 = vsel %vm668_vm0, %v5451_v18, 0.0  ;;  %v4926_v63 = vadd.f32 1.0, %v9784_v4 }
 0x1dd   : > { %v4889_v45 = vsel %vm4888_vm2, %v4886_v10, %v4883_v37  ;;  %v5969_v32 = vmul.f32 %v9652_v46, %v5580_v9  ;;  %v5582_v8 = vrot.slane %v5581_v23, 4  ;;  %v5566_v2 = vadd.f32 %v5565_v41, %v5564_v29  ;;  %v2404_v29 = vpop.f32.mrf.mxu1 }
 0x1de   : > { %v5385_v58 = vsel %vm4617_vm3, %v9469_v13, %v4889_v45  ;;  %7601 = vpow2.f32 %v4702_v59  ;;  %v4708_v24 = vmul.f32 1.442695, %v4562_v35  ;;  %v3644_v17 = vcombine.high %v9461_v1, %v9461_v1 }
 0x1df   : > { %v5449_v42 = vmul.f32 %v11581_v28, %v5385_v58  ;;  %7603 = vlog2.f32 %v4926_v63  ;;  %v5583_v5 = vadd.f32 %v5582_v8, %v5581_v23  ;;  %v4560_v0 = vmin.f32 %v9786_v44, 20.0  ;;  %v7140_v23 = vpop.f32.mrf.mxu0  ;;  %v7212_v45 = vpop.f32.mrf.mxu1 }
 0x1e0   : > { %7605 = vrcp.f32 %v9708_v34  ;;  %v9799_v26 = vmul.f32 -1.442695, %v9214_v22  ;;  %v4929_v13 = vmul.f32 -0.5, %v9784_v4  ;;  %v11583_v34 = vld [vmem:[#allocation70_spill] sm:$0xff]  ;;  %v9806_v52 = vadd.f32 %v9659_v33, %v5969_v32 }
 0x1e1   : > { %v5567_v20 = vsel %vm668_vm0, %v5449_v42, 0.0  ;;  %7607 = vpow2.f32 %v4708_v24  ;;  %v5584_v55 = vrot.slane %v5583_v5, 2  ;;  %v4704_v43 = vmul.f32 1.442695, %v4560_v0 }
 0x1e2   : > { %7609 = vpow2.f32 %v11582_v48  ;;  %v5568_v14 = vrot.slane %v5567_v20, 4  ;;  %v7596_v49 = vpop.eup %7595  ;;  %v5967_v22 = vmul.f32 %v9652_v46, %v5566_v2  ;;  %v4932_v15 = vand.u32 2147483647, %v9784_v4 }
 0x1e3   : > { %7611 = vpow2.f32 %v11583_v34  ;;  %v5585_v57 = vadd.f32 %v5584_v55, %v5583_v5  ;;  %v4908_v10 = vadd.f32 1.0, %v7596_v49  ;;  %v2405_v54 = vadd.f32 %v2404_v29, %v2091_v11 }
 0x1e4   : > { %v5569_v60 = vadd.f32 %v5568_v14, %v5567_v20  ;;  %v4930_v9 = vadd.f32 1.0, %v4929_v13  ;;  %v4911_v7 = vmul.f32 -0.5, %v7596_v49  ;;  %7613 = vpow2.f32 %v4704_v43  ;;  %v11587_v20 = vld [vmem:[#allocation13_spill] sm:$0xff] }
 0x1e5   : > { %v3529_v36 = vcombine.high %v11584_v50, %v11584_v50  ;;  %v5586_v41 = vrot.slane %v5585_v57, 1  ;;  %7615 = vlog2.f32 %v4908_v10  ;;  %v3847_v16 = vrot.slane %v11584_v50, %v8587_v47 }
 0x1e6   : > { %v5570_v31 = vrot.slane %v5569_v60, 2  ;;  %v6181_v51 = vrot.slane %v9806_v52, 6  ;;  %v9816_v21 = vadd.f32 %v9659_v33, %v5967_v22  ;;  %vm4622_vm5 = vcmp.gt.f32.partialorder %v9512_v25, 20.0 }
 0x1e7   : > { %v2413_v40 = vadd.f32 %v7209_v56, %v7137_v12  ;;  %v7598_v30 = vpop.eup %7597  ;;  %v5587_v18 = vadd.f32 %v5586_v41, %v5585_v57  ;;  %vm9819_vm7 = vcmp.lt.f32.partialorder %v4932_v15, 0.0004427343  ;;  %v9823_v59 = vadd.f32 %v3847_v16, %v2405_v54 }
 0x1e8   : > { %v5571_v37 = vadd.f32 %v5570_v31, %v5569_v60  ;;  %v6325_v32 = vadd.f32 1.0, %v7598_v30  ;;  %v4912_v8 = vadd.f32 1.0, %v4911_v7  ;;  %v4914_v58 = vand.u32 2147483647, %v7596_v49 }
 0x1e9   : > { %v9825_v63 = vpop.eup %7599  ;;  %v3855_v2 = vrot.slane %v3529_v36, %v8587_v47  ;;  %v6328_v28 = vmul.f32 -0.5, %v7598_v30  ;;  %v4931_v56 = vmul.f32 %v9784_v4, %v4930_v9  ;;  %v9832_v0 = vadd.f32 %v7212_v45, %v7140_v23 }
 0x1ea   : > { %v5572_v12 = vrot.slane %v5571_v37, 1  ;;  %v4917_v42 = vadd.f32 1.0, %v9825_v63  ;;  %7617 = vlog2.f32 %v6325_v32  ;;  %v3528_v13 = vcombine.high %v11587_v20, %v11587_v20 }
 0x1eb   : > { %v7602_v24 = vpop.eup %7601  ;;  %v9830_v5 = vadd.f32 %v3855_v2, %v2413_v40  ;;  %v5970_v29 = vmul.f32 %v9652_v46, %v5587_v18  ;;  %v4561_v14 = vmin.f32 %v9823_v59, 20.0  ;;  %v4913_v34 = vmul.f32 %v7596_v49, %v4912_v8 }
 0x1ec   : > { %v7604_v11 = vpop.eup %7603  ;;  %v5573_v48 = vadd.f32 %v5572_v12, %v5571_v37  ;;  %v4935_v55 = vadd.f32 1.0, %v7602_v24  ;;  %vm9840_vm9 = vcmp.lt.f32.partialorder %v4914_v58, 0.0004427343  ;;  %v4938_v15 = vmul.f32 -0.5, %v7602_v24  ;;  %v11590_v37 = vld [vmem:[#allocation23_spill] sm:$0xff] }
 0x1ed   : > { %v9838_v43 = vpop.eup %7605  ;;  %v4928_v4 = vmul.f32 0.6931472, %v7604_v11  ;;  %7619 = vlog2.f32 %v4917_v42  ;;  %v6329_v60 = vadd.f32 1.0, %v6328_v28  ;;  %v6331_v10 = vand.u32 2147483647, %v7598_v30 }
 0x1ee   : > { %v9844_v57 = vpop.eup %7607  ;;  %v5968_v54 = vmul.f32 %v9652_v46, %v5573_v48  ;;  %vm4620_vm10 = vcmp.gt.f32.partialorder %v9736_v61, 20.0  ;;  %7621 = vlog2.f32 %v4935_v55  ;;  %v4920_v7 = vmul.f32 -0.5, %v9825_v63 }
 0x1ef   : > { %v9848_v9 = vpop.eup %7609  ;;  %v4934_v49 = vsel %vm9819_vm7, %v4931_v56, %v4928_v4  ;;  %v4563_v50 = vmin.f32 %v9830_v5, 20.0  ;;  %v3867_v36 = vrot.slane %v3528_v13, %v8587_v47  ;;  %v6041_v31 = vadd.f32 %v9659_v33, %v5970_v29 }
 0x1f0   : > { %v9855_v41 = vpop.eup %7611  ;;  %v6039_v16 = vadd.f32 %v9659_v33, %v5968_v54  ;;  %v5390_v40 = vsel %vm4622_vm5, %v9512_v25, %v4934_v49  ;;  %v4962_v18 = vadd.f32 1.0, %v9844_v57  ;;  %v4939_v23 = vadd.f32 1.0, %v4938_v15  ;;  %v2417_v54 = vpop.f32.mrf.mxu1  ;;  %v11601_v15 = vld [vmem:[#allocation25_spill] sm:$0xff] }
 0x1f1   : > { %v5454_v35 = vmul.f32 %v11590_v37, %v5390_v40  ;;  %v4941_v45 = vand.u32 2147483647, %v7602_v24  ;;  %v4923_v32 = vand.u32 2147483647, %v9825_v63  ;;  %v9865_v8 = vpop.eup %7613  ;;  %v6330_v58 = vmul.f32 %v7598_v30, %v6329_v60 }
 0x1f2   : > { %vm9867_vm15 = vcmp.lt.f32.partialorder %v6331_v10, 0.0004427343  ;;  %v6179_v28 = vrot.slane %v6039_v16, 7  ;;  %7623 = vlog2.f32 %v4962_v18  ;;  %v7616_v12 = vpop.eup %7615  ;;  %vm6301_vm1 = vcmp.gt.f32.partialorder %v9755_v39, 20.0 }
 0x1f3   : > { %v5602_v25 = vsel %vm668_vm0, %v5454_v35, 0.0  ;;  %v4921_v56 = vadd.f32 1.0, %v4920_v7  ;;  %v4944_v42 = vadd.f32 1.0, %v9865_v8  ;;  %v4710_v13 = vmul.f32 1.442695, %v4563_v50 }
 0x1f4   : > { %v6183_v11 = vrot.slane %v6041_v31, 5  ;;  %v6180_v29 = vsel %vm6159_vm4, %v6179_v28, %v9816_v21  ;;  %v5603_v30 = vrot.slane %v5602_v25, 4  ;;  %v4910_v48 = vmul.f32 0.6931472, %v7616_v12 }
 0x1f5   : > { %v6182_v55 = vsel %vm6162_vm6, %v6181_v51, %v6180_v29  ;;  %v4940_v4 = vmul.f32 %v7602_v24, %v4939_v23  ;;  %vm9879_vm2 = vcmp.lt.f32.partialorder %v4941_v45, 0.0004427343  ;;  %vm4621_vm3 = vcmp.gt.f32.partialorder %v9757_v6, 20.0  ;;  %v2104_v24 = vpop.f32.mrf.mxu0 }
 0x1f6   : > { %vm9884_vm5 = vcmp.lt.f32.partialorder %v4923_v32, 0.0004427343  ;;  %7625 = vlog2.f32 %v4944_v42  ;;  %v5604_v10 = vadd.f32 %v5603_v30, %v5602_v25  ;;  %v4916_v21 = vsel %vm9840_vm9, %v4913_v34, %v4910_v48  ;;  %v11597_v34 = vld [vmem:[#allocation24_spill] sm:$0xff] }
 0x1f7   : > { %v9891_v52 = vsel %vm6165_vm8, %v6183_v11, %v6182_v55  ;;  %vm4623_vm7 = vcmp.gt.f32.partialorder %v9769_v62, 20.0  ;;  %v4965_v51 = vmul.f32 -0.5, %v9844_v57  ;;  %v5388_v49 = vsel %vm4620_vm10, %v9736_v61, %v4916_v21  ;;  %v7618_v22 = vpop.eup %7617  ;;  %v11600_v21 = vld [vmem:[#allocation4_spill] sm:$0xff] }
 0x1f8   : > { %v4922_v7 = vmul.f32 %v9825_v63, %v4921_v56  ;;  %7627 = vpow2.f32 %v4710_v13  ;;  %v4706_v50 = vmul.f32 1.442695, %v4561_v14  ;;  %v5452_v31 = vmul.f32 %v11597_v34, %v5388_v49 }
 0x1f9   : > { %v4968_v16 = vand.u32 2147483647, %v9844_v57  ;;  %v4947_v40 = vmul.f32 -0.5, %v9865_v8  ;;  %v9903_v18 = vadd.f32 %v3867_v36, %v9832_v0  ;;  %v6327_v37 = vmul.f32 0.6931472, %v7618_v22 }
 0x1fa   : > { %v5605_v35 = vrot.slane %v5604_v10, 2  ;;  %v2418_v23 = vadd.f32 %v2417_v54, %v2104_v24  ;;  %v3859_v61 = vrot.slane %v11587_v20, %v8587_v47  ;;  %v7620_v45 = vpop.eup %7619  ;;  %v5588_v63 = vsel %vm668_vm0, %v5452_v31, 0.0 }
 0x1fb   : > { %vm4626_vm9 = vcmp.gt.f32.partialorder %v9774_v27, 20.0  ;;  %v4966_v0 = vadd.f32 1.0, %v4965_v51  ;;  %7629 = vpow2.f32 %v4706_v50  ;;  %v4566_v14 = vmin.f32 %v9903_v18, 20.0  ;;  %v7622_v36 = vpop.eup %7621 }
 0x1fc   : > { %v6333_v20 = vsel %vm9867_vm15, %v6330_v58, %v6327_v37  ;;  %v5589_v32 = vrot.slane %v5588_v63, 4  ;;  %v4919_v28 = vmul.f32 0.6931472, %v7620_v45  ;;  %v9919_v12 = vadd.f32 %v3859_v61, %v2418_v23 }
 0x1fd   : > { %v6397_v25 = vsel %vm6301_vm1, %v9755_v39, %v6333_v20  ;;  %v4937_v56 = vmul.f32 0.6931472, %v7622_v36  ;;  %v4948_v42 = vadd.f32 1.0, %v4947_v40  ;;  %v4716_v13 = vmul.f32 1.442695, %v4566_v14 }
 0x1fe   : > { %6405 = vst.msk [vmem:[%s9912_s30] sm:$0xff] %vm668_vm0, %v6397_v25  ;;  %v5606_v11 = vadd.f32 %v5605_v35, %v5604_v10  ;;  %v5590_v29 = vadd.f32 %v5589_v32, %v5588_v63  ;;  %v4925_v30 = vsel %vm9884_vm5, %v4922_v7, %v4919_v28  ;;  %v4564_v58 = vmin.f32 %v9919_v12, 20.0  ;;  %v11602_v63 = vld [vmem:[#allocation26_spill] sm:$0xff] }
 0x1ff   : > { %v4943_v2 = vsel %vm9879_vm2, %v4940_v4, %v4937_v56  ;;  %v5389_v48 = vsel %vm4621_vm3, %v9757_v6, %v4925_v30  ;;  %vm9934_vm10 = vcmp.lt.f32.partialorder %v4968_v16, 0.0004427343  ;;  %7631 = vpow2.f32 %v4716_v13  ;;  %v7624_v55 = vpop.eup %7623  ;;  %v11603_v30 = vld [vmem:[#allocation27_spill] sm:$0xff] }
 0x200   : > { %v5591_v10 = vrot.slane %v5590_v29, 2  ;;  %v5391_v60 = vsel %vm4623_vm7, %v9769_v62, %v4943_v2  ;;  %v5453_v51 = vmul.f32 %v11600_v21, %v5389_v48  ;;  %v4712_v24 = vmul.f32 1.442695, %v4564_v58  ;;  %v11604_v48 = vld [vmem:[#allocation32_spill] sm:$0xff] }
 0x201   : > { %v5455_v4 = vmul.f32 %v11601_v15, %v5391_v60  ;;  %v4964_v54 = vmul.f32 0.6931472, %v7624_v55  ;;  %v4967_v49 = vmul.f32 %v9844_v57, %v4966_v0  ;;  %v4950_v6 = vand.u32 2147483647, %v9865_v8 }
 0x202   : > { %v5607_v7 = vrot.slane %v5606_v11, 1  ;;  %v5592_v50 = vadd.f32 %v5591_v10, %v5590_v29  ;;  %v5595_v22 = vsel %vm668_vm0, %v5453_v51, 0.0  ;;  %v4949_v34 = vmul.f32 %v9865_v8, %v4948_v42 }
 0x203   : > { %v7626_v31 = vpop.eup %7625  ;;  %v5609_v16 = vsel %vm668_vm0, %v5455_v4, 0.0  ;;  %v5596_v62 = vrot.slane %v5595_v22, 4  ;;  %v4970_v40 = vsel %vm9934_vm10, %v4967_v49, %v4964_v54  ;;  %7633 = vpow2.f32 %v4712_v24 }
 0x204   : > { %v5593_v37 = vrot.slane %v5592_v50, 1  ;;  %v5610_v35 = vrot.slane %v5609_v16, 4  ;;  %v5394_v57 = vsel %vm4626_vm9, %v9774_v27, %v4970_v40  ;;  %v4946_v23 = vmul.f32 0.6931472, %v7626_v31 }
 0x205   : > { %v9953_v61 = vpop.eup %7627  ;;  %v5597_v45 = vadd.f32 %v5596_v62, %v5595_v22  ;;  %v5458_v8 = vmul.f32 %v11602_v63, %v5394_v57  ;;  %vm4624_vm15 = vcmp.gt.f32.partialorder %v9786_v44, 20.0  ;;  %vm4951_vm1 = vcmp.lt.f32.partialorder %v4950_v6, 0.0004427343  ;;  %v11606_v22 = vld [vmem:[#allocation10_spill] sm:$0xff]  ;;  %v7213_v57 = vpop.f32.mrf.mxu1 }
 0x206   : > { %v5594_v0 = vadd.f32 %v5593_v37, %v5592_v50  ;;  %v5611_v14 = vadd.f32 %v5610_v35, %v5609_v16  ;;  %v4952_v36 = vsel %vm4951_vm1, %v4949_v34, %v4946_v23  ;;  %v4971_v20 = vadd.f32 1.0, %v9953_v61  ;;  %v11608_v16 = vld [vmem:[#allocation62_spill] sm:$0xff]  ;;  %v7141_v35 = vpop.f32.mrf.mxu0 }
 0x207   : > { %v5608_v32 = vadd.f32 %v5607_v7, %v5606_v11  ;;  %v5598_v28 = vrot.slane %v5597_v45, 2  ;;  %v5630_v25 = vsel %vm668_vm0, %v5458_v8, 0.0  ;;  %v5392_v27 = vsel %vm4624_vm15, %v9786_v44, %v4952_v36 }
 0x208   : > { %v9960_v56 = vpop.eup %7629  ;;  %v5971_v42 = vmul.f32 %v9652_v46, %v5594_v0  ;;  %v5612_v13 = vrot.slane %v5611_v14, 2  ;;  %v5631_v29 = vrot.slane %v5630_v25, 4  ;;  %v5456_v58 = vmul.f32 %v11603_v30, %v5392_v27 }
 0x209   : > { %v9966_v2 = vrot.slane %v9461_v1, %v8522_v3  ;;  %v6780_v39 = vmul.f32 -1.442695, %v11604_v48  ;;  %v5599_v11 = vadd.f32 %v5598_v28, %v5597_v45  ;;  %7635 = vlog2.f32 %v4971_v20 }
 0x20a   : > { %7637 = vpow2.f32 %v9799_v26  ;;  %v6042_v44 = vadd.f32 %v9659_v33, %v5971_v42  ;;  %v5613_v55 = vadd.f32 %v5612_v13, %v5611_v14  ;;  %v5616_v10 = vsel %vm668_vm0, %v5456_v58, 0.0  ;;  %v11605_v26 = vld [vmem:[#allocation36_spill] sm:$0xff]  ;;  %v2107_v13 = vpop.f32.mrf.mxu0 }
 0x20b   : > { %v5973_v60 = vmul.f32 %v9652_v46, %v5608_v32  ;;  %v5600_v21 = vrot.slane %v5599_v11, 1  ;;  %v5632_v51 = vadd.f32 %v5631_v29, %v5630_v25  ;;  %v5617_v24 = vrot.slane %v5616_v10, 4  ;;  %v2420_v29 = vpop.f32.mrf.mxu1 }
 0x20c   : > { %v9973_v15 = vpop.eup %7631  ;;  %v6185_v4 = vrot.slane %v6042_v44, 4  ;;  %v5614_v54 = vrot.slane %v5613_v55, 1  ;;  %v4974_v49 = vmul.f32 -0.5, %v9953_v61  ;;  %v4953_v6 = vadd.f32 1.0, %v9960_v56 }
 0x20d   : > { %7639 = vpow2.f32 %v6780_v39  ;;  %v9978_v7 = vmul.f32 -1.442695, %v11605_v26  ;;  %v5601_v50 = vadd.f32 %v5600_v21, %v5599_v11  ;;  %v11607_v34 = vcombine.high %v11606_v22, %v11606_v22 }
 0x20e   : > { %v9987_v62 = vadd.f32 1.0, %v11608_v16  ;;  %v6186_v40 = vsel %vm6168_vm11, %v6185_v4, %v9891_v52  ;;  %v5615_v37 = vadd.f32 %v5614_v54, %v5613_v55  ;;  %7641 = vlog2.f32 %v4953_v6  ;;  %v7216_v6 = vpop.f32.mrf.mxu1 }
 0x20f   : > { %v9984_v31 = vrot.slane %v11607_v34, %v8522_v3  ;;  %v6044_v23 = vadd.f32 %v9659_v33, %v5973_v60  ;;  %v5972_v45 = vmul.f32 %v9652_v46, %v5601_v50  ;;  %v5633_v63 = vrot.slane %v5632_v51, 2 }
 0x210   : > { %v5618_v8 = vadd.f32 %v5617_v24, %v5616_v10  ;;  %v9993_v0 = vpop.eup %7633  ;;  %v5974_v14 = vmul.f32 %v9652_v46, %v5615_v37  ;;  %v4975_v36 = vadd.f32 1.0, %v4974_v49  ;;  %v4956_v20 = vmul.f32 -0.5, %v9960_v56  ;;  %v7144_v49 = vpop.f32.mrf.mxu0 }
 0x211   : > { %v4998_v32 = vadd.f32 1.0, %v9973_v15  ;;  %v6043_v52 = vadd.f32 %v9659_v33, %v5972_v45  ;;  %vm4627_vm2 = vcmp.gt.f32.partialorder %v9830_v5, 20.0  ;;  %v4977_v28 = vand.u32 2147483647, %v9953_v61 }
 0x212   : > { %v3530_v25 = vcombine.high %v9984_v31, %v9984_v31  ;;  %v6045_v27 = vadd.f32 %v9659_v33, %v5974_v14  ;;  %v4959_v42 = vand.u32 2147483647, %v9960_v56  ;;  %v5001_v46 = vmul.f32 -0.5, %v9973_v15 }
 0x213   : > { %7643 = vlog2.f32 %v4998_v32  ;;  %v6187_v30 = vrot.slane %v6043_v52, 3  ;;  %v10006_v58 = vadd.f32 %v5633_v63, %v5632_v51  ;;  %v5619_v48 = vrot.slane %v5618_v8, 2 }
 0x214   : > { %v4980_v39 = vadd.f32 1.0, %v9993_v0  ;;  %v6189_v11 = vrot.slane %v6044_v23, 2  ;;  %v4976_v44 = vmul.f32 %v9953_v61, %v4975_v36  ;;  %v4957_v55 = vadd.f32 1.0, %v4956_v20 }
 0x215   : > { %v2429_v10 = vadd.f32 %v7213_v57, %v7141_v35  ;;  %v6191_v60 = vrot.slane %v6045_v27, 1  ;;  %v6188_v33 = vsel %vm6171_vm12, %v6187_v30, %v6186_v40  ;;  %vm10011_vm3 = vcmp.lt.f32.partialorder %v4977_v28, 0.0004427343  ;;  %v7890_v40 = vld [vmem:[%s8016_s28 + $0x8] sm:$0xff]  ;;  %v2120_v28 = vpop.f32.mrf.mxu0 }
 0x216   : > { %7645 = vlog2.f32 %v4980_v39  ;;  %v7636_v24 = vpop.eup %7635  ;;  %v6190_v51 = vsel %vm6174_vm13, %v6189_v11, %v6188_v33  ;;  %vm4625_vm5 = vcmp.gt.f32.partialorder %v9823_v59, 20.0  ;;  %vm10017_vm7 = vcmp.lt.f32.partialorder %v4959_v42, 0.0004427343  ;;  %v11613_v42 = vld [vmem:[#allocation28_spill] sm:$0xff] }
 0x217   : > { %v5002_v61 = vadd.f32 1.0, %v5001_v46  ;;  %v3871_v54 = vrot.slane %v3530_v25, %v8587_v47  ;;  %v10022_v26 = vpop.eup %7637  ;;  %v6192_v50 = vsel %vm6177_vm14, %v6191_v60, %v6190_v51  ;;  %v5635_v22 = vrot.slane %v10006_v58, 1  ;;  %v2433_v25 = vpop.f32.mrf.mxu1 }
 0x218   : > { %v10026_v34 = vadd.f32 %v5619_v48, %v5618_v8  ;;  %v4973_v16 = vmul.f32 0.6931472, %v7636_v24  ;;  %v10029_v37 = vadd.f32 %v7890_v40, %v6192_v50  ;;  %v4958_v35 = vmul.f32 %v9960_v56, %v4957_v55 }
 0x219   : > { %v5004_v57 = vand.u32 2147483647, %v9973_v15  ;;  %v10033_v23 = vadd.f32 %v3871_v54, %v2429_v10  ;;  %v4983_v63 = vmul.f32 -0.5, %v9993_v0  ;;  %v2421_v14 = vadd.f32 %v2420_v29, %v2107_v13 }
 0x21a   : > { %v4979_v45 = vsel %vm10011_vm3, %v4976_v44, %v4973_v16  ;;  %v3863_v8 = vrot.slane %v9984_v31, %v8587_v47  ;;  %v10040_v36 = vpop.eup %7639  ;;  %v6294_v20 = vmin.f32 %v10029_v37, 20.0  ;;  %vm4630_vm9 = vcmp.gt.f32.partialorder %v9903_v18, 20.0 }
 0x21b   : > { %v5395_v56 = vsel %vm4627_vm2, %v9830_v5, %v4979_v45  ;;  %v5003_v32 = vmul.f32 %v9973_v15, %v5002_v61  ;;  %v4567_v52 = vmin.f32 %v10033_v23, 20.0  ;;  %v7642_v27 = vpop.eup %7641  ;;  %v4986_v31 = vand.u32 2147483647, %v9993_v0  ;;  %v11614_v5 = vld [vmem:[#allocation20_spill] sm:$0xff] }
 0x21c   : > { %v5459_v46 = vmul.f32 %v11613_v42, %v5395_v56  ;;  %v10051_v13 = vadd.f32 %v3863_v8, %v2421_v14  ;;  %v2442_v29 = vadd.f32 %v7216_v6, %v7144_v49  ;;  %v6311_v30 = vmul.f32 1.442695, %v6294_v20  ;;  %v11615_v6 = vld [vmem:[#allocation29_spill] sm:$0xff] }
 0x21d   : > { %v4955_v48 = vmul.f32 0.6931472, %v7642_v27  ;;  %v4718_v39 = vmul.f32 1.442695, %v4567_v52  ;;  %v3576_v11 = vcombine.high %v11614_v5, %v11614_v5  ;;  %vm4628_vm10 = vcmp.gt.f32.partialorder %v9919_v12, 20.0 }
 0x21e   : > { %v5637_v15 = vsel %vm668_vm0, %v5459_v46, 0.0  ;;  %v4984_v44 = vadd.f32 1.0, %v4983_v63  ;;  %v4565_v55 = vmin.f32 %v10051_v13, 20.0  ;;  %v2434_v10 = vadd.f32 %v2433_v25, %v2120_v28  ;;  %v11618_v25 = vld [vmem:[#allocation30_spill] sm:$0xff] }
 0x21f   : > { %7647 = vpow2.f32 %v6311_v30  ;;  %v5638_v60 = vrot.slane %v5637_v15, 4  ;;  %v4961_v33 = vsel %vm10017_vm7, %v4958_v35, %v4955_v48  ;;  %v3883_v21 = vrot.slane %v3576_v11, %v8587_v47  ;;  %v11619_v11 = vld [vmem:[#allocation31_spill] sm:$0xff] }
 0x220   : > { %v7644_v24 = vpop.eup %7643  ;;  %v5393_v51 = vsel %vm4625_vm5, %v9823_v59, %v4961_v33  ;;  %7649 = vpow2.f32 %v4718_v39  ;;  %v4714_v61 = vmul.f32 1.442695, %v4565_v55  ;;  %v3875_v54 = vrot.slane %v11614_v5, %v8587_v47  ;;  %v11620_v55 = vld [vmem:[#allocation67_spill] sm:$0xff]  ;;  %v11621_v33 = vld [vmem:[#allocation22_spill] sm:$0xff] }
 0x221   : > { %v5639_v49 = vadd.f32 %v5638_v60, %v5637_v15  ;;  %v5457_v50 = vmul.f32 %v11615_v6, %v5393_v51  ;;  %v5000_v16 = vmul.f32 0.6931472, %v7644_v24  ;;  %v10067_v40 = vadd.f32 %v3883_v21, %v2442_v29 }
 0x222   : > { %vm5005_vm15 = vcmp.lt.f32.partialorder %v5004_v57, 0.0004427343  ;;  %vm10069_vm1 = vcmp.lt.f32.partialorder %v4986_v31, 0.0004427343  ;;  %7651 = vpow2.f32 %v4714_v61  ;;  %v10073_v35 = vadd.f32 %v3875_v54, %v2434_v10  ;;  %v10102_v61 = vld [vmem:[%s11397_s11] ss:$0 sm:$0xff] }
 0x223   : > { %v7646_v59 = vpop.eup %7645  ;;  %v5640_v45 = vrot.slane %v5639_v49, 2  ;;  %v5623_v63 = vsel %vm668_vm0, %v5457_v50, 0.0  ;;  %v5006_v14 = vsel %vm5005_vm15, %v5003_v32, %v5000_v16  ;;  %v4570_v8 = vmin.f32 %v10067_v40, 20.0  ;;  %v11622_v16 = vld [vmem:[#allocation68_spill] sm:$0xff] }
 0x224   : > { %v5624_v20 = vrot.slane %v5623_v63, 4  ;;  %v5398_v56 = vsel %vm4630_vm9, %v9903_v18, %v5006_v14  ;;  %v4982_v57 = vmul.f32 0.6931472, %v7646_v59  ;;  %v4985_v52 = vmul.f32 %v9993_v0, %v4984_v44  ;;  %v11623_v59 = vld [vmem:[#allocation35_spill] sm:$0xff] }
 0x225   : > { %v5641_v28 = vadd.f32 %v5640_v45, %v5639_v49  ;;  %v5462_v27 = vmul.f32 %v11618_v25, %v5398_v56  ;;  %v4724_v42 = vmul.f32 1.442695, %v4570_v8  ;;  %v4568_v46 = vmin.f32 %v10073_v35, 20.0 }
 0x226   : > { %v5636_v32 = vadd.f32 %v5635_v22, %v10006_v58  ;;  %v5621_v31 = vrot.slane %v10026_v34, 1  ;;  %v5625_v29 = vadd.f32 %v5624_v20, %v5623_v63  ;;  %v4988_v30 = vsel %vm10069_vm1, %v4985_v52, %v4982_v57  ;;  %v7145_v58 = vpop.f32.mrf.mxu0  ;;  %v7217_v22 = vpop.f32.mrf.mxu1 }
 0x227   : > { %v5642_v18 = vrot.slane %v5641_v28, 1  ;;  %v5658_v48 = vsel %vm668_vm0, %v5462_v27, 0.0  ;;  %v5396_v0 = vsel %vm4628_vm10, %v9919_v12, %v4988_v30  ;;  %7653 = vpow2.f32 %v4724_v42  ;;  %v10125_v42 = vld [vmem:[%s11398_s12] ss:$0 sm:$0xff] }
 0x228   : > { %v5626_v39 = vrot.slane %v5625_v29, 2  ;;  %v5659_v5 = vrot.slane %v5658_v48, 4  ;;  %v5460_v15 = vmul.f32 %v11619_v11, %v5396_v0  ;;  %v4720_v44 = vmul.f32 1.442695, %v4568_v46  ;;  %v2123_v56 = vpop.f32.mrf.mxu0  ;;  %v2436_v57 = vpop.f32.mrf.mxu1 }
 0x229   : > { %7655 = vrcp.f32 %v9987_v62  ;;  %v4402_v10 = vadd.f32 1.0, %v11620_v55  ;;  %v5643_v60 = vadd.f32 %v5642_v18, %v5641_v28  ;;  %v3578_v21 = vcombine.high %v11621_v33, %v11621_v33 }
 0x22a   : > { %v5627_v24 = vadd.f32 %v5626_v39, %v5625_v29  ;;  %v5660_v51 = vadd.f32 %v5659_v5, %v5658_v48  ;;  %v5644_v12 = vsel %vm668_vm0, %v5460_v15, 0.0  ;;  %7657 = vpow2.f32 %v4720_v44  ;;  %v11624_v48 = vld [vmem:[#allocation72_spill] sm:$0xff] }
 0x22b   : > { %v5977_v54 = vmul.f32 %v10102_v61, %v5636_v32  ;;  %v5622_v62 = vadd.f32 %v5621_v31, %v10026_v34  ;;  %v5645_v49 = vrot.slane %v5644_v12, 4  ;;  %v2445_v6 = vadd.f32 %v7217_v22, %v7145_v58 }
 0x22c   : > { %v10106_v50 = vpop.eup %7647  ;;  %v3645_v4 = vcombine.high %v11622_v16, %v11622_v16  ;;  %7659 = vpow2.f32 %v9978_v7  ;;  %v10112_v45 = vmul.f32 -1.442695, %v11623_v59  ;;  %v5628_v63 = vrot.slane %v5627_v24, 1 }
 0x22d   : > { %v10114_v14 = vpop.eup %7649  ;;  %7661 = vrcp.f32 %v4402_v10  ;;  %v6334_v8 = vadd.f32 1.0, %v10106_v50  ;;  %v5661_v20 = vrot.slane %v5660_v51, 2  ;;  %v3887_v34 = vrot.slane %v3578_v21, %v8587_v47  ;;  %v7148_v21 = vpop.f32.mrf.mxu0 }
 0x22e   : > { %v5978_v52 = vmul.f32 %v10102_v61, %v5643_v60  ;;  %v5629_v28 = vadd.f32 %v5628_v63, %v5627_v24  ;;  %v5646_v25 = vadd.f32 %v5645_v49, %v5644_v12  ;;  %v5007_v7 = vadd.f32 1.0, %v10114_v14  ;;  %v7220_v24 = vpop.f32.mrf.mxu1 }
 0x22f   : > { %v10120_v27 = vpop.eup %7651  ;;  %7663 = vlog2.f32 %v6334_v8  ;;  %v6048_v46 = vadd.f32 %v10125_v42, %v5977_v54  ;;  %v5975_v32 = vmul.f32 %v10102_v61, %v5622_v62  ;;  %v10129_v31 = vadd.f32 %v3887_v34, %v2445_v6 }
 0x230   : > { %v5976_v29 = vmul.f32 %v10102_v61, %v5629_v28  ;;  %v5647_v30 = vrot.slane %v5646_v25, 2  ;;  %7665 = vlog2.f32 %v5007_v7  ;;  %v2437_v18 = vadd.f32 %v2436_v57, %v2123_v56 }
 0x231   : > { %v10133_v0 = vadd.f32 1.0, %v11624_v48  ;;  %v6337_v39 = vmul.f32 -0.5, %v10106_v50  ;;  %v5662_v5 = vadd.f32 %v5661_v20, %v5660_v51  ;;  %v4989_v11 = vadd.f32 1.0, %v10120_v27 }
 0x232   : > { %v6049_v15 = vadd.f32 %v10125_v42, %v5978_v52  ;;  %v6047_v44 = vadd.f32 %v10125_v42, %v5976_v29  ;;  %v5648_v58 = vadd.f32 %v5647_v30, %v5646_v25  ;;  %v3879_v22 = vrot.slane %v11621_v33, %v8587_v47 }
 0x233   : > { %v6195_v55 = vrot.slane %v6048_v46, 6  ;;  %v6046_v10 = vadd.f32 %v10125_v42, %v5975_v32  ;;  %7667 = vlog2.f32 %v4989_v11  ;;  %v4571_v60 = vmin.f32 %v10129_v31, 20.0  ;;  %v11632_v46 = vld [vmem:[#allocation19_spill] sm:$0xff] }
 0x234   : > { %v10143_v12 = vpop.eup %7653  ;;  %v6340_v51 = vand.u32 2147483647, %v10106_v50  ;;  %v6193_v54 = vrot.slane %v6047_v44, 7  ;;  %v5649_v62 = vrot.slane %v5648_v58, 1  ;;  %v10146_v49 = vadd.f32 %v3879_v22, %v2437_v18  ;;  %v2136_v44 = vpop.f32.mrf.mxu0 }
 0x235   : > { %v6338_v6 = vadd.f32 1.0, %v6337_v39  ;;  %v5663_v59 = vrot.slane %v5662_v5, 1  ;;  %v5010_v33 = vmul.f32 -0.5, %v10114_v14  ;;  %v5034_v63 = vadd.f32 1.0, %v10143_v12 }
 0x236   : > { %v10150_v8 = vpop.eup %7655  ;;  %v6197_v20 = vrot.slane %v6049_v15, 5  ;;  %v6194_v34 = vsel %vm6159_vm4, %v6193_v54, %v6046_v10  ;;  %v5650_v56 = vadd.f32 %v5649_v62, %v5648_v58  ;;  %v2458_v57 = vadd.f32 %v7220_v24, %v7148_v21  ;;  %v2449_v58 = vpop.f32.mrf.mxu1  ;;  %v11634_v24 = vld [vmem:[#allocation33_spill] sm:$0xff] }
 0x237   : > { %v10153_v52 = vpop.eup %7657  ;;  %vm6302_vm2 = vcmp.gt.f32.partialorder %v10029_v37, 20.0  ;;  %v6196_v28 = vsel %vm6162_vm6, %v6195_v55, %v6194_v34  ;;  %v5013_v25 = vand.u32 2147483647, %v10114_v14  ;;  %v4992_v7 = vmul.f32 -0.5, %v10120_v27 }
 0x238   : > { %7669 = vlog2.f32 %v5034_v63  ;;  %vm10159_vm3 = vcmp.lt.f32.partialorder %v6340_v51, 0.0004427343  ;;  %v5979_v32 = vmul.f32 %v10102_v61, %v5650_v56  ;;  %v6198_v29 = vsel %vm6165_vm8, %v6197_v20, %v6196_v28  ;;  %v11629_v51 = vld [vmem:[#allocation21_spill] sm:$0xff] }
 0x239   : > { %vm4631_vm5 = vcmp.gt.f32.partialorder %v10033_v23, 20.0  ;;  %v5016_v30 = vadd.f32 1.0, %v10153_v52  ;;  %v10167_v18 = vpop.eup %7659  ;;  %v6339_v48 = vmul.f32 %v10106_v50, %v6338_v6  ;;  %v10170_v39 = vadd.f32 %v5663_v59, %v5662_v5 }
 0x23a   : > { %v5011_v11 = vadd.f32 1.0, %v5010_v33  ;;  %v5037_v15 = vmul.f32 -0.5, %v10143_v12  ;;  %v10173_v22 = vpop.eup %7661  ;;  %v6050_v55 = vadd.f32 %v10125_v42, %v5979_v32  ;;  %v4726_v10 = vmul.f32 1.442695, %v4571_v60 }
 0x23b   : > { %7671 = vlog2.f32 %v5016_v30  ;;  %v4569_v21 = vmin.f32 %v10146_v49, 20.0  ;;  %vm10177_vm7 = vcmp.lt.f32.partialorder %v5013_v25, 0.0004427343  ;;  %vm4629_vm9 = vcmp.gt.f32.partialorder %v10051_v13, 20.0 }
 0x23c   : > { %v4993_v50 = vadd.f32 1.0, %v4992_v7  ;;  %v4995_v5 = vand.u32 2147483647, %v10120_v27  ;;  %v3577_v54 = vcombine.high %v11629_v51, %v11629_v51  ;;  %v7664_v62 = vpop.eup %7663  ;;  %v6199_v6 = vrot.slane %v6050_v55, 4 }
 0x23d   : > { %7673 = vpow2.f32 %v4726_v10  ;;  %v4722_v59 = vmul.f32 1.442695, %v4569_v21  ;;  %v2450_v33 = vadd.f32 %v2449_v58, %v2136_v44  ;;  %v7666_v60 = vpop.eup %7665  ;;  %v6336_v63 = vmul.f32 0.6931472, %v7664_v62 }
 0x23e   : > { %v5012_v20 = vmul.f32 %v10114_v14, %v5011_v11  ;;  %v3899_v34 = vrot.slane %v3577_v54, %v8587_v47  ;;  %v3891_v56 = vrot.slane %v11629_v51, %v8587_v47  ;;  %v10190_v28 = vsel %vm6168_vm11, %v6199_v6, %v6198_v29 }
 0x23f   : > { %v5009_v25 = vmul.f32 0.6931472, %v7666_v60  ;;  %v5038_v7 = vadd.f32 1.0, %v5037_v15  ;;  %7675 = vpow2.f32 %v4722_v59  ;;  %v6342_v32 = vsel %vm10159_vm3, %v6339_v48, %v6336_v63  ;;  %v7149_v60 = vpop.f32.mrf.mxu0  ;;  %v7221_v63 = vpop.f32.mrf.mxu1 }
 0x240   : > { %vm4634_vm10 = vcmp.gt.f32.partialorder %v10067_v40, 20.0  ;;  %v5019_v30 = vmul.f32 -0.5, %v10153_v52  ;;  %v10196_v14 = vadd.f32 %v3899_v34, %v2458_v57  ;;  %v10198_v11 = vadd.f32 %v3891_v56, %v2450_v33  ;;  %v7668_v44 = vpop.eup %7667 }
 0x241   : > { %v6398_v29 = vsel %vm6302_vm2, %v10029_v37, %v6342_v32  ;;  %v5015_v15 = vsel %vm10177_vm7, %v5012_v20, %v5009_v25  ;;  %vm10205_vm15 = vcmp.lt.f32.partialorder %v4995_v5, 0.0004427343  ;;  %v11633_v48 = vcombine.high %v11632_v46, %v11632_v46  ;;  %v11635_v25 = vld [vmem:[#allocation34_spill] sm:$0xff]  ;;  %v2139_v46 = vpop.f32.mrf.mxu0 }
 0x242   : > { %6406 = vst.msk [vmem:[%s9912_s30 + $0x8] sm:$0xff] %vm668_vm0, %v6398_v29  ;;  %v5399_v55 = vsel %vm4631_vm5, %v10033_v23, %v5015_v15  ;;  %v4991_v37 = vmul.f32 0.6931472, %v7668_v44  ;;  %v4994_v10 = vmul.f32 %v10120_v27, %v4993_v50  ;;  %v4574_v21 = vmin.f32 %v10196_v14, 20.0 }
 0x243   : > { %v10213_v57 = vrot.slane %v11633_v48, %v8522_v3  ;;  %v5463_v5 = vmul.f32 %v11634_v24, %v5399_v55  ;;  %v5039_v51 = vmul.f32 %v10143_v12, %v5038_v7  ;;  %v5040_v54 = vand.u32 2147483647, %v10143_v12  ;;  %v2452_v48 = vpop.f32.mrf.mxu1 }
 0x244   : > { %v4572_v62 = vmin.f32 %v10198_v11, 20.0  ;;  %v4997_v6 = vsel %vm10205_vm15, %v4994_v10, %v4991_v37  ;;  %v5020_v59 = vadd.f32 1.0, %v5019_v30  ;;  %v5022_v33 = vand.u32 2147483647, %v10153_v52 }
 0x245   : > { %v4732_v23 = vmul.f32 1.442695, %v4574_v21  ;;  %v7670_v27 = vpop.eup %7669  ;;  %v5665_v50 = vsel %vm668_vm0, %v5463_v5, 0.0  ;;  %v5397_v20 = vsel %vm4629_vm9, %v10051_v13, %v4997_v6  ;;  %v3579_v12 = vcombine.high %v10213_v57, %v10213_v57  ;;  %v11636_v5 = vld [vmem:[#allocation37_spill] sm:$0xff] }
 0x246   : > { %v4728_v34 = vmul.f32 1.442695, %v4572_v62  ;;  %v5666_v56 = vrot.slane %v5665_v50, 4  ;;  %v5461_v7 = vmul.f32 %v11635_v25, %v5397_v20  ;;  %v5036_v32 = vmul.f32 0.6931472, %v7670_v27  ;;  %v11637_v20 = vld [vmem:[#allocation38_spill] sm:$0xff] }
 0x247   : > { %7677 = vpow2.f32 %v4732_v23  ;;  %v5981_v30 = vmul.f32 %v10102_v61, %v10170_v39  ;;  %vm5041_vm1 = vcmp.lt.f32.partialorder %v5040_v54, 0.0004427343  ;;  %vm4632_vm2 = vcmp.gt.f32.partialorder %v10073_v35, 20.0 }
 0x248   : > { %7679 = vpow2.f32 %v4728_v34  ;;  %v7672_v44 = vpop.eup %7671  ;;  %v5667_v29 = vadd.f32 %v5666_v56, %v5665_v50  ;;  %v5651_v13 = vsel %vm668_vm0, %v5461_v7, 0.0  ;;  %v5042_v15 = vsel %vm5041_vm1, %v5039_v51, %v5036_v32 }
 0x249   : > { %v2461_v58 = vadd.f32 %v7221_v63, %v7149_v60  ;;  %v5652_v55 = vrot.slane %v5651_v13, 4  ;;  %v5402_v37 = vsel %vm4634_vm10, %v10067_v40, %v5042_v15  ;;  %v5018_v10 = vmul.f32 0.6931472, %v7672_v44 }
 0x24a   : > { %v5021_v39 = vmul.f32 %v10153_v52, %v5020_v59  ;;  %v10244_v21 = vpop.eup %7673  ;;  %v5668_v24 = vrot.slane %v5667_v29, 2  ;;  %v5466_v54 = vmul.f32 %v11636_v5, %v5402_v37  ;;  %vm5023_vm3 = vcmp.lt.f32.partialorder %v5022_v33, 0.0004427343 }
 0x24b   : > { %v3903_v62 = vrot.slane %v3579_v12, %v8587_v47  ;;  %v5653_v51 = vadd.f32 %v5652_v55, %v5651_v13  ;;  %v5043_v23 = vadd.f32 1.0, %v10244_v21  ;;  %v2453_v60 = vadd.f32 %v2452_v48, %v2139_v46  ;;  %v7152_v55 = vpop.f32.mrf.mxu0 }
 0x24c   : > { %v5024_v6 = vsel %vm5023_vm3, %v5021_v39, %v5018_v10  ;;  %v10249_v63 = vpop.eup %7675  ;;  %v5669_v27 = vadd.f32 %v5668_v24, %v5667_v29  ;;  %v5686_v40 = vsel %vm668_vm0, %v5466_v54, 0.0  ;;  %v3895_v25 = vrot.slane %v10213_v57, %v8587_v47  ;;  %v7224_v57 = vpop.f32.mrf.mxu1 }
 0x24d   : > { %v5400_v52 = vsel %vm4632_vm2, %v10073_v35, %v5024_v6  ;;  %v10255_v59 = vadd.f32 %v3903_v62, %v2461_v58  ;;  %v5654_v50 = vrot.slane %v5653_v51, 2  ;;  %v5687_v33 = vrot.slane %v5686_v40, 4  ;;  %v11638_v62 = vld [vmem:[#allocation52_spill] sm:$0xff] }
 0x24e   : > { %v5464_v34 = vmul.f32 %v11637_v20, %v5400_v52  ;;  %7681 = vlog2.f32 %v5043_v23  ;;  %v5670_v12 = vrot.slane %v5669_v27, 1  ;;  %v5025_v56 = vadd.f32 1.0, %v10249_v63  ;;  %v2152_v20 = vpop.f32.mrf.mxu0 }
 0x24f   : > { %7683 = vpow2.f32 %v10112_v45  ;;  %v10263_v7 = vadd.f32 %v10125_v42, %v5981_v30  ;;  %v5655_v32 = vadd.f32 %v5654_v50, %v5653_v51  ;;  %v5688_v35 = vadd.f32 %v5687_v33, %v5686_v40 }
 0x250   : > { %v5672_v44 = vsel %vm668_vm0, %v5464_v34, 0.0  ;;  %v5671_v29 = vadd.f32 %v5670_v12, %v5669_v27  ;;  %7685 = vlog2.f32 %v5025_v56  ;;  %v10266_v15 = vadd.f32 %v3895_v25, %v2453_v60  ;;  %v2465_v34 = vpop.f32.mrf.mxu1 }
 0x251   : > { %v5673_v13 = vrot.slane %v5672_v44, 4  ;;  %v5656_v58 = vrot.slane %v5655_v32, 1  ;;  %v5689_v45 = vrot.slane %v5688_v35, 2  ;;  %v5046_v46 = vmul.f32 -0.5, %v10244_v21 }
 0x252   : > { %v4575_v48 = vmin.f32 %v10255_v59, 20.0  ;;  %v10272_v30 = vrot.slane %v11622_v16, %v8522_v3  ;;  %7687 = vrcp.f32 %v10133_v0  ;;  %v5982_v37 = vmul.f32 %v10102_v61, %v5671_v29 }
 0x253   : > { %v5028_v10 = vmul.f32 -0.5, %v10249_v63  ;;  %v6203_v24 = vrot.slane %v10263_v7, 2  ;;  %v5657_v5 = vadd.f32 %v5656_v58, %v5655_v32  ;;  %v5674_v54 = vadd.f32 %v5673_v13, %v5672_v44 }
 0x254   : > { %v10277_v39 = vpop.eup %7677  ;;  %v3625_v51 = vcombine.high %v11638_v62, %v11638_v62  ;;  %v5690_v23 = vadd.f32 %v5689_v45, %v5688_v35  ;;  %v5049_v60 = vand.u32 2147483647, %v10244_v21  ;;  %v4573_v27 = vmin.f32 %v10266_v15, 20.0 }
 0x255   : > { %v10282_v6 = vpop.eup %7679  ;;  %v5070_v0 = vadd.f32 1.0, %v10277_v39  ;;  %v5980_v40 = vmul.f32 %v10102_v61, %v5657_v5  ;;  %vm4635_vm5 = vcmp.gt.f32.partialorder %v10129_v31, 20.0  ;;  %v5047_v52 = vadd.f32 1.0, %v5046_v46 }
 0x256   : > { %v5052_v50 = vadd.f32 1.0, %v10282_v6  ;;  %v4734_v33 = vmul.f32 1.442695, %v4575_v48  ;;  %v6053_v12 = vadd.f32 %v10125_v42, %v5982_v37  ;;  %v5029_v56 = vadd.f32 1.0, %v5028_v10 }
 0x257   : > { %7689 = vlog2.f32 %v5070_v0  ;;  %v2474_v25 = vadd.f32 %v7224_v57, %v7152_v55  ;;  %v6051_v7 = vadd.f32 %v10125_v42, %v5980_v40  ;;  %v5675_v32 = vrot.slane %v5674_v54, 2 }
 0x258   : > { %7691 = vlog2.f32 %v5052_v50  ;;  %v3915_v35 = vrot.slane %v3625_v51, %v8587_v47  ;;  %v5691_v44 = vrot.slane %v5690_v23, 1  ;;  %vm10293_vm7 = vcmp.lt.f32.partialorder %v5049_v60, 0.0004427343 }
 0x259   : > { %vm4633_vm9 = vcmp.gt.f32.partialorder %v10146_v49, 20.0  ;;  %v5031_v13 = vand.u32 2147483647, %v10249_v63  ;;  %v2466_v58 = vadd.f32 %v2465_v34, %v2152_v20  ;;  %v6201_v45 = vrot.slane %v6051_v7, 3  ;;  %v7893_v34 = vld [vmem:[%s8016_s28 + $0x10] sm:$0xff] }
 0x25a   : > { %v5048_v46 = vmul.f32 %v10244_v21, %v5047_v52  ;;  %7693 = vpow2.f32 %v4734_v33  ;;  %v4730_v48 = vmul.f32 1.442695, %v4573_v27  ;;  %v6205_v57 = vrot.slane %v6053_v12, 1 }
 0x25b   : > { %v7682_v55 = vpop.eup %7681  ;;  %v5030_v37 = vmul.f32 %v10249_v63, %v5029_v56  ;;  %v5073_v10 = vmul.f32 -0.5, %v10277_v39  ;;  %v10302_v5 = vadd.f32 %v3915_v35, %v2474_v25  ;;  %v6202_v60 = vsel %vm6171_vm12, %v6201_v45, %v10190_v28 }
 0x25c   : > { %v10304_v51 = vpop.eup %7683  ;;  %v5676_v0 = vadd.f32 %v5675_v32, %v5674_v54  ;;  %v5045_v40 = vmul.f32 0.6931472, %v7682_v55  ;;  %7695 = vpow2.f32 %v4730_v48  ;;  %v6204_v21 = vsel %vm6174_vm13, %v6203_v24, %v6202_v60  ;;  %v11643_v32 = vld [vmem:[#allocation43_spill] sm:$0xff] }
 0x25d   : > { %v5692_v27 = vadd.f32 %v5691_v44, %v5690_v23  ;;  %vm10309_vm10 = vcmp.lt.f32.partialorder %v5031_v13, 0.0004427343  ;;  %v4578_v63 = vmin.f32 %v10302_v5, 20.0  ;;  %v7686_v50 = vpop.eup %7685  ;;  %v6206_v33 = vsel %vm6177_vm14, %v6205_v57, %v6204_v21 }
 0x25e   : > { %v5051_v20 = vsel %vm10293_vm7, %v5048_v46, %v5045_v40  ;;  %v5076_v28 = vand.u32 2147483647, %v10277_v39  ;;  %v5055_v54 = vmul.f32 -0.5, %v10282_v6  ;;  %v10320_v12 = vadd.f32 %v7893_v34, %v6206_v33  ;;  %v11644_v40 = vld [vmem:[#allocation16_spill] sm:$0xff] }
 0x25f   : > { %v5403_v24 = vsel %vm4635_vm5, %v10129_v31, %v5051_v20  ;;  %v5027_v23 = vmul.f32 0.6931472, %v7686_v50  ;;  %vm4638_vm15 = vcmp.gt.f32.partialorder %v10196_v14, 20.0  ;;  %v5074_v56 = vadd.f32 1.0, %v5073_v10  ;;  %v10326_v25 = vpop.eup %7687 }
 0x260   : > { %v5677_v7 = vrot.slane %v5676_v0, 1  ;;  %v5467_v35 = vmul.f32 %v11643_v32, %v5403_v24  ;;  %vm4636_vm1 = vcmp.gt.f32.partialorder %v10198_v11, 20.0  ;;  %v5058_v44 = vand.u32 2147483647, %v10282_v6  ;;  %v7225_v32 = vpop.f32.mrf.mxu1 }
 0x261   : > { %v4740_v29 = vmul.f32 1.442695, %v4578_v63  ;;  %v6295_v13 = vmin.f32 %v10320_v12, 20.0  ;;  %v5985_v45 = vmul.f32 %v10102_v61, %v5692_v27  ;;  %v5033_v31 = vsel %vm10309_vm10, %v5030_v37, %v5027_v23 }
 0x262   : > { %v3907_v46 = vrot.slane %v11638_v62, %v8587_v47  ;;  %v5693_v48 = vsel %vm668_vm0, %v5467_v35, 0.0  ;;  %v5401_v55 = vsel %vm4633_vm9, %v10146_v49, %v5033_v31  ;;  %v5056_v57 = vadd.f32 1.0, %v5055_v54  ;;  %v11649_v35 = vld [vmem:[#allocation59_spill] sm:$0xff] }
 0x263   : > { %7697 = vpow2.f32 %v4740_v29  ;;  %v6313_v10 = vmul.f32 1.442695, %v6295_v13  ;;  %v5694_v60 = vrot.slane %v5693_v48, 4  ;;  %v5465_v21 = vmul.f32 %v11644_v40, %v5401_v55  ;;  %v11650_v55 = vld [vmem:[#allocation47_spill] sm:$0xff] }
 0x264   : > { %v10342_v63 = vadd.f32 %v3907_v46, %v2466_v58  ;;  %v7690_v27 = vpop.eup %7689  ;;  %v5678_v52 = vadd.f32 %v5677_v7, %v5676_v0  ;;  %v5075_v37 = vmul.f32 %v10277_v39, %v5074_v56  ;;  %vm10345_vm2 = vcmp.lt.f32.partialorder %v5076_v28, 0.0004427343  ;;  %v7153_v7 = vpop.f32.mrf.mxu0  ;;  %v11651_v40 = vld [vmem:[#allocation7_spill] sm:$0xff] }
 0x265   : > { %vm10349_vm3 = vcmp.lt.f32.partialorder %v5058_v44, 0.0004427343  ;;  %v7692_v49 = vpop.eup %7691  ;;  %7699 = vpow2.f32 %v6313_v10  ;;  %v5695_v33 = vadd.f32 %v5694_v60, %v5693_v48  ;;  %v5679_v20 = vsel %vm668_vm0, %v5465_v21, 0.0 }
 0x266   : > { %v5072_v54 = vmul.f32 0.6931472, %v7690_v27  ;;  %v10355_v58 = vadd.f32 %v10125_v42, %v5985_v45  ;;  %v5680_v0 = vrot.slane %v5679_v20, 4  ;;  %v5054_v34 = vmul.f32 0.6931472, %v7692_v49 }
 0x267   : > { %v5057_v39 = vmul.f32 %v10282_v6, %v5056_v57  ;;  %v10358_v28 = vpop.eup %7693  ;;  %v5696_v24 = vrot.slane %v5695_v33, 2  ;;  %v4576_v56 = vmin.f32 %v10342_v63, 20.0  ;;  %v3627_v44 = vcombine.high %v11649_v35, %v11649_v35 }
 0x268   : > { %v5078_v23 = vsel %vm10345_vm2, %v5075_v37, %v5072_v54  ;;  %v5681_v29 = vadd.f32 %v5680_v0, %v5679_v20  ;;  %v5079_v45 = vadd.f32 1.0, %v10358_v28  ;;  %v5983_v46 = vmul.f32 %v10102_v61, %v5678_v52  ;;  %v11652_v54 = vld [vmem:[#allocation73_spill] sm:$0xff] }
 0x269   : > { %v5406_v13 = vsel %vm4638_vm15, %v10196_v14, %v5078_v23  ;;  %v5060_v6 = vsel %vm10349_vm3, %v5057_v39, %v5054_v34  ;;  %v10371_v31 = vpop.eup %7695  ;;  %v5697_v48 = vadd.f32 %v5696_v24, %v5695_v33  ;;  %v2477_v14 = vadd.f32 %v7225_v32, %v7153_v7  ;;  %v11653_v39 = vld [vmem:[#allocation74_spill] sm:$0xff] }
 0x26a   : > { %v5470_v57 = vmul.f32 %v11650_v55, %v5406_v13  ;;  %v5404_v10 = vsel %vm4636_vm1, %v10198_v11, %v5060_v6  ;;  %v5682_v60 = vrot.slane %v5681_v29, 2  ;;  %7701 = vlog2.f32 %v5079_v45 }
 0x26b   : > { %v5468_v21 = vmul.f32 %v11651_v40, %v5404_v10  ;;  %v5698_v27 = vrot.slane %v5697_v48, 1  ;;  %v5061_v62 = vadd.f32 1.0, %v10371_v31  ;;  %v4736_v50 = vmul.f32 1.442695, %v4576_v56  ;;  %v2155_v56 = vpop.f32.mrf.mxu0 }
 0x26c   : > { %v5714_v37 = vsel %vm668_vm0, %v5470_v57, 0.0  ;;  %v5683_v49 = vadd.f32 %v5682_v60, %v5681_v29  ;;  %v3919_v20 = vrot.slane %v3627_v44, %v8587_v47  ;;  %v10384_v0 = vadd.f32 1.0, %v11652_v54  ;;  %v2468_v29 = vpop.f32.mrf.mxu1 }
 0x26d   : > { %v5715_v52 = vrot.slane %v5714_v37, 4  ;;  %v5700_v33 = vsel %vm668_vm0, %v5468_v21, 0.0  ;;  %v5699_v11 = vadd.f32 %v5698_v27, %v5697_v48  ;;  %7703 = vlog2.f32 %v5061_v62 }
 0x26e   : > { %v5701_v34 = vrot.slane %v5700_v33, 4  ;;  %v10387_v24 = vadd.f32 1.0, %v11653_v39  ;;  %v5684_v23 = vrot.slane %v5683_v49, 1  ;;  %v5082_v7 = vmul.f32 -0.5, %v10358_v28 }
 0x26f   : > { %v10390_v32 = vadd.f32 %v3919_v20, %v2477_v14  ;;  %v5716_v6 = vadd.f32 %v5715_v52, %v5714_v37  ;;  %v5064_v45 = vmul.f32 -0.5, %v10371_v31  ;;  %7705 = vpow2.f32 %v4736_v50  ;;  %v7156_v50 = vpop.f32.mrf.mxu0 }
 0x270   : > { %v10392_v13 = vpop.eup %7697  ;;  %v5702_v44 = vadd.f32 %v5701_v34, %v5700_v33  ;;  %v6209_v48 = vrot.slane %v10355_v58, 6  ;;  %v6054_v55 = vadd.f32 %v10125_v42, %v5983_v46  ;;  %v5986_v57 = vmul.f32 %v10102_v61, %v5699_v11 }
 0x271   : > { %v5685_v10 = vadd.f32 %v5684_v23, %v5683_v49  ;;  %v5085_v40 = vand.u32 2147483647, %v10358_v28  ;;  %v5106_v21 = vadd.f32 1.0, %v10392_v13  ;;  %v2469_v14 = vadd.f32 %v2468_v29, %v2155_v56  ;;  %v7228_v49 = vpop.f32.mrf.mxu1  ;;  %v11659_v23 = vld [vmem:[#allocation53_spill] sm:$0xff] }
 0x272   : > { %v5703_v60 = vrot.slane %v5702_v44, 2  ;;  %v10400_v27 = vpop.eup %7699  ;;  %vm4639_vm5 = vcmp.gt.f32.partialorder %v10255_v59, 20.0  ;;  %v5083_v62 = vadd.f32 1.0, %v5082_v7  ;;  %v5067_v58 = vand.u32 2147483647, %v10371_v31 }
 0x273   : > { %v5984_v37 = vmul.f32 %v10102_v61, %v5685_v10  ;;  %v3911_v46 = vrot.slane %v11649_v35, %v8587_v47  ;;  %v6343_v52 = vadd.f32 1.0, %v10400_v27  ;;  %v5717_v33 = vrot.slane %v5716_v6, 2 }
 0x274   : > { %v5065_v20 = vadd.f32 1.0, %v5064_v45  ;;  %v4579_v54 = vmin.f32 %v10390_v32, 20.0  ;;  %v6057_v11 = vadd.f32 %v10125_v42, %v5986_v57  ;;  %v5704_v39 = vadd.f32 %v5703_v60, %v5702_v44 }
 0x275   : > { %v6055_v34 = vadd.f32 %v10125_v42, %v5984_v37  ;;  %7707 = vlog2.f32 %v5106_v21  ;;  %vm10411_vm7 = vcmp.lt.f32.partialorder %v5085_v40, 0.0004427343  ;;  %vm4637_vm9 = vcmp.gt.f32.partialorder %v10266_v15, 20.0 }
 0x276   : > { %7709 = vlog2.f32 %v6343_v52  ;;  %v10416_v35 = vadd.f32 %v3911_v46, %v2469_v14  ;;  %v2490_v7 = vadd.f32 %v7228_v49, %v7156_v50  ;;  %v5705_v29 = vrot.slane %v5704_v39, 1 }
 0x277   : > { %v6207_v56 = vrot.slane %v6055_v34, 7  ;;  %v5084_v45 = vmul.f32 %v10358_v28, %v5083_v62  ;;  %vm10419_vm10 = vcmp.lt.f32.partialorder %v5067_v58, 0.0004427343  ;;  %v7702_v44 = vpop.eup %7701  ;;  %v5718_v10 = vadd.f32 %v5717_v33, %v5716_v6 }
 0x278   : > { %v5066_v60 = vmul.f32 %v10371_v31, %v5065_v20  ;;  %v5109_v40 = vmul.f32 -0.5, %v10392_v13  ;;  %v4742_v21 = vmul.f32 1.442695, %v4579_v54  ;;  %v6211_v37 = vrot.slane %v6057_v11, 5  ;;  %v2481_v20 = vpop.f32.mrf.mxu1 }
 0x279   : > { %v6208_v14 = vsel %vm6159_vm4, %v6207_v56, %v6054_v55  ;;  %v5706_v46 = vadd.f32 %v5705_v29, %v5704_v39  ;;  %v5081_v50 = vmul.f32 0.6931472, %v7702_v44  ;;  %v5112_v28 = vand.u32 2147483647, %v10392_v13  ;;  %v2168_v55 = vpop.f32.mrf.mxu0  ;;  %v11658_v44 = vld [vmem:[#allocation18_spill] sm:$0xff] }
 0x27a   : > { %v6210_v49 = vsel %vm6162_vm6, %v6209_v48, %v6208_v14  ;;  %7711 = vpow2.f32 %v4742_v21  ;;  %v4577_v62 = vmin.f32 %v10416_v35, 20.0  ;;  %v7704_v58 = vpop.eup %7703  ;;  %v6346_v6 = vmul.f32 -0.5, %v10400_v27 }
 0x27b   : > { %v5987_v31 = vmul.f32 %v10102_v61, %v5706_v46  ;;  %v6212_v52 = vsel %vm6165_vm8, %v6211_v37, %v6210_v49  ;;  %v5087_v33 = vsel %vm10411_vm7, %v5084_v45, %v5081_v50  ;;  %v6349_v54 = vand.u32 2147483647, %v10400_v27 }
 0x27c   : > { %v5407_v48 = vsel %vm4639_vm5, %v10255_v59, %v5087_v33  ;;  %v5063_v11 = vmul.f32 0.6931472, %v7704_v58  ;;  %v4738_v34 = vmul.f32 1.442695, %v4577_v62  ;;  %v10438_v39 = vpop.eup %7705  ;;  %v5719_v56 = vrot.slane %v5718_v10, 1  ;;  %v11660_v33 = vld [vmem:[#allocation49_spill] sm:$0xff] }
 0x27d   : > { %v6058_v29 = vadd.f32 %v10125_v42, %v5987_v31  ;;  %v5471_v21 = vmul.f32 %v11658_v44, %v5407_v48  ;;  %vm4642_vm15 = vcmp.gt.f32.partialorder %v10302_v5, 20.0  ;;  %v3626_v45 = vcombine.high %v11659_v23, %v11659_v23 }
 0x27e   : > { %vm6303_vm1 = vcmp.gt.f32.partialorder %v10320_v12, 20.0  ;;  %v5069_v37 = vsel %vm10419_vm10, %v5066_v60, %v5063_v11  ;;  %v5110_v59 = vadd.f32 1.0, %v5109_v40  ;;  %v5088_v14 = vadd.f32 1.0, %v10438_v39 }
 0x27f   : > { %v2482_v46 = vadd.f32 %v2481_v20, %v2168_v55  ;;  %v6213_v50 = vrot.slane %v6058_v29, 4  ;;  %v5721_v49 = vsel %vm668_vm0, %v5471_v21, 0.0  ;;  %v5405_v62 = vsel %vm4637_vm9, %v10266_v15, %v5069_v37 }
 0x280   : > { %7713 = vpow2.f32 %v4738_v34  ;;  %v6347_v58 = vadd.f32 1.0, %v6346_v6  ;;  %v5722_v31 = vrot.slane %v5721_v49, 4  ;;  %v5469_v48 = vmul.f32 %v11660_v33, %v5405_v62  ;;  %v11663_v62 = vld [vmem:[#allocation50_spill] sm:$0xff] }
 0x281   : > { %7715 = vlog2.f32 %v5088_v14  ;;  %vm10454_vm2 = vcmp.lt.f32.partialorder %v6349_v54, 0.0004427343  ;;  %v10459_v60 = vsel %vm6168_vm11, %v6213_v50, %v6212_v52  ;;  %v3931_v40 = vrot.slane %v3626_v45, %v8587_v47 }
 0x282   : > { %v3923_v55 = vrot.slane %v11659_v23, %v8587_v47  ;;  %v7708_v20 = vpop.eup %7707  ;;  %v5720_v15 = vadd.f32 %v5719_v56, %v5718_v10  ;;  %v5723_v11 = vadd.f32 %v5722_v31, %v5721_v49  ;;  %v5707_v6 = vsel %vm668_vm0, %v5469_v48, 0.0 }
 0x283   : > { %v5111_v34 = vmul.f32 %v10392_v13, %v5110_v59  ;;  %v7710_v29 = vpop.eup %7709  ;;  %v5708_v54 = vrot.slane %v5707_v6, 4  ;;  %v5108_v44 = vmul.f32 0.6931472, %v7708_v20  ;;  %v10466_v21 = vadd.f32 %v3931_v40, %v2490_v7 }
 0x284   : > { %v10468_v37 = vadd.f32 %v3923_v55, %v2482_v46  ;;  %v6345_v52 = vmul.f32 0.6931472, %v7710_v29  ;;  %v6348_v45 = vmul.f32 %v10400_v27, %v6347_v58  ;;  %v5724_v14 = vrot.slane %v5723_v11, 2  ;;  %v7229_v29 = vpop.f32.mrf.mxu1 }
 0x285   : > { %vm5113_vm3 = vcmp.lt.f32.partialorder %v5112_v28, 0.0004427343  ;;  %v5709_v23 = vadd.f32 %v5708_v54, %v5707_v6  ;;  %v5091_v56 = vmul.f32 -0.5, %v10438_v39  ;;  %v4582_v50 = vmin.f32 %v10466_v21, 20.0 }
 0x286   : > { %v5114_v10 = vsel %vm5113_vm3, %v5111_v34, %v5108_v44  ;;  %v6351_v13 = vsel %vm10454_vm2, %v6348_v45, %v6345_v52  ;;  %v5725_v59 = vadd.f32 %v5724_v14, %v5723_v11  ;;  %v4580_v46 = vmin.f32 %v10468_v37, 20.0  ;;  %v7157_v34 = vpop.f32.mrf.mxu0 }
 0x287   : > { %v5410_v7 = vsel %vm4642_vm15, %v10302_v5, %v5114_v10  ;;  %v10479_v27 = vpop.eup %7711  ;;  %v6399_v28 = vsel %vm6303_vm1, %v10320_v12, %v6351_v13  ;;  %v5710_v49 = vrot.slane %v5709_v23, 2  ;;  %v4748_v31 = vmul.f32 1.442695, %v4582_v50  ;;  %v11664_v5 = vld [vmem:[#allocation48_spill] sm:$0xff] }
 0x288   : > { %v5474_v58 = vmul.f32 %v11663_v62, %v5410_v7  ;;  %7717 = vrcp.f32 %v10384_v0  ;;  %6407 = vst.msk [vmem:[%s9912_s30 + $0x10] sm:$0xff] %vm668_vm0, %v6399_v28  ;;  %v5726_v33 = vrot.slane %v5725_v59, 1  ;;  %v5115_v48 = vadd.f32 1.0, %v10479_v27  ;;  %v2484_v28 = vpop.f32.mrf.mxu1 }
 0x289   : > { %v11665_v57 = vcombine.high %v11664_v5, %v11664_v5  ;;  %v5711_v55 = vadd.f32 %v5710_v49, %v5709_v23  ;;  %v5092_v12 = vadd.f32 1.0, %v5091_v56  ;;  %7719 = vpow2.f32 %v4748_v31 }
 0x28a   : > { %v5742_v20 = vsel %vm668_vm0, %v5474_v58, 0.0  ;;  %v10498_v0 = vrot.slane %v3644_v17, %v8522_v3  ;;  %v5727_v11 = vadd.f32 %v5726_v33, %v5725_v59  ;;  %7721 = vlog2.f32 %v5115_v48 }
 0x28b   : > { %v3624_v40 = vrot.slane %v11665_v57, %v8522_v3  ;;  %v5743_v6 = vrot.slane %v5742_v20, 4  ;;  %v5989_v54 = vmul.f32 %v10102_v61, %v5720_v15  ;;  %v5712_v44 = vrot.slane %v5711_v55, 1 }
 0x28c   : > { %v5094_v52 = vand.u32 2147483647, %v10438_v39  ;;  %v4744_v45 = vmul.f32 1.442695, %v4580_v46  ;;  %7723 = vrcp.f32 %v10387_v24  ;;  %v5990_v23 = vmul.f32 %v10102_v61, %v5727_v11  ;;  %v2171_v46 = vpop.f32.mrf.mxu0 }
 0x28d   : > { %v10502_v14 = vpop.eup %7713  ;;  %v5744_v1 = vadd.f32 %v5743_v6, %v5742_v20  ;;  %v3628_v17 = vcombine.high %v3624_v40, %v3624_v40  ;;  %v5713_v56 = vadd.f32 %v5712_v44, %v5711_v55  ;;  %vm4640_vm5 = vcmp.gt.f32.partialorder %v10342_v63, 20.0  ;;  %v11666_v55 = vld [vmem:[#allocation15_spill] sm:$0xff] }
 0x28e   : > { %v7716_v10 = vpop.eup %7715  ;;  %v5093_v50 = vmul.f32 %v10438_v39, %v5092_v12  ;;  %v5097_v15 = vadd.f32 1.0, %v10502_v14  ;;  %v5118_v59 = vmul.f32 -0.5, %v10479_v27  ;;  %7725 = vpow2.f32 %v4744_v45 }
 0x28f   : > { %v5090_v13 = vmul.f32 0.6931472, %v7716_v10  ;;  %v2493_v7 = vadd.f32 %v7229_v29, %v7157_v34  ;;  %v6060_v24 = vadd.f32 %v10125_v42, %v5989_v54  ;;  %v5988_v49 = vmul.f32 %v10102_v61, %v5713_v56  ;;  %v7160_v54 = vpop.f32.mrf.mxu0 }
 0x290   : > { %vm5095_vm7 = vcmp.lt.f32.partialorder %v5094_v52, 0.0004427343  ;;  %7727 = vlog2.f32 %v5097_v15  ;;  %v6061_v62 = vadd.f32 %v10125_v42, %v5990_v23  ;;  %v5745_v58 = vrot.slane %v5744_v1, 2 }
 0x291   : > { %v5096_v31 = vsel %vm5095_vm7, %v5093_v50, %v5090_v13  ;;  %v3935_v39 = vrot.slane %v3628_v17, %v8587_v47  ;;  %v10515_v33 = vadd.f32 1.0, %v9762_v19  ;;  %v6059_v48 = vadd.f32 %v10125_v42, %v5988_v49  ;;  %v7232_v42 = vpop.f32.mrf.mxu1  ;;  %v7894_v49 = vld [vmem:[%s8016_s28 + $0x18] sm:$0xff] }
 0x292   : > { %v5408_v5 = vsel %vm4640_vm5, %v10342_v63, %v5096_v31  ;;  %v2485_v57 = vadd.f32 %v2484_v28, %v2171_v46  ;;  %v5119_v20 = vadd.f32 1.0, %v5118_v59  ;;  %v5121_v12 = vand.u32 2147483647, %v10479_v27 }
 0x293   : > { %v5472_v61 = vmul.f32 %v11666_v55, %v5408_v5  ;;  %v10523_v11 = vadd.f32 %v3935_v39, %v2493_v7  ;;  %v6217_v6 = vrot.slane %v6060_v24, 2  ;;  %v6215_v34 = vrot.slane %v6059_v48, 3 }
 0x294   : > { %v5100_v29 = vmul.f32 -0.5, %v10502_v14  ;;  %v3927_v19 = vrot.slane %v3624_v40, %v8587_v47  ;;  %v6219_v44 = vrot.slane %v6061_v62, 1  ;;  %v5746_v52 = vadd.f32 %v5745_v58, %v5744_v1 }
 0x295   : > { %v5728_v63 = vsel %vm668_vm0, %v5472_v61, 0.0  ;;  %v3674_v45 = vcombine.high %v9966_v2, %v9966_v2  ;;  %v10530_v23 = vpop.eup %7717  ;;  %v6216_v17 = vsel %vm6171_vm12, %v6215_v34, %v10459_v60  ;;  %v4583_v56 = vmin.f32 %v10523_v11, 20.0 }
 0x296   : > { %v5729_v10 = vrot.slane %v5728_v63, 4  ;;  %v10535_v50 = vadd.f32 %v3927_v19, %v2485_v57  ;;  %v10537_v40 = vpop.eup %7719  ;;  %v6218_v1 = vsel %vm6174_vm13, %v6217_v6, %v6216_v17  ;;  %v5120_v15 = vmul.f32 %v10479_v27, %v5119_v20 }
 0x297   : > { %vm10541_vm9 = vcmp.lt.f32.partialorder %v5121_v12, 0.0004427343  ;;  %v2506_v59 = vadd.f32 %v7232_v42, %v7160_v54  ;;  %v7722_v7 = vpop.eup %7721  ;;  %v6220_v46 = vsel %vm6177_vm14, %v6219_v44, %v6218_v1  ;;  %v5103_v28 = vand.u32 2147483647, %v10502_v14  ;;  %v11671_v42 = vld [vmem:[#allocation51_spill] sm:$0xff]  ;;  %v2184_v1 = vpop.f32.mrf.mxu0 }
 0x298   : > { %v5730_v60 = vadd.f32 %v5729_v10, %v5728_v63  ;;  %v5142_v24 = vadd.f32 1.0, %v10537_v40  ;;  %v10549_v62 = vadd.f32 %v7894_v49, %v6220_v46  ;;  %v5117_v58 = vmul.f32 0.6931472, %v7722_v7  ;;  %v10585_v49 = vld [vmem:[%s11397_s11] ss:$0 sm:$0xff] }
 0x299   : > { %v5101_v31 = vadd.f32 1.0, %v5100_v29  ;;  %v3947_v27 = vrot.slane %v3674_v45, %v8587_v47  ;;  %v10552_v39 = vpop.eup %7723  ;;  %v5747_v48 = vrot.slane %v5746_v52, 1  ;;  %v4750_v5 = vmul.f32 1.442695, %v4583_v56 }
 0x29a   : > { %7729 = vlog2.f32 %v5142_v24  ;;  %v4581_v57 = vmin.f32 %v10535_v50, 20.0  ;;  %v6296_v55 = vmin.f32 %v10549_v62, 20.0  ;;  %vm4643_vm10 = vcmp.gt.f32.partialorder %v10390_v32, 20.0 }
 0x29b   : > { %v5123_v61 = vsel %vm10541_vm9, %v5120_v15, %v5117_v58  ;;  %v10559_v20 = vadd.f32 %v3947_v27, %v2506_v59  ;;  %v10561_v12 = vpop.eup %7725  ;;  %v5731_v6 = vrot.slane %v5730_v60, 2  ;;  %vm4641_vm15 = vcmp.gt.f32.partialorder %v10416_v35, 20.0 }
 0x29c   : > { %v5411_v34 = vsel %vm4643_vm10, %v10390_v32, %v5123_v61  ;;  %vm10565_vm1 = vcmp.lt.f32.partialorder %v5103_v28, 0.0004427343  ;;  %v6315_v54 = vmul.f32 1.442695, %v6296_v55  ;;  %v5102_v63 = vmul.f32 %v10502_v14, %v5101_v31  ;;  %v2497_v32 = vpop.f32.mrf.mxu1  ;;  %v11672_v31 = vld [vmem:[#allocation54_spill] sm:$0xff] }
 0x29d   : > { %v7728_v19 = vpop.eup %7727  ;;  %v5475_v44 = vmul.f32 %v11671_v42, %v5411_v34  ;;  %v5124_v45 = vadd.f32 1.0, %v10561_v12  ;;  %v5748_v17 = vadd.f32 %v5747_v48, %v5746_v52  ;;  %7731 = vpow2.f32 %v4750_v5 }
 0x29e   : > { %v5099_v10 = vmul.f32 0.6931472, %v7728_v19  ;;  %v4746_v56 = vmul.f32 1.442695, %v4581_v57  ;;  %7733 = vpow2.f32 %v6315_v54  ;;  %v5145_v13 = vmul.f32 -0.5, %v10537_v40  ;;  %v7233_v34 = vpop.f32.mrf.mxu1 }
 0x29f   : > { %v5749_v15 = vsel %vm668_vm0, %v5475_v44, 0.0  ;;  %v4586_v59 = vmin.f32 %v10559_v20, 20.0  ;;  %v5732_v7 = vadd.f32 %v5731_v6, %v5730_v60  ;;  %7735 = vlog2.f32 %v5124_v45  ;;  %v7161_v6 = vpop.f32.mrf.mxu0 }
 0x2a0   : > { %v5750_v46 = vrot.slane %v5749_v15, 4  ;;  %v5105_v14 = vsel %vm10565_vm1, %v5102_v63, %v5099_v10  ;;  %7737 = vrcp.f32 %v10515_v33  ;;  %v4404_v52 = vadd.f32 1.0, %v9767_v38 }
 0x2a1   : > { %v5409_v28 = vsel %vm4641_vm15, %v10416_v35, %v5105_v14  ;;  %v2498_v24 = vadd.f32 %v2497_v32, %v2184_v1  ;;  %v5993_v60 = vmul.f32 %v10585_v49, %v5748_v17  ;;  %7739 = vpow2.f32 %v4746_v56 }
 0x2a2   : > { %v5751_v58 = vadd.f32 %v5750_v46, %v5749_v15  ;;  %v5473_v27 = vmul.f32 %v11672_v31, %v5409_v28  ;;  %v5146_v48 = vadd.f32 1.0, %v5145_v13  ;;  %v5148_v33 = vand.u32 2147483647, %v10537_v40  ;;  %v2500_v28 = vpop.f32.mrf.mxu1 }
 0x2a3   : > { %v4756_v38 = vmul.f32 1.442695, %v4586_v59  ;;  %v3939_v5 = vrot.slane %v9966_v2, %v8587_v47  ;;  %v5733_v35 = vrot.slane %v5732_v7, 1  ;;  %v5127_v61 = vmul.f32 -0.5, %v10561_v12  ;;  %v10601_v2 = vld [vmem:[%s11398_s12] ss:$0 sm:$0xff] }
 0x2a4   : > { %v5752_v57 = vrot.slane %v5751_v58, 2  ;;  %v5735_v55 = vsel %vm668_vm0, %v5473_v27, 0.0  ;;  %v3676_v54 = vcombine.high %v10498_v0, %v10498_v0  ;;  %v10604_v42 = vadd.f32 %v10601_v2, %v5993_v60 }
 0x2a5   : > { %v5736_v29 = vrot.slane %v5735_v55, 4  ;;  %7741 = vpow2.f32 %v4756_v38  ;;  %v10594_v19 = vadd.f32 %v3939_v5, %v2498_v24  ;;  %vm4646_vm2 = vcmp.gt.f32.partialorder %v10466_v21, 20.0  ;;  %v11673_v5 = vld [vmem:[#allocation55_spill] sm:$0xff] }
 0x2a6   : > { %7743 = vrcp.f32 %v4404_v52  ;;  %v5753_v44 = vadd.f32 %v5752_v57, %v5751_v58  ;;  %v5147_v17 = vmul.f32 %v10537_v40, %v5146_v48  ;;  %v2509_v56 = vadd.f32 %v7233_v34, %v7161_v6  ;;  %v2187_v52 = vpop.f32.mrf.mxu0 }
 0x2a7   : > { %v7730_v63 = vpop.eup %7729  ;;  %v5737_v45 = vadd.f32 %v5736_v29, %v5735_v55  ;;  %v4584_v10 = vmin.f32 %v10594_v19, 20.0  ;;  %v5734_v1 = vadd.f32 %v5733_v35, %v5732_v7  ;;  %vm5149_vm3 = vcmp.lt.f32.partialorder %v5148_v33, 0.0004427343 }
 0x2a8   : > { %v5754_v32 = vrot.slane %v5753_v44, 1  ;;  %v5144_v15 = vmul.f32 0.6931472, %v7730_v63  ;;  %vm4644_vm5 = vcmp.gt.f32.partialorder %v10468_v37, 20.0  ;;  %v5128_v59 = vadd.f32 1.0, %v5127_v61 }
 0x2a9   : > { %v5738_v13 = vrot.slane %v5737_v45, 2  ;;  %v4752_v46 = vmul.f32 1.442695, %v4584_v10  ;;  %v3951_v14 = vrot.slane %v3676_v54, %v8587_v47  ;;  %v6223_v24 = vrot.slane %v10604_v42, 6 }
 0x2aa   : > { %v5755_v60 = vadd.f32 %v5754_v32, %v5753_v44  ;;  %v5150_v40 = vsel %vm5149_vm3, %v5147_v17, %v5144_v15  ;;  %v5130_v58 = vand.u32 2147483647, %v10561_v12  ;;  %v10613_v31 = vpop.eup %7731  ;;  %v5991_v38 = vmul.f32 %v10585_v49, %v5734_v1  ;;  %v7164_v15 = vpop.f32.mrf.mxu0 }
 0x2ab   : > { %v5739_v7 = vadd.f32 %v5738_v13, %v5737_v45  ;;  %v5414_v27 = vsel %vm4646_vm2, %v10466_v21, %v5150_v40  ;;  %7745 = vpow2.f32 %v4752_v46  ;;  %v10618_v48 = vadd.f32 %v3951_v14, %v2509_v56  ;;  %v10620_v33 = vpop.eup %7733  ;;  %v7236_v13 = vpop.f32.mrf.mxu1 }
 0x2ac   : > { %v5478_v35 = vmul.f32 %v11673_v5, %v5414_v27  ;;  %v5151_v57 = vadd.f32 1.0, %v10613_v31  ;;  %v2501_v55 = vadd.f32 %v2500_v28, %v2187_v52  ;;  %v7736_v61 = vpop.eup %7735  ;;  %v6352_v6 = vadd.f32 1.0, %v10620_v33 }
 0x2ad   : > { %v5740_v34 = vrot.slane %v5739_v7, 1  ;;  %v5129_v29 = vmul.f32 %v10561_v12, %v5128_v59  ;;  %v3943_v21 = vrot.slane %v10498_v0, %v8587_v47  ;;  %v10629_v54 = vpop.eup %7737  ;;  %v5994_v44 = vmul.f32 %v10585_v49, %v5755_v60 }
 0x2ae   : > { %v5770_v63 = vsel %vm668_vm0, %v5478_v35, 0.0  ;;  %v5126_v45 = vmul.f32 0.6931472, %v7736_v61  ;;  %7747 = vlog2.f32 %v5151_v57  ;;  %v10633_v17 = vpop.eup %7739  ;;  %vm5131_vm7 = vcmp.lt.f32.partialorder %v5130_v58, 0.0004427343  ;;  %v11674_v58 = vld [vmem:[#allocation56_spill] sm:$0xff] }
 0x2af   : > { %7749 = vlog2.f32 %v6352_v6  ;;  %v5741_v10 = vadd.f32 %v5740_v34, %v5739_v7  ;;  %v4587_v56 = vmin.f32 %v10618_v48, 20.0  ;;  %v6062_v12 = vadd.f32 %v10601_v2, %v5991_v38 }
 0x2b0   : > { %v5771_v1 = vrot.slane %v5770_v63, 4  ;;  %v5132_v32 = vsel %vm5131_vm7, %v5129_v29, %v5126_v45  ;;  %v10637_v0 = vadd.f32 %v3943_v21, %v2501_v55  ;;  %v6355_v59 = vmul.f32 -0.5, %v10620_v33 }
 0x2b1   : > { %v5992_v46 = vmul.f32 %v10585_v49, %v5741_v10  ;;  %v5412_v14 = vsel %vm4644_vm5, %v10468_v37, %v5132_v32  ;;  %v5154_v52 = vmul.f32 -0.5, %v10613_v31  ;;  %v6065_v60 = vadd.f32 %v10601_v2, %v5994_v44 }
 0x2b2   : > { %v10645_v28 = vpop.eup %7741  ;;  %v5772_v40 = vadd.f32 %v5771_v1, %v5770_v63  ;;  %v5476_v7 = vmul.f32 %v11674_v58, %v5412_v14  ;;  %v5133_v27 = vadd.f32 1.0, %v10633_v17  ;;  %v4758_v35 = vmul.f32 1.442695, %v4587_v56 }
 0x2b3   : > { %v10650_v38 = vpop.eup %7743  ;;  %v6063_v5 = vadd.f32 %v10601_v2, %v5992_v46  ;;  %v2522_v57 = vadd.f32 %v7236_v13, %v7164_v15  ;;  %v3675_v37 = vcombine.high %v10272_v30, %v10272_v30  ;;  %v6358_v55 = vand.u32 2147483647, %v10620_v33 }
 0x2b4   : > { %v5756_v61 = vsel %vm668_vm0, %v5476_v7, 0.0  ;;  %7751 = vlog2.f32 %v5133_v27  ;;  %v5178_v6 = vadd.f32 1.0, %v10645_v28  ;;  %v6356_v34 = vadd.f32 1.0, %v6355_v59 }
 0x2b5   : > { %v6221_v29 = vrot.slane %v6063_v5, 7  ;;  %v5757_v21 = vrot.slane %v5756_v61, 4  ;;  %v4585_v44 = vmin.f32 %v10637_v0, 20.0  ;;  %v6225_v63 = vrot.slane %v6065_v60, 5 }
 0x2b6   : > { %v5773_v45 = vrot.slane %v5772_v40, 2  ;;  %vm4647_vm9 = vcmp.gt.f32.partialorder %v10523_v11, 20.0  ;;  %v5155_v10 = vadd.f32 1.0, %v5154_v52  ;;  %7753 = vlog2.f32 %v5178_v6 }
 0x2b7   : > { %vm6304_vm10 = vcmp.gt.f32.partialorder %v10549_v62, 20.0  ;;  %v6222_v56 = vsel %vm6159_vm4, %v6221_v29, %v6062_v12  ;;  %v5758_v1 = vadd.f32 %v5757_v21, %v5756_v61  ;;  %v5157_v32 = vand.u32 2147483647, %v10613_v31  ;;  %v2513_v61 = vpop.f32.mrf.mxu1 }
 0x2b8   : > { %7755 = vpow2.f32 %v4758_v35  ;;  %v10663_v15 = vpop.eup %7745  ;;  %vm10665_vm15 = vcmp.lt.f32.partialorder %v6358_v55, 0.0004427343  ;;  %v6224_v59 = vsel %vm6162_vm6, %v6223_v24, %v6222_v56  ;;  %v5136_v46 = vmul.f32 -0.5, %v10633_v17 }
 0x2b9   : > { %v3963_v14 = vrot.slane %v3675_v37, %v8587_v47  ;;  %v6357_v12 = vmul.f32 %v10620_v33, %v6356_v34  ;;  %v5759_v52 = vrot.slane %v5758_v1, 2  ;;  %v10676_v60 = vsel %vm6165_vm8, %v6225_v63, %v6224_v59  ;;  %v2200_v37 = vpop.f32.mrf.mxu0 }
 0x2ba   : > { %v5160_v58 = vadd.f32 1.0, %v10663_v15  ;;  %v5774_v7 = vadd.f32 %v5773_v45, %v5772_v40  ;;  %v5156_v27 = vmul.f32 %v10613_v31, %v5155_v10  ;;  %v5181_v5 = vmul.f32 -0.5, %v10645_v28 }
 0x2bb   : > { %v4754_v42 = vmul.f32 1.442695, %v4585_v44  ;;  %v7748_v35 = vpop.eup %7747  ;;  %v5760_v24 = vadd.f32 %v5759_v52, %v5758_v1  ;;  %vm10681_vm1 = vcmp.lt.f32.partialorder %v5157_v32, 0.0004427343  ;;  %v10685_v33 = vadd.f32 %v3963_v14, %v2522_v57  ;;  %v11679_v52 = vld [vmem:[#allocation58_spill] sm:$0xff] }
 0x2bc   : > { %7757 = vlog2.f32 %v5160_v58  ;;  %v7750_v6 = vpop.eup %7749  ;;  %v5153_v34 = vmul.f32 0.6931472, %v7748_v35  ;;  %vm4645_vm2 = vcmp.gt.f32.partialorder %v10535_v50, 20.0  ;;  %v5137_v40 = vadd.f32 1.0, %v5136_v46 }
 0x2bd   : > { %v5139_v31 = vand.u32 2147483647, %v10633_v17  ;;  %7759 = vpow2.f32 %v4754_v42  ;;  %v6354_v29 = vmul.f32 0.6931472, %v7750_v6  ;;  %v5761_v21 = vrot.slane %v5760_v24, 1 }
 0x2be   : > { %v5184_v44 = vand.u32 2147483647, %v10645_v28  ;;  %v4590_v63 = vmin.f32 %v10685_v33, 20.0  ;;  %v5775_v45 = vrot.slane %v5774_v7, 1  ;;  %v5159_v57 = vsel %vm10681_vm1, %v5156_v27, %v5153_v34 }
 0x2bf   : > { %vm4650_vm3 = vcmp.gt.f32.partialorder %v10559_v20, 20.0  ;;  %v5182_v10 = vadd.f32 1.0, %v5181_v5  ;;  %v2514_v56 = vadd.f32 %v2513_v61, %v2200_v37  ;;  %v6360_v1 = vsel %vm10665_vm15, %v6357_v12, %v6354_v29 }
 0x2c0   : > { %v5762_v32 = vadd.f32 %v5761_v21, %v5760_v24  ;;  %v5415_v59 = vsel %vm4647_vm9, %v10523_v11, %v5159_v57  ;;  %v4764_v46 = vmul.f32 1.442695, %v4590_v63  ;;  %v6400_v14 = vsel %vm6304_vm10, %v10549_v62, %v6360_v1 }
 0x2c1   : > { %v5479_v58 = vmul.f32 %v11679_v52, %v5415_v59  ;;  %v5163_v27 = vmul.f32 -0.5, %v10663_v15  ;;  %v3955_v5 = vrot.slane %v10272_v30, %v8587_v47  ;;  %v7752_v42 = vpop.eup %7751  ;;  %6408 = vst.msk [vmem:[%s9912_s30 + $0x18] sm:$0xff] %vm668_vm0, %v6400_v14  ;;  %v5138_v12 = vmul.f32 %v10633_v17, %v5137_v40 }
 0x2c2   : > { %v5995_v13 = vmul.f32 %v10585_v49, %v5762_v32  ;;  %vm10710_vm5 = vcmp.lt.f32.partialorder %v5139_v31, 0.0004427343  ;;  %7761 = vpow2.f32 %v4764_v46  ;;  %v5135_v35 = vmul.f32 0.6931472, %v7752_v42 }
 0x2c3   : > { %v5777_v62 = vsel %vm668_vm0, %v5479_v58, 0.0  ;;  %vm10715_vm7 = vcmp.lt.f32.partialorder %v5184_v44, 0.0004427343  ;;  %v10719_v30 = vadd.f32 %v3955_v5, %v2514_v56  ;;  %v7754_v55 = vpop.eup %7753  ;;  %v5776_v37 = vadd.f32 %v5775_v45, %v5774_v7  ;;  %v11685_v58 = vld [vmem:[#allocation61_spill] sm:$0xff] }
 0x2c4   : > { %v6066_v61 = vadd.f32 %v10601_v2, %v5995_v13  ;;  %v5778_v6 = vrot.slane %v5777_v62, 4  ;;  %v5183_v17 = vmul.f32 %v10645_v28, %v5182_v10  ;;  %vm4648_vm9 = vcmp.gt.f32.partialorder %v10594_v19, 20.0  ;;  %v11684_v28 = vld [vmem:[#allocation60_spill] sm:$0xff] }
 0x2c5   : > { %v10724_v34 = vpop.eup %7755  ;;  %v5141_v40 = vsel %vm10710_vm5, %v5138_v12, %v5135_v35  ;;  %v5180_v31 = vmul.f32 0.6931472, %v7754_v55  ;;  %v5164_v29 = vadd.f32 1.0, %v5163_v27  ;;  %v5166_v21 = vand.u32 2147483647, %v10663_v15  ;;  %v7237_v12 = vpop.f32.mrf.mxu1 }
 0x2c6   : > { %v6227_v44 = vrot.slane %v6066_v61, 4  ;;  %v5779_v63 = vadd.f32 %v5778_v6, %v5777_v62  ;;  %v5413_v7 = vsel %vm4645_vm2, %v10535_v50, %v5141_v40  ;;  %v5187_v45 = vadd.f32 1.0, %v10724_v34 }
 0x2c7   : > { %v5477_v57 = vmul.f32 %v11684_v28, %v5413_v7  ;;  %v5186_v10 = vsel %vm10715_vm7, %v5183_v17, %v5180_v31  ;;  %v4588_v56 = vmin.f32 %v10719_v30, 20.0  ;;  %v10741_v1 = vrot.slane %v3645_v4, %v8522_v3  ;;  %v11688_v17 = vld [vmem:[#allocation39_spill] sm:$0xff] }
 0x2c8   : > { %v10745_v32 = vsel %vm6168_vm11, %v6227_v44, %v10676_v60  ;;  %v5780_v50 = vrot.slane %v5779_v63, 2  ;;  %v5418_v59 = vsel %vm4650_vm3, %v10559_v20, %v5186_v10  ;;  %7763 = vlog2.f32 %v5187_v45  ;;  %v7165_v20 = vpop.f32.mrf.mxu0  ;;  %v11690_v44 = vld [vmem:[#allocation17_spill] sm:$0xff] }
 0x2c9   : > { %v7758_v46 = vpop.eup %7757  ;;  %v5997_v14 = vmul.f32 %v10585_v49, %v5776_v37  ;;  %v5763_v52 = vsel %vm668_vm0, %v5477_v57, 0.0  ;;  %v5482_v27 = vmul.f32 %v11685_v58, %v5418_v59  ;;  %vm10753_vm10 = vcmp.lt.f32.partialorder %v5166_v21, 0.0004427343  ;;  %v2516_v57 = vpop.f32.mrf.mxu1 }
 0x2ca   : > { %v10757_v4 = vpop.eup %7759  ;;  %v5781_v60 = vadd.f32 %v5780_v50, %v5779_v63  ;;  %v5764_v5 = vrot.slane %v5763_v52, 4  ;;  %v5162_v42 = vmul.f32 0.6931472, %v7758_v46  ;;  %v5165_v13 = vmul.f32 %v10663_v15, %v5164_v29  ;;  %v11689_v15 = vld [vmem:[#allocation40_spill] sm:$0xff]  ;;  %v2203_v28 = vpop.f32.mrf.mxu0 }
 0x2cb   : > { %v5798_v11 = vsel %vm668_vm0, %v5482_v27, 0.0  ;;  %v5169_v62 = vadd.f32 1.0, %v10757_v4  ;;  %v4760_v35 = vmul.f32 1.442695, %v4588_v56  ;;  %v3677_v24 = vcombine.high %v10741_v1, %v10741_v1 }
 0x2cc   : > { %v5782_v55 = vrot.slane %v5781_v60, 1  ;;  %v5765_v37 = vadd.f32 %v5764_v5, %v5763_v52  ;;  %v5799_v61 = vrot.slane %v5798_v11, 4  ;;  %v5168_v6 = vsel %vm10753_vm10, %v5165_v13, %v5162_v42 }
 0x2cd   : > { %v10767_v40 = vmul.f32 -1.442695, %v11688_v17  ;;  %v10770_v31 = vmul.f32 -1.442695, %v11689_v15  ;;  %v5416_v29 = vsel %vm4648_vm9, %v10594_v19, %v5168_v6  ;;  %7765 = vlog2.f32 %v5169_v62 }
 0x2ce   : > { %v5766_v21 = vrot.slane %v5765_v37, 2  ;;  %v5480_v63 = vmul.f32 %v11690_v44, %v5416_v29  ;;  %v5190_v7 = vmul.f32 -0.5, %v10724_v34  ;;  %v2525_v45 = vadd.f32 %v7237_v12, %v7165_v20 }
 0x2cf   : > { %v10777_v10 = vpop.eup %7761  ;;  %v10780_v56 = vadd.f32 %v10601_v2, %v5997_v14  ;;  %v5783_v50 = vadd.f32 %v5782_v55, %v5781_v60  ;;  %v5172_v59 = vmul.f32 -0.5, %v10757_v4  ;;  %7767 = vpow2.f32 %v4760_v35 }
 0x2d0   : > { %v5767_v46 = vadd.f32 %v5766_v21, %v5765_v37  ;;  %v5800_v19 = vadd.f32 %v5799_v61, %v5798_v11  ;;  %v5784_v52 = vsel %vm668_vm0, %v5480_v63, 0.0  ;;  %v3967_v58 = vrot.slane %v3677_v24, %v8587_v47 }
 0x2d1   : > { %v5785_v27 = vrot.slane %v5784_v52, 4  ;;  %v5193_v16 = vand.u32 2147483647, %v10724_v34  ;;  %v5214_v5 = vadd.f32 1.0, %v10777_v10  ;;  %v2517_v42 = vadd.f32 %v2516_v57, %v2203_v28 }
 0x2d2   : > { %v5768_v13 = vrot.slane %v5767_v46, 1  ;;  %vm4651_vm15 = vcmp.gt.f32.partialorder %v10618_v48, 20.0  ;;  %v5191_v14 = vadd.f32 1.0, %v5190_v7  ;;  %v10788_v60 = vadd.f32 %v3967_v58, %v2525_v45  ;;  %v7240_v58 = vpop.f32.mrf.mxu1 }
 0x2d3   : > { %v5998_v20 = vmul.f32 %v10585_v49, %v5783_v50  ;;  %v5173_v12 = vadd.f32 1.0, %v5172_v59  ;;  %7769 = vlog2.f32 %v5214_v5  ;;  %v3959_v11 = vrot.slane %v10741_v1, %v8587_v47  ;;  %v11695_v5 = vld [vmem:[#allocation65_spill] sm:$0xff] }
 0x2d4   : > { %v6231_v62 = vrot.slane %v10780_v56, 2  ;;  %v5769_v35 = vadd.f32 %v5768_v13, %v5767_v46  ;;  %v5801_v24 = vrot.slane %v5800_v19, 2  ;;  %v4591_v55 = vmin.f32 %v10788_v60, 20.0  ;;  %v11696_v13 = vld [vmem:[#allocation44_spill] sm:$0xff] }
 0x2d5   : > { %v7764_v37 = vpop.eup %7763  ;;  %v5786_v61 = vadd.f32 %v5785_v27, %v5784_v52  ;;  %vm10795_vm1 = vcmp.lt.f32.partialorder %v5193_v16, 0.0004427343  ;;  %vm4649_vm2 = vcmp.gt.f32.partialorder %v10637_v0, 20.0  ;;  %v5175_v17 = vand.u32 2147483647, %v10757_v4  ;;  %v7168_v52 = vpop.f32.mrf.mxu0 }
 0x2d6   : > { %v10801_v15 = vadd.f32 %v3959_v11, %v2517_v42  ;;  %v5996_v1 = vmul.f32 %v10585_v49, %v5769_v35  ;;  %v5189_v29 = vmul.f32 0.6931472, %v7764_v37  ;;  %v5192_v21 = vmul.f32 %v10724_v34, %v5191_v14 }
 0x2d7   : > { %v4766_v44 = vmul.f32 1.442695, %v4591_v55  ;;  %v6069_v63 = vadd.f32 %v10601_v2, %v5998_v20  ;;  %v5174_v7 = vmul.f32 %v10757_v4, %v5173_v12  ;;  %v5217_v45 = vmul.f32 -0.5, %v10777_v10 }
 0x2d8   : > { %v4589_v28 = vmin.f32 %v10801_v15, 20.0  ;;  %v6067_v57 = vadd.f32 %v10601_v2, %v5996_v1  ;;  %v5802_v56 = vadd.f32 %v5801_v24, %v5800_v19  ;;  %v5195_v50 = vsel %vm10795_vm1, %v5192_v21, %v5189_v29  ;;  %v2216_v21 = vpop.f32.mrf.mxu0 }
 0x2d9   : > { %7771 = vpow2.f32 %v4766_v44  ;;  %v5787_v59 = vrot.slane %v5786_v61, 2  ;;  %v5419_v34 = vsel %vm4651_vm15, %v10618_v48, %v5195_v50  ;;  %vm10815_vm3 = vcmp.lt.f32.partialorder %v5175_v17, 0.0004427343  ;;  %v2529_v44 = vpop.f32.mrf.mxu1 }
 0x2da   : > { %v4762_v4 = vmul.f32 1.442695, %v4589_v28  ;;  %v7766_v27 = vpop.eup %7765  ;;  %v6229_v16 = vrot.slane %v6067_v57, 3  ;;  %v5483_v19 = vmul.f32 %v11695_v5, %v5419_v34  ;;  %v5220_v42 = vand.u32 2147483647, %v10777_v10  ;;  %v7897_v57 = vld [vmem:[%s8016_s28 + $0x20] sm:$0xff] }
 0x2db   : > { %v3723_v14 = vcombine.high %v11696_v13, %v11696_v13  ;;  %v6233_v20 = vrot.slane %v6069_v63, 1  ;;  %v5171_v12 = vmul.f32 0.6931472, %v7766_v27  ;;  %v5218_v11 = vadd.f32 1.0, %v5217_v45 }
 0x2dc   : > { %7773 = vpow2.f32 %v4762_v4  ;;  %v10823_v48 = vpop.eup %7767  ;;  %v6230_v35 = vsel %vm6171_vm12, %v6229_v16, %v10745_v32  ;;  %v5803_v24 = vrot.slane %v5802_v56, 1  ;;  %v5805_v55 = vsel %vm668_vm0, %v5483_v19, 0.0 }
 0x2dd   : > { %vm4654_vm5 = vcmp.gt.f32.partialorder %v10685_v33, 20.0  ;;  %v2538_v37 = vadd.f32 %v7240_v58, %v7168_v52  ;;  %v6232_v6 = vsel %vm6174_vm13, %v6231_v62, %v6230_v35  ;;  %v5788_v17 = vadd.f32 %v5787_v59, %v5786_v61  ;;  %v11697_v61 = vld [vmem:[#allocation71_spill] sm:$0xff] }
 0x2de   : > { %v5806_v1 = vrot.slane %v5805_v55, 4  ;;  %v5177_v29 = vsel %vm10815_vm3, %v5174_v7, %v5171_v12  ;;  %v6234_v63 = vsel %vm6177_vm14, %v6233_v20, %v6232_v6  ;;  %v5196_v45 = vadd.f32 1.0, %v10823_v48  ;;  %v7241_v7 = vpop.f32.mrf.mxu1 }
 0x2df   : > { %v5417_v32 = vsel %vm4649_vm2, %v10637_v0, %v5177_v29  ;;  %v3979_v28 = vrot.slane %v3723_v14, %v8587_v47  ;;  %v10839_v50 = vadd.f32 %v7897_v57, %v6234_v63  ;;  %vm10842_vm7 = vcmp.lt.f32.partialorder %v5220_v42, 0.0004427343 }
 0x2e0   : > { %v5807_v62 = vadd.f32 %v5806_v1, %v5805_v55  ;;  %v5481_v59 = vmul.f32 %v11697_v61, %v5417_v32  ;;  %v7770_v34 = vpop.eup %7769  ;;  %v5804_v46 = vadd.f32 %v5803_v24, %v5802_v56  ;;  %7775 = vlog2.f32 %v5196_v45 }
 0x2e1   : > { %v10846_v4 = vadd.f32 %v3979_v28, %v2538_v37  ;;  %v2530_v0 = vadd.f32 %v2529_v44, %v2216_v21  ;;  %v6297_v52 = vmin.f32 %v10839_v50, 20.0  ;;  %v5219_v16 = vmul.f32 %v10777_v10, %v5218_v11  ;;  %v11700_v44 = vld [vmem:[#allocation75_spill] sm:$0xff] }
 0x2e2   : > { %v5808_v58 = vrot.slane %v5807_v62, 2  ;;  %v5791_v27 = vsel %vm668_vm0, %v5481_v59, 0.0  ;;  %v5789_v5 = vrot.slane %v5788_v17, 1  ;;  %v5216_v14 = vmul.f32 0.6931472, %v7770_v34 }
 0x2e3   : > { %v5792_v19 = vrot.slane %v5791_v27, 4  ;;  %v3971_v42 = vrot.slane %v11696_v13, %v8587_v47  ;;  %v6317_v20 = vmul.f32 1.442695, %v6297_v52  ;;  %v5199_v56 = vmul.f32 -0.5, %v10823_v48 }
 0x2e4   : > { %v5809_v12 = vadd.f32 %v5808_v58, %v5807_v62  ;;  %v4594_v35 = vmin.f32 %v10846_v4, 20.0  ;;  %v6001_v24 = vmul.f32 %v10585_v49, %v5804_v46  ;;  %v5222_v37 = vsel %vm10842_vm7, %v5219_v16, %v5216_v14 }
 0x2e5   : > { %v5793_v55 = vadd.f32 %v5792_v19, %v5791_v27  ;;  %v10858_v6 = vadd.f32 %v3971_v42, %v2530_v0  ;;  %7777 = vpow2.f32 %v6317_v20  ;;  %v5422_v13 = vsel %vm4654_vm5, %v10685_v33, %v5222_v37 }
 0x2e6   : > { %v10860_v10 = vpop.eup %7771  ;;  %v5810_v11 = vrot.slane %v5809_v12, 1  ;;  %v4772_v1 = vmul.f32 1.442695, %v4594_v35  ;;  %v5790_v29 = vadd.f32 %v5789_v5, %v5788_v17  ;;  %v5486_v63 = vmul.f32 %v11700_v44, %v5422_v13  ;;  %v7169_v17 = vpop.f32.mrf.mxu0 }
 0x2e7   : > { %v5794_v21 = vrot.slane %v5793_v55, 2  ;;  %v5223_v32 = vadd.f32 1.0, %v10860_v10  ;;  %v10868_v45 = vadd.f32 1.0, %v9848_v9  ;;  %v5200_v57 = vadd.f32 1.0, %v5199_v56  ;;  %v2532_v56 = vpop.f32.mrf.mxu1 }
 0x2e8   : > { %v5811_v28 = vadd.f32 %v5810_v11, %v5809_v12  ;;  %7779 = vpow2.f32 %v4772_v1  ;;  %v5826_v59 = vsel %vm668_vm0, %v5486_v63, 0.0  ;;  %v4592_v33 = vmin.f32 %v10858_v6, 20.0  ;;  %v2219_v12 = vpop.f32.mrf.mxu0  ;;  %v11701_v11 = vld [vmem:[#allocation46_spill] sm:$0xff] }
 0x2e9   : > { %v10870_v62 = vpop.eup %7773  ;;  %v5795_v61 = vadd.f32 %v5794_v21, %v5793_v55  ;;  %7781 = vlog2.f32 %v5223_v32  ;;  %v10875_v34 = vadd.f32 1.0, %v9855_v41  ;;  %v5827_v46 = vrot.slane %v5826_v59, 4 }
 0x2ea   : > { %v5226_v9 = vmul.f32 -0.5, %v10860_v10  ;;  %v5205_v0 = vadd.f32 1.0, %v10870_v62  ;;  %v6072_v52 = vadd.f32 %v10601_v2, %v6001_v24  ;;  %v5999_v58 = vmul.f32 %v10585_v49, %v5790_v29 }
 0x2eb   : > { %v5796_v27 = vrot.slane %v5795_v61, 1  ;;  %vm4652_vm9 = vcmp.gt.f32.partialorder %v10719_v30, 20.0  ;;  %v6002_v16 = vmul.f32 %v10585_v49, %v5811_v28  ;;  %v5828_v5 = vadd.f32 %v5827_v46, %v5826_v59  ;;  %v7172_v59 = vpop.f32.mrf.mxu0 }
 0x2ec   : > { %v5202_v19 = vand.u32 2147483647, %v10823_v48  ;;  %7783 = vlog2.f32 %v5205_v0  ;;  %v5201_v14 = vmul.f32 %v10823_v48, %v5200_v57  ;;  %v4768_v42 = vmul.f32 1.442695, %v4592_v33  ;;  %v7244_v33 = vpop.f32.mrf.mxu1 }
 0x2ed   : > { %v5797_v41 = vadd.f32 %v5796_v27, %v5795_v61  ;;  %v2541_v20 = vadd.f32 %v7241_v7, %v7169_v17  ;;  %v7776_v35 = vpop.eup %7775  ;;  %v5227_v24 = vadd.f32 1.0, %v5226_v9  ;;  %v5229_v55 = vand.u32 2147483647, %v10860_v10 }
 0x2ee   : > { %v5208_v37 = vmul.f32 -0.5, %v10870_v62  ;;  %v3725_v13 = vcombine.high %v11701_v11, %v11701_v11  ;;  %v5198_v29 = vmul.f32 0.6931472, %v7776_v35  ;;  %v5211_v21 = vand.u32 2147483647, %v10870_v62 }
 0x2ef   : > { %v6000_v1 = vmul.f32 %v10585_v49, %v5797_v41  ;;  %7785 = vpow2.f32 %v4768_v42  ;;  %v6073_v48 = vadd.f32 %v10601_v2, %v6002_v16  ;;  %v5829_v44 = vrot.slane %v5828_v5, 2 }
 0x2f0   : > { %vm5203_vm10 = vcmp.lt.f32.partialorder %v5202_v19, 0.0004427343  ;;  %v3983_v63 = vrot.slane %v3725_v13, %v8587_v47  ;;  %v6237_v32 = vrot.slane %v6072_v52, 6  ;;  %v6070_v28 = vadd.f32 %v10601_v2, %v5999_v58 }
 0x2f1   : > { %v6071_v57 = vadd.f32 %v10601_v2, %v6000_v1  ;;  %v5204_v61 = vsel %vm5203_vm10, %v5201_v14, %v5198_v29  ;;  %vm4655_vm15 = vcmp.gt.f32.partialorder %v10788_v60, 20.0  ;;  %vm10899_vm1 = vcmp.lt.f32.partialorder %v5229_v55, 0.0004427343  ;;  %v2232_v55 = vpop.f32.mrf.mxu0 }
 0x2f2   : > { %v5420_v17 = vsel %vm4652_vm9, %v10719_v30, %v5204_v61  ;;  %v5209_v46 = vadd.f32 1.0, %v5208_v37  ;;  %v10903_v9 = vadd.f32 %v3983_v63, %v2541_v20  ;;  %v10905_v0 = vpop.eup %7777  ;;  %v5228_v27 = vmul.f32 %v10860_v10, %v5227_v24  ;;  %v11706_v10 = vld [vmem:[#allocation45_spill] sm:$0xff]  ;;  %v2545_v37 = vpop.f32.mrf.mxu1 }
 0x2f3   : > { %v6235_v52 = vrot.slane %v6071_v57, 7  ;;  %v5484_v58 = vmul.f32 %v9557_v53, %v5420_v17  ;;  %vm10909_vm2 = vcmp.lt.f32.partialorder %v5211_v21, 0.0004427343  ;;  %v6361_v30 = vadd.f32 1.0, %v10905_v0 }
 0x2f4   : > { %v6239_v19 = vrot.slane %v6073_v48, 5  ;;  %v5830_v41 = vadd.f32 %v5829_v44, %v5828_v5  ;;  %vm4653_vm3 = vcmp.gt.f32.partialorder %v10801_v15, 20.0  ;;  %v2533_v14 = vadd.f32 %v2532_v56, %v2219_v12 }
 0x2f5   : > { %v10915_v42 = vpop.eup %7779  ;;  %v6236_v20 = vsel %vm6159_vm4, %v6235_v52, %v6070_v28  ;;  %v5812_v35 = vsel %vm668_vm0, %v5484_v58, 0.0  ;;  %v4595_v53 = vmin.f32 %v10903_v9, 20.0  ;;  %v3724_v24 = vcombine.high %v11706_v10, %v11706_v10 }
 0x2f6   : > { %v7782_v13 = vpop.eup %7781  ;;  %7787 = vlog2.f32 %v6361_v30  ;;  %v6238_v5 = vsel %vm6162_vm6, %v6237_v32, %v6236_v20  ;;  %v5210_v1 = vmul.f32 %v10870_v62, %v5209_v46  ;;  %v3975_v12 = vrot.slane %v11701_v11, %v8587_v47 }
 0x2f7   : > { %v5813_v56 = vrot.slane %v5812_v35, 4  ;;  %v10927_v29 = vsel %vm6165_vm8, %v6239_v19, %v6238_v5  ;;  %v5225_v21 = vmul.f32 0.6931472, %v7782_v13  ;;  %v2554_v48 = vadd.f32 %v7244_v33, %v7172_v59 }
 0x2f8   : > { %v5831_v44 = vrot.slane %v5830_v41, 1  ;;  %v5250_v63 = vadd.f32 1.0, %v10915_v42  ;;  %v10930_v28 = vadd.f32 %v3975_v12, %v2533_v14  ;;  %v2546_v57 = vadd.f32 %v2545_v37, %v2232_v55 }
 0x2f9   : > { %v7784_v61 = vpop.eup %7783  ;;  %v5814_v17 = vadd.f32 %v5813_v56, %v5812_v35  ;;  %v5231_v62 = vsel %vm10899_vm1, %v5228_v27, %v5225_v21  ;;  %v4774_v32 = vmul.f32 1.442695, %v4595_v53  ;;  %v3995_v11 = vrot.slane %v3724_v24, %v8587_v47 }
 0x2fa   : > { %v6364_v46 = vmul.f32 -0.5, %v10905_v0  ;;  %v5423_v59 = vsel %vm4655_vm15, %v10788_v60, %v5231_v62  ;;  %v5207_v33 = vmul.f32 0.6931472, %v7784_v61  ;;  %7789 = vlog2.f32 %v5250_v63 }
 0x2fb   : > { %v6367_v52 = vand.u32 2147483647, %v10905_v0  ;;  %v5815_v58 = vrot.slane %v5814_v17, 2  ;;  %v5487_v30 = vmul.f32 %v9838_v43, %v5423_v59  ;;  %v3987_v7 = vrot.slane %v11706_v10, %v8587_v47 }
 0x2fc   : > { %v10943_v27 = vpop.eup %7785  ;;  %v5832_v19 = vadd.f32 %v5831_v44, %v5830_v41  ;;  %v5213_v14 = vsel %vm10909_vm2, %v5210_v1, %v5207_v33  ;;  %7791 = vpow2.f32 %v4774_v32  ;;  %v4593_v20 = vmin.f32 %v10930_v28, 20.0 }
 0x2fd   : > { %v5816_v60 = vadd.f32 %v5815_v58, %v5814_v17  ;;  %v5833_v35 = vsel %vm668_vm0, %v5487_v30, 0.0  ;;  %v5421_v53 = vsel %vm4653_vm3, %v10801_v15, %v5213_v14  ;;  %v5232_v43 = vadd.f32 1.0, %v10943_v27 }
 0x2fe   : > { %vm6305_vm5 = vcmp.gt.f32.partialorder %v10839_v50, 20.0  ;;  %v6365_v10 = vadd.f32 1.0, %v6364_v46  ;;  %v5834_v24 = vrot.slane %v5833_v35, 4  ;;  %v5485_v41 = vmul.f32 %v10150_v8, %v5421_v53 }
 0x2ff   : > { %v5253_v16 = vmul.f32 -0.5, %v10915_v42  ;;  %v5817_v55 = vrot.slane %v5816_v60, 1  ;;  %v5256_v37 = vand.u32 2147483647, %v10915_v42  ;;  %7793 = vlog2.f32 %v5232_v43  ;;  %v7173_v43 = vpop.f32.mrf.mxu0 }
 0x300   : > { %v4770_v13 = vmul.f32 1.442695, %v4593_v20  ;;  %vm10957_vm7 = vcmp.lt.f32.partialorder %v6367_v52, 0.0004427343  ;;  %v6005_v15 = vmul.f32 %v10585_v49, %v5832_v19  ;;  %v5835_v1 = vadd.f32 %v5834_v24, %v5833_v35 }
 0x301   : > { %v5819_v12 = vsel %vm668_vm0, %v5485_v41, 0.0  ;;  %v5818_v56 = vadd.f32 %v5817_v55, %v5816_v60  ;;  %v10963_v8 = vadd.f32 %v3995_v11, %v2554_v48  ;;  %v6366_v44 = vmul.f32 %v10905_v0, %v6365_v10  ;;  %v7245_v10 = vpop.f32.mrf.mxu1 }
 0x302   : > { %v5820_v21 = vrot.slane %v5819_v12, 4  ;;  %7795 = vpow2.f32 %v4770_v13  ;;  %v5836_v63 = vrot.slane %v5835_v1, 2  ;;  %vm4658_vm9 = vcmp.gt.f32.partialorder %v10846_v4, 20.0 }
 0x303   : > { %v5254_v61 = vadd.f32 1.0, %v5253_v16  ;;  %v10967_v17 = vadd.f32 %v3987_v7, %v2546_v57  ;;  %v7788_v62 = vpop.eup %7787  ;;  %v6003_v32 = vmul.f32 %v10585_v49, %v5818_v56  ;;  %vm10970_vm10 = vcmp.lt.f32.partialorder %v5256_v37, 0.0004427343  ;;  %v11711_v7 = vld [vmem:[#allocation41_spill] sm:$0xff] }
 0x304   : > { %v5821_v46 = vadd.f32 %v5820_v21, %v5819_v12  ;;  %v4598_v33 = vmin.f32 %v10963_v8, 20.0  ;;  %v6363_v48 = vmul.f32 0.6931472, %v7788_v62  ;;  %v5837_v11 = vadd.f32 %v5836_v63, %v5835_v1 }
 0x305   : > { %v5235_v0 = vmul.f32 -0.5, %v10943_v27  ;;  %v4596_v52 = vmin.f32 %v10967_v17, 20.0  ;;  %v6074_v57 = vadd.f32 %v10601_v2, %v6003_v32  ;;  %v11712_v19 = vcombine.high %v11711_v7, %v11711_v7 }
 0x306   : > { %v5822_v58 = vrot.slane %v5821_v46, 2  ;;  %v4780_v30 = vmul.f32 1.442695, %v4598_v33  ;;  %v6369_v20 = vsel %vm10957_vm7, %v6366_v44, %v6363_v48  ;;  %v5838_v60 = vrot.slane %v5837_v11, 1  ;;  %v2548_v33 = vpop.f32.mrf.mxu1 }
 0x307   : > { %v10982_v14 = vrot.slane %v11712_v19, %v8522_v3  ;;  %v5255_v35 = vmul.f32 %v10915_v42, %v5254_v61  ;;  %v4776_v53 = vmul.f32 1.442695, %v4596_v52  ;;  %v7790_v24 = vpop.eup %7789  ;;  %v6401_v41 = vsel %vm6305_vm5, %v10839_v50, %v6369_v20 }
 0x308   : > { %v6241_v16 = vrot.slane %v6074_v57, 4  ;;  %v5823_v55 = vadd.f32 %v5822_v58, %v5821_v46  ;;  %7797 = vpow2.f32 %v4780_v30  ;;  %6409 = vst.msk [vmem:[%s9912_s30 + $0x20] sm:$0xff] %vm668_vm0, %v6401_v41  ;;  %v5839_v37 = vadd.f32 %v5838_v60, %v5837_v11  ;;  %v2235_v46 = vpop.f32.mrf.mxu0 }
 0x309   : > { %v5252_v13 = vmul.f32 0.6931472, %v7790_v24  ;;  %7799 = vpow2.f32 %v4776_v53  ;;  %v3726_v5 = vcombine.high %v10982_v14, %v10982_v14  ;;  %v10994_v42 = vpop.eup %7791  ;;  %v5236_v56 = vadd.f32 1.0, %v5235_v0 }
 0x30a   : > { %v6242_v1 = vsel %vm6168_vm11, %v6241_v16, %v10927_v29  ;;  %v5824_v12 = vrot.slane %v5823_v55, 1  ;;  %v2557_v21 = vadd.f32 %v7245_v10, %v7173_v43  ;;  %v6006_v50 = vmul.f32 %v10585_v49, %v5839_v37 }
 0x30b   : > { %v5258_v44 = vsel %vm10970_vm10, %v5255_v35, %v5252_v13  ;;  %v5238_v63 = vand.u32 2147483647, %v10943_v27  ;;  %v5259_v61 = vadd.f32 1.0, %v10994_v42  ;;  %7801 = vrcp.f32 %v10868_v45 }
 0x30c   : > { %v5825_v62 = vadd.f32 %v5824_v12, %v5823_v55  ;;  %v5426_v32 = vsel %vm4658_vm9, %v10846_v4, %v5258_v44  ;;  %v3999_v29 = vrot.slane %v3726_v5, %v8587_v47  ;;  %v7794_v48 = vpop.eup %7793  ;;  %v6076_v11 = vadd.f32 %v10601_v2, %v6005_v15 }
 0x30d   : > { %v5490_v59 = vmul.f32 %v10173_v22, %v5426_v32  ;;  %vm4656_vm15 = vcmp.gt.f32.partialorder %v10858_v6, 20.0  ;;  %7803 = vlog2.f32 %v5259_v61  ;;  %v5234_v45 = vmul.f32 0.6931472, %v7794_v48 }
 0x30e   : > { %v6004_v0 = vmul.f32 %v10585_v49, %v5825_v62  ;;  %v5237_v52 = vmul.f32 %v10943_v27, %v5236_v56  ;;  %v11013_v57 = vadd.f32 %v3999_v29, %v2557_v21  ;;  %v6077_v58 = vadd.f32 %v10601_v2, %v6006_v50  ;;  %v7898_v21 = vld [vmem:[%s8016_s28 + $0x28] sm:$0xff]  ;;  %v7176_v29 = vpop.f32.mrf.mxu0 }
 0x30f   : > { %v11015_v4 = vpop.eup %7795  ;;  %v5854_v30 = vsel %vm668_vm0, %v5490_v59, 0.0  ;;  %vm5239_vm1 = vcmp.lt.f32.partialorder %v5238_v63, 0.0004427343  ;;  %v2549_v15 = vadd.f32 %v2548_v33, %v2235_v46  ;;  %v4410_v49 = vadd.f32 1.0, %v10022_v26  ;;  %v7248_v46 = vpop.f32.mrf.mxu1 }
 0x310   : > { %v6075_v22 = vadd.f32 %v10601_v2, %v6004_v0  ;;  %v5855_v7 = vrot.slane %v5854_v30, 4  ;;  %v5240_v19 = vsel %vm5239_vm1, %v5237_v52, %v5234_v45  ;;  %v5241_v20 = vadd.f32 1.0, %v11015_v4 }
 0x311   : > { %v5424_v27 = vsel %vm4656_vm15, %v10858_v6, %v5240_v19  ;;  %v4599_v60 = vmin.f32 %v11013_v57, 20.0  ;;  %v3991_v35 = vrot.slane %v10982_v14, %v8587_v47  ;;  %v6245_v2 = vrot.slane %v6076_v11, 2 }
 0x312   : > { %v6243_v53 = vrot.slane %v6075_v22, 3  ;;  %v5856_v43 = vadd.f32 %v5855_v7, %v5854_v30  ;;  %v5488_v10 = vmul.f32 %v10326_v25, %v5424_v27  ;;  %7805 = vlog2.f32 %v5241_v20  ;;  %v2248_v20 = vpop.f32.mrf.mxu0 }
 0x313   : > { %7807 = vrcp.f32 %v10875_v34  ;;  %v5262_v24 = vmul.f32 -0.5, %v10994_v42  ;;  %v4782_v26 = vmul.f32 1.442695, %v4599_v60  ;;  %v6247_v41 = vrot.slane %v6077_v58, 1 }
 0x314   : > { %v6244_v6 = vsel %vm6171_vm12, %v6243_v53, %v6242_v1  ;;  %v5840_v16 = vsel %vm668_vm0, %v5488_v10, 0.0  ;;  %v11033_v55 = vadd.f32 %v3991_v35, %v2549_v15  ;;  %v5857_v25 = vrot.slane %v5856_v43, 2 }
 0x315   : > { %v11035_v14 = vpop.eup %7797  ;;  %v6246_v37 = vsel %vm6174_vm13, %v6245_v2, %v6244_v6  ;;  %v5841_v13 = vrot.slane %v5840_v16, 4  ;;  %7809 = vpow2.f32 %v4782_v26  ;;  %v11041_v5 = vadd.f32 1.0, %v10040_v36 }
 0x316   : > { %v11038_v34 = vpop.eup %7799  ;;  %v6248_v12 = vsel %vm6177_vm14, %v6247_v41, %v6246_v37  ;;  %v5265_v1 = vand.u32 2147483647, %v10994_v42  ;;  %v5286_v56 = vadd.f32 1.0, %v11035_v14  ;;  %v5263_v63 = vadd.f32 1.0, %v5262_v24 }
 0x317   : > { %v11047_v50 = vadd.f32 %v7898_v21, %v6248_v12  ;;  %v5842_v44 = vadd.f32 %v5841_v13, %v5840_v16  ;;  %v5268_v61 = vadd.f32 1.0, %v11038_v34  ;;  %v5244_v62 = vmul.f32 -0.5, %v11015_v4 }
 0x318   : > { %v5247_v32 = vand.u32 2147483647, %v11015_v4  ;;  %7811 = vlog2.f32 %v5286_v56  ;;  %v4597_v36 = vmin.f32 %v11033_v55, 20.0  ;;  %v11053_v33 = vpop.eup %7801  ;;  %v11056_v48 = vadd.f32 1.0, %v10167_v18 }
 0x319   : > { %7813 = vrcp.f32 %v4410_v49  ;;  %v6298_v11 = vmin.f32 %v11047_v50, 20.0  ;;  %v5858_v59 = vadd.f32 %v5857_v25, %v5856_v43  ;;  %vm4659_vm2 = vcmp.gt.f32.partialorder %v10903_v9, 20.0  ;;  %v2561_v49 = vpop.f32.mrf.mxu1  ;;  %v11717_v43 = vld [vmem:[#allocation63_spill] sm:$0xff] }
 0x31a   : > { %v7804_v0 = vpop.eup %7803  ;;  %vm11060_vm3 = vcmp.lt.f32.partialorder %v5265_v1, 0.0004427343  ;;  %vm4657_vm5 = vcmp.gt.f32.partialorder %v10930_v28, 20.0  ;;  %7815 = vlog2.f32 %v5268_v61  ;;  %v5843_v58 = vrot.slane %v5842_v44, 2 }
 0x31b   : > { %v6319_v52 = vmul.f32 1.442695, %v6298_v11  ;;  %v5261_v30 = vmul.f32 0.6931472, %v7804_v0  ;;  %v5264_v15 = vmul.f32 %v10994_v42, %v5263_v63  ;;  %v5245_v18 = vadd.f32 1.0, %v5244_v62 }
 0x31c   : > { %vm11066_vm7 = vcmp.lt.f32.partialorder %v5247_v32, 0.0004427343  ;;  %v4778_v7 = vmul.f32 1.442695, %v4597_v36  ;;  %v2570_v19 = vadd.f32 %v7248_v46, %v7176_v29  ;;  %v5859_v27 = vrot.slane %v5858_v59, 1 }
 0x31d   : > { %7817 = vpow2.f32 %v6319_v52  ;;  %v5267_v60 = vsel %vm11060_vm3, %v5264_v15, %v5261_v30  ;;  %v5289_v35 = vmul.f32 -0.5, %v11035_v14  ;;  %v5271_v53 = vmul.f32 -0.5, %v11038_v34 }
 0x31e   : > { %v5427_v42 = vsel %vm4659_vm2, %v10903_v9, %v5267_v60  ;;  %7819 = vpow2.f32 %v4778_v7  ;;  %v3772_v10 = vcombine.high %v11717_v43, %v11717_v43  ;;  %v5844_v24 = vadd.f32 %v5843_v58, %v5842_v44 }
 0x31f   : > { %v7806_v2 = vpop.eup %7805  ;;  %v5491_v26 = vmul.f32 %v10530_v23, %v5427_v42  ;;  %v2562_v41 = vadd.f32 %v2561_v49, %v2248_v20  ;;  %v4003_v6 = vrot.slane %v11717_v43, %v8587_v47  ;;  %v5246_v25 = vmul.f32 %v11015_v4, %v5245_v18 }
 0x320   : > { %v11082_v16 = vpop.eup %7807  ;;  %v5243_v37 = vmul.f32 0.6931472, %v7806_v2  ;;  %vm4662_vm9 = vcmp.gt.f32.partialorder %v10963_v8, 20.0  ;;  %v5292_v9 = vand.u32 2147483647, %v11035_v14  ;;  %v4011_v13 = vrot.slane %v3772_v10, %v8587_v47  ;;  %v7249_v2 = vpop.f32.mrf.mxu1 }
 0x321   : > { %v5860_v12 = vadd.f32 %v5859_v27, %v5858_v59  ;;  %v5861_v1 = vsel %vm668_vm0, %v5491_v26, 0.0  ;;  %v5290_v56 = vadd.f32 1.0, %v5289_v35  ;;  %v11089_v23 = vadd.f32 %v4003_v6, %v2562_v41 }
 0x322   : > { %v11091_v21 = vpop.eup %7809  ;;  %v5862_v44 = vrot.slane %v5861_v1, 4  ;;  %v5249_v63 = vsel %vm11066_vm7, %v5246_v25, %v5243_v37  ;;  %v5272_v61 = vadd.f32 1.0, %v5271_v53  ;;  %v11095_v4 = vadd.f32 %v4011_v13, %v2570_v19 }
 0x323   : > { %v5845_v62 = vrot.slane %v5844_v24, 1  ;;  %v5425_v32 = vsel %vm4657_vm5, %v10930_v28, %v5249_v63  ;;  %vm4660_vm10 = vcmp.gt.f32.partialorder %v10967_v17, 20.0  ;;  %v5274_v36 = vand.u32 2147483647, %v11038_v34  ;;  %v11112_v28 = vld [vmem:[%s11397_s11] ss:$0 sm:$0xff] }
 0x324   : > { %v5295_v29 = vadd.f32 1.0, %v11091_v21  ;;  %v5863_v46 = vadd.f32 %v5862_v44, %v5861_v1  ;;  %v5489_v11 = vmul.f32 %v10552_v39, %v5425_v32  ;;  %vm11104_vm15 = vcmp.lt.f32.partialorder %v5292_v9, 0.0004427343 }
 0x325   : > { %v4602_v0 = vmin.f32 %v11095_v4, 20.0  ;;  %v7812_v45 = vpop.eup %7811  ;;  %v6009_v52 = vmul.f32 %v11112_v28, %v5860_v12  ;;  %v5291_v58 = vmul.f32 %v11035_v14, %v5290_v56  ;;  %v4600_v30 = vmin.f32 %v11089_v23, 20.0 }
 0x326   : > { %7821 = vlog2.f32 %v5295_v29  ;;  %v11117_v39 = vpop.eup %7813  ;;  %v5864_v15 = vrot.slane %v5863_v46, 2  ;;  %v5847_v18 = vsel %vm668_vm0, %v5489_v11, 0.0  ;;  %v5288_v22 = vmul.f32 0.6931472, %v7812_v45 }
 0x327   : > { %v5273_v7 = vmul.f32 %v11038_v34, %v5272_v61  ;;  %v7816_v19 = vpop.eup %7815  ;;  %v5846_v20 = vadd.f32 %v5845_v62, %v5844_v24  ;;  %v5848_v49 = vrot.slane %v5847_v18, 4  ;;  %vm11121_vm1 = vcmp.lt.f32.partialorder %v5274_v36, 0.0004427343  ;;  %v7177_v34 = vpop.f32.mrf.mxu0  ;;  %v11722_v24 = vld [vmem:[#allocation66_spill] sm:$0xff] }
 0x328   : > { %v4788_v60 = vmul.f32 1.442695, %v4602_v0  ;;  %v5865_v14 = vadd.f32 %v5864_v15, %v5863_v46  ;;  %v5294_v35 = vsel %vm11104_vm15, %v5291_v58, %v5288_v22  ;;  %v5270_v42 = vmul.f32 0.6931472, %v7816_v19 }
 0x329   : > { %v4784_v53 = vmul.f32 1.442695, %v4600_v30  ;;  %v5849_v43 = vadd.f32 %v5848_v49, %v5847_v18  ;;  %v5430_v10 = vsel %vm4662_vm9, %v10963_v8, %v5294_v35  ;;  %v3774_v26 = vcombine.high %v11722_v24, %v11722_v24  ;;  %v11143_v8 = vld [vmem:[%s11398_s12] ss:$0 sm:$0xff]  ;;  %v2251_v59 = vpop.f32.mrf.mxu0 }
 0x32a   : > { %7823 = vpow2.f32 %v4788_v60  ;;  %v11132_v41 = vpop.eup %7817  ;;  %v5866_v6 = vrot.slane %v5865_v14, 1  ;;  %v5494_v37 = vmul.f32 %v10629_v54, %v5430_v10  ;;  %v5276_v25 = vsel %vm11121_vm1, %v5273_v7, %v5270_v42 }
 0x32b   : > { %7825 = vpow2.f32 %v4784_v53  ;;  %v11137_v9 = vpop.eup %7819  ;;  %v6370_v13 = vadd.f32 1.0, %v11132_v41  ;;  %v11146_v12 = vadd.f32 %v11143_v8, %v6009_v52  ;;  %v5850_v1 = vrot.slane %v5849_v43, 2  ;;  %v7180_v60 = vpop.f32.mrf.mxu0 }
 0x32c   : > { %v5298_v56 = vmul.f32 -0.5, %v11091_v21  ;;  %v5867_v54 = vadd.f32 %v5866_v6, %v5865_v14  ;;  %v5428_v44 = vsel %vm4660_vm10, %v10967_v17, %v5276_v25  ;;  %v5277_v63 = vadd.f32 1.0, %v11137_v9  ;;  %v2564_v17 = vpop.f32.mrf.mxu1 }
 0x32d   : > { %v2573_v61 = vadd.f32 %v7249_v2, %v7177_v34  ;;  %7827 = vlog2.f32 %v6370_v13  ;;  %v6007_v62 = vmul.f32 %v11112_v28, %v5846_v20  ;;  %v5851_v32 = vadd.f32 %v5850_v1, %v5849_v43 }
 0x32e   : > { %v5882_v36 = vsel %vm668_vm0, %v5494_v37, 0.0  ;;  %vm4663_vm2 = vcmp.gt.f32.partialorder %v11013_v57, 20.0  ;;  %v5492_v29 = vmul.f32 %v10650_v38, %v5428_v44  ;;  %v5301_v46 = vand.u32 2147483647, %v11091_v21 }
 0x32f   : > { %7829 = vlog2.f32 %v5277_v63  ;;  %v4015_v11 = vrot.slane %v3774_v26, %v8587_v47  ;;  %v6373_v0 = vmul.f32 -0.5, %v11132_v41  ;;  %v6251_v45 = vrot.slane %v11146_v12, 6 }
 0x330   : > { %v5852_v52 = vrot.slane %v5851_v32, 1  ;;  %v5299_v58 = vadd.f32 1.0, %v5298_v56  ;;  %v6010_v30 = vmul.f32 %v11112_v28, %v5867_v54  ;;  %v5883_v15 = vrot.slane %v5882_v36, 4 }
 0x331   : > { %v5868_v18 = vsel %vm668_vm0, %v5492_v29, 0.0  ;;  %v11163_v22 = vadd.f32 %v4015_v11, %v2573_v61  ;;  %v6376_v38 = vand.u32 2147483647, %v11132_v41  ;;  %v2565_v20 = vadd.f32 %v2564_v17, %v2251_v59 }
 0x332   : > { %v5853_v7 = vadd.f32 %v5852_v52, %v5851_v32  ;;  %v5869_v19 = vrot.slane %v5868_v18, 4  ;;  %v6078_v27 = vadd.f32 %v11143_v8, %v6007_v62  ;;  %vm11167_vm3 = vcmp.lt.f32.partialorder %v5301_v46, 0.0004427343 }
 0x333   : > { %v7822_v49 = vpop.eup %7821  ;;  %v5280_v14 = vmul.f32 -0.5, %v11137_v9  ;;  %v4603_v35 = vmin.f32 %v11163_v22, 20.0  ;;  %v5300_v10 = vmul.f32 %v11091_v21, %v5299_v58  ;;  %v6374_v34 = vadd.f32 1.0, %v6373_v0 }
 0x334   : > { %v6008_v42 = vmul.f32 %v11112_v28, %v5853_v7  ;;  %v5870_v53 = vadd.f32 %v5869_v19, %v5868_v18  ;;  %v5297_v43 = vmul.f32 0.6931472, %v7822_v49  ;;  %v6081_v2 = vadd.f32 %v11143_v8, %v6010_v30 }
 0x335   : > { %v5884_v26 = vadd.f32 %v5883_v15, %v5882_v36  ;;  %v4790_v6 = vmul.f32 1.442695, %v4603_v35  ;;  %vm6306_vm5 = vcmp.gt.f32.partialorder %v11047_v50, 20.0  ;;  %vm11177_vm7 = vcmp.lt.f32.partialorder %v6376_v38, 0.0004427343 }
 0x336   : > { %v6079_v25 = vadd.f32 %v11143_v8, %v6008_v42  ;;  %v5871_v13 = vrot.slane %v5870_v53, 2  ;;  %v5303_v12 = vsel %vm11167_vm3, %v5300_v10, %v5297_v43  ;;  %vm4661_vm9 = vcmp.gt.f32.partialorder %v11033_v55, 20.0  ;;  %v11729_v42 = vld [vmem:[#allocation64_spill] sm:$0xff] }
 0x337   : > { %v11184_v1 = vpop.eup %7823  ;;  %v5431_v21 = vsel %vm4663_vm2, %v11013_v57, %v5303_v12  ;;  %v5281_v56 = vadd.f32 1.0, %v5280_v14  ;;  %v5283_v54 = vand.u32 2147483647, %v11137_v9  ;;  %7831 = vpow2.f32 %v4790_v6  ;;  %v7252_v14 = vpop.f32.mrf.mxu1 }
 0x338   : > { %v11191_v44 = vpop.eup %7825  ;;  %v6249_v63 = vrot.slane %v6079_v25, 7  ;;  %v5872_v61 = vadd.f32 %v5871_v13, %v5870_v53  ;;  %v5495_v62 = vmul.f32 %v11053_v33, %v5431_v21  ;;  %v5322_v32 = vadd.f32 1.0, %v11184_v1  ;;  %v2264_v25 = vpop.f32.mrf.mxu0 }
 0x339   : > { %v6375_v36 = vmul.f32 %v11132_v41, %v6374_v34  ;;  %v6253_v29 = vrot.slane %v6081_v2, 5  ;;  %v5885_v46 = vrot.slane %v5884_v26, 2  ;;  %v5304_v57 = vadd.f32 1.0, %v11191_v44  ;;  %v2577_v13 = vpop.f32.mrf.mxu1 }
 0x33a   : > { %v6250_v11 = vsel %vm6159_vm4, %v6249_v63, %v6078_v27  ;;  %v5873_v59 = vrot.slane %v5872_v61, 1  ;;  %v5889_v17 = vsel %vm668_vm0, %v5495_v62, 0.0  ;;  %7833 = vlog2.f32 %v5322_v32  ;;  %v7828_v0 = vpop.eup %7827 }
 0x33b   : > { %v6252_v52 = vsel %vm6162_vm6, %v6251_v45, %v6250_v11  ;;  %v5890_v58 = vrot.slane %v5889_v17, 4  ;;  %vm11200_vm10 = vcmp.lt.f32.partialorder %v5283_v54, 0.0004427343  ;;  %v4007_v41 = vrot.slane %v11722_v24, %v8587_v47 }
 0x33c   : > { %v7830_v30 = vpop.eup %7829  ;;  %v6372_v15 = vmul.f32 0.6931472, %v7828_v0  ;;  %v5874_v18 = vadd.f32 %v5873_v59, %v5872_v61  ;;  %v6254_v38 = vsel %vm6165_vm8, %v6253_v29, %v6252_v52  ;;  %v5282_v7 = vmul.f32 %v11137_v9, %v5281_v56 }
 0x33d   : > { %v5886_v19 = vadd.f32 %v5885_v46, %v5884_v26  ;;  %v5891_v49 = vadd.f32 %v5890_v58, %v5889_v17  ;;  %v5279_v27 = vmul.f32 0.6931472, %v7830_v30  ;;  %v11208_v45 = vadd.f32 %v4007_v41, %v2565_v20 }
 0x33e   : > { %v6378_v35 = vsel %vm11177_vm7, %v6375_v36, %v6372_v15  ;;  %v6011_v24 = vmul.f32 %v11112_v28, %v5874_v18  ;;  %7835 = vlog2.f32 %v5304_v57  ;;  %v3773_v53 = vcombine.high %v11729_v42, %v11729_v42  ;;  %v7181_v15 = vpop.f32.mrf.mxu0  ;;  %v7253_v18 = vpop.f32.mrf.mxu1 }
 0x33f   : > { %v6402_v9 = vsel %vm6306_vm5, %v11047_v50, %v6378_v35  ;;  %v5892_v43 = vrot.slane %v5891_v49, 2  ;;  %v5285_v20 = vsel %vm11200_vm10, %v5282_v7, %v5279_v27  ;;  %v5325_v10 = vmul.f32 -0.5, %v11184_v1 }
 0x340   : > { %7837 = vpow2.f32 %v10767_v40  ;;  %6410 = vst.msk [vmem:[%s9912_s30 + $0x28] sm:$0xff] %vm668_vm0, %v6402_v9  ;;  %v6082_v34 = vadd.f32 %v11143_v8, %v6011_v24  ;;  %v5429_v2 = vsel %vm4661_vm9, %v11033_v55, %v5285_v20  ;;  %v2586_v26 = vadd.f32 %v7252_v14, %v7180_v60 }
 0x341   : > { %7839 = vrcp.f32 %v11041_v5  ;;  %v5893_v50 = vadd.f32 %v5892_v43, %v5891_v49  ;;  %v5493_v6 = vmul.f32 %v11082_v16, %v5429_v2  ;;  %v4601_v37 = vmin.f32 %v11208_v45, 20.0  ;;  %v11730_v49 = vld [vmem:[#allocation57_spill] sm:$0xff] }
 0x342   : > { %7841 = vrcp.f32 %v11056_v48  ;;  %v5887_v40 = vrot.slane %v5886_v19, 1  ;;  %v6255_v12 = vrot.slane %v6082_v34, 4  ;;  %v4027_v21 = vrot.slane %v3773_v53, %v8587_v47 }
 0x343   : > { %v5875_v56 = vsel %vm668_vm0, %v5493_v6, 0.0  ;;  %v5326_v54 = vadd.f32 1.0, %v5325_v10  ;;  %v5307_v55 = vmul.f32 -0.5, %v11191_v44  ;;  %v4786_v63 = vmul.f32 1.442695, %v4601_v37  ;;  %v2267_v6 = vpop.f32.mrf.mxu0  ;;  %v2580_v37 = vpop.f32.mrf.mxu1 }
 0x344   : > { %v11235_v5 = vpop.eup %7831  ;;  %v11238_v16 = vsel %vm6168_vm11, %v6255_v12, %v6254_v38  ;;  %v5876_v61 = vrot.slane %v5875_v56, 4  ;;  %v11240_v62 = vadd.f32 %v4027_v21, %v2586_v26  ;;  %v2578_v32 = vadd.f32 %v2577_v13, %v2264_v25 }
 0x345   : > { %v5894_v48 = vrot.slane %v5893_v50, 1  ;;  %vm4666_vm15 = vcmp.gt.f32.partialorder %v11095_v4, 20.0  ;;  %v5328_v36 = vand.u32 2147483647, %v11184_v1  ;;  %v5331_v29 = vadd.f32 1.0, %v11235_v5 }
 0x346   : > { %v5877_v46 = vadd.f32 %v5876_v61, %v5875_v56  ;;  %vm4664_vm1 = vcmp.gt.f32.partialorder %v11089_v23, 20.0  ;;  %7843 = vpow2.f32 %v4786_v63  ;;  %v4606_v57 = vmin.f32 %v11240_v62, 20.0 }
 0x347   : > { %v4019_v11 = vrot.slane %v11729_v42, %v8587_v47  ;;  %v7834_v59 = vpop.eup %7833  ;;  %v5888_v17 = vadd.f32 %v5887_v40, %v5886_v19  ;;  %v5327_v0 = vmul.f32 %v11184_v1, %v5326_v54  ;;  %v5308_v52 = vadd.f32 1.0, %v5307_v55 }
 0x348   : > { %7845 = vlog2.f32 %v5331_v29  ;;  %v5878_v58 = vrot.slane %v5877_v46, 2  ;;  %v5324_v33 = vmul.f32 0.6931472, %v7834_v59  ;;  %v4796_v41 = vmul.f32 1.442695, %v4606_v57  ;;  %v11733_v57 = vld [vmem:[#allocation42_spill] sm:$0xff] }
 0x349   : > { %v11250_v30 = vadd.f32 %v4019_v11, %v2578_v32  ;;  %v5895_v38 = vadd.f32 %v5894_v48, %v5893_v50  ;;  %vm5329_vm2 = vcmp.lt.f32.partialorder %v5328_v36, 0.0004427343  ;;  %v5310_v7 = vand.u32 2147483647, %v11191_v44 }
 0x34a   : > { %v11731_v27 = vcombine.high %v11730_v49, %v11730_v49  ;;  %v5879_v60 = vadd.f32 %v5878_v58, %v5877_v46  ;;  %v5330_v1 = vsel %vm5329_vm2, %v5327_v0, %v5324_v33  ;;  %7847 = vpow2.f32 %v4796_v41 }
 0x34b   : > { %v4604_v14 = vmin.f32 %v11250_v30, 20.0  ;;  %v7836_v35 = vpop.eup %7835  ;;  %v5434_v24 = vsel %vm4666_vm15, %v11095_v4, %v5330_v1  ;;  %v5309_v42 = vmul.f32 %v11191_v44, %v5308_v52  ;;  %v2589_v53 = vadd.f32 %v7253_v18, %v7181_v15 }
 0x34c   : > { %v3771_v19 = vrot.slane %v11731_v27, %v8522_v3  ;;  %v5880_v43 = vrot.slane %v5879_v60, 1  ;;  %v5498_v20 = vmul.f32 %v11117_v39, %v5434_v24  ;;  %v5306_v10 = vmul.f32 0.6931472, %v7836_v35  ;;  %v11732_v39 = vld [vmem:[#allocation5_spill] sm:$0xff] }
 0x34d   : > { %v4792_v34 = vmul.f32 1.442695, %v4604_v14  ;;  %v7838_v3 = vpop.eup %7837  ;;  %v6013_v2 = vmul.f32 %v11112_v28, %v5888_v17  ;;  %vm5311_vm3 = vcmp.lt.f32.partialorder %v5310_v7, 0.0004427343  ;;  %v5334_v26 = vmul.f32 -0.5, %v11235_v5  ;;  %v7901_v14 = vld [vmem:[%s8016_s28 + $0x30] sm:$0xff] }
 0x34e   : > { %v3775_v9 = vcombine.high %v3771_v19, %v3771_v19  ;;  %v7840_v4 = vpop.eup %7839  ;;  %v6014_v44 = vmul.f32 %v11112_v28, %v5895_v38  ;;  %v5881_v25 = vadd.f32 %v5880_v43, %v5879_v60  ;;  %v5312_v13 = vsel %vm5311_vm3, %v5309_v42, %v5306_v10 }
 0x34f   : > { %7849 = vpow2.f32 %v4792_v34  ;;  %v7842_v40 = vpop.eup %7841  ;;  %v6787_v12 = vmul.f32 -1.442695, %v11732_v39  ;;  %v5432_v21 = vsel %vm4664_vm1, %v11089_v23, %v5312_v13  ;;  %v2581_v63 = vadd.f32 %v2580_v37, %v2267_v6 }
 0x350   : > { %v4031_v50 = vrot.slane %v3775_v9, %v8587_v47  ;;  %7851 = vpow2.f32 %v10770_v31  ;;  %v6012_v54 = vmul.f32 %v11112_v28, %v5881_v25  ;;  %v5496_v55 = vmul.f32 %v7840_v4, %v5432_v21 }
 0x351   : > { %v6084_v61 = vadd.f32 %v11143_v8, %v6013_v2  ;;  %v5335_v32 = vadd.f32 1.0, %v5334_v26  ;;  %v6085_v36 = vadd.f32 %v11143_v8, %v6014_v44  ;;  %v5337_v29 = vand.u32 2147483647, %v11235_v5 }
 0x352   : > { %v11272_v56 = vadd.f32 %v4031_v50, %v2589_v53  ;;  %v6083_v31 = vadd.f32 %v11143_v8, %v6012_v54  ;;  %v4023_v46 = vrot.slane %v3771_v19, %v8587_v47  ;;  %7853 = vpow2.f32 %v6787_v12 }
 0x353   : > { %v11281_v23 = vpop.eup %7843  ;;  %v6785_v11 = vmul.f32 -1.442695, %v11733_v57  ;;  %v4409_v0 = vadd.f32 1.0, %v10304_v51  ;;  %v6259_v41 = vrot.slane %v6084_v61, 2  ;;  %v5336_v18 = vmul.f32 %v11235_v5, %v5335_v32 }
 0x354   : > { %v4607_v48 = vmin.f32 %v11272_v56, 20.0  ;;  %v6257_v52 = vrot.slane %v6083_v31, 3  ;;  %v5313_v58 = vadd.f32 1.0, %v11281_v23  ;;  %v11286_v33 = vadd.f32 %v4023_v46, %v2581_v63 }
 0x355   : > { %v7846_v17 = vpop.eup %7845  ;;  %v6261_v47 = vrot.slane %v6085_v36, 1  ;;  %vm5338_vm5 = vcmp.lt.f32.partialorder %v5337_v29, 0.0004427343  ;;  %v5910_v49 = vsel %vm668_vm0, %v5498_v20, 0.0  ;;  %vm4667_vm7 = vcmp.gt.f32.partialorder %v11163_v22, 20.0 }
 0x356   : > { %v4798_v59 = vmul.f32 1.442695, %v4607_v48  ;;  %v5333_v15 = vmul.f32 0.6931472, %v7846_v17  ;;  %v6258_v38 = vsel %vm6171_vm12, %v6257_v52, %v11238_v16  ;;  %v4605_v1 = vmin.f32 %v11286_v33, 20.0 }
 0x357   : > { %v11291_v7 = vpop.eup %7847  ;;  %v6260_v51 = vsel %vm6174_vm13, %v6259_v41, %v6258_v38  ;;  %v4414_v16 = vadd.f32 1.0, %v7838_v3  ;;  %v5911_v42 = vrot.slane %v5910_v49, 4  ;;  %v5896_v43 = vsel %vm668_vm0, %v5496_v55, 0.0 }
 0x358   : > { %7855 = vpow2.f32 %v4798_v59  ;;  %v5339_v27 = vsel %vm5338_vm5, %v5336_v18, %v5333_v15  ;;  %v6262_v19 = vsel %vm6177_vm14, %v6261_v47, %v6260_v51  ;;  %v5358_v60 = vadd.f32 1.0, %v11291_v7 }
 0x359   : > { %7857 = vlog2.f32 %v5313_v58  ;;  %v5435_v5 = vsel %vm4667_vm7, %v11163_v22, %v5339_v27  ;;  %v11301_v35 = vadd.f32 %v7901_v14, %v6262_v19  ;;  %v5316_v10 = vmul.f32 -0.5, %v11281_v23 }
 0x35a   : > { %7859 = vrcp.f32 %v4409_v0  ;;  %v5499_v24 = vmul.f32 %v7842_v40, %v5435_v5  ;;  %v4794_v3 = vmul.f32 1.442695, %v4605_v1  ;;  %v5912_v50 = vadd.f32 %v5911_v42, %v5910_v49 }
 0x35b   : > { %7861 = vlog2.f32 %v5358_v60  ;;  %v6299_v9 = vmin.f32 %v11301_v35, 20.0  ;;  %v5897_v37 = vrot.slane %v5896_v43, 4  ;;  %v5317_v44 = vadd.f32 1.0, %v5316_v10 }
 0x35c   : > { %v11303_v53 = vpop.eup %7849  ;;  %7863 = vpow2.f32 %v6785_v11  ;;  %v5917_v20 = vsel %vm668_vm0, %v5499_v24, 0.0  ;;  %v5361_v25 = vmul.f32 -0.5, %v11291_v7  ;;  %v5319_v40 = vand.u32 2147483647, %v11281_v23 }
 0x35d   : > { %v7852_v22 = vpop.eup %7851  ;;  %v5340_v34 = vadd.f32 1.0, %v11303_v53  ;;  %7865 = vrcp.f32 %v4414_v16  ;;  %v6321_v2 = vmul.f32 1.442695, %v6299_v9  ;;  %v5918_v26 = vrot.slane %v5917_v20, 4 }
 0x35e   : > { %v4412_v6 = vadd.f32 1.0, %v7852_v22  ;;  %v5913_v12 = vrot.slane %v5912_v50, 2  ;;  %v5898_v55 = vadd.f32 %v5897_v37, %v5896_v43  ;;  %v5318_v32 = vmul.f32 %v11281_v23, %v5317_v44 }
 0x35f   : > { %7867 = vlog2.f32 %v5340_v34  ;;  %v7854_v4 = vpop.eup %7853  ;;  %v5919_v13 = vadd.f32 %v5918_v26, %v5917_v20  ;;  %v5362_v48 = vadd.f32 1.0, %v5361_v25  ;;  %v5343_v36 = vmul.f32 -0.5, %v11303_v53 }
 0x360   : > { %7869 = vpow2.f32 %v6321_v2  ;;  %v4415_v54 = vadd.f32 1.0, %v7854_v4  ;;  %vm5320_vm9 = vcmp.lt.f32.partialorder %v5319_v40, 0.0004427343  ;;  %v5364_v29 = vand.u32 2147483647, %v11291_v7 }
 0x361   : > { %7871 = vpow2.f32 %v4794_v3  ;;  %v5920_v31 = vrot.slane %v5919_v13, 2  ;;  %v5914_v57 = vadd.f32 %v5913_v12, %v5912_v50  ;;  %vm4665_vm10 = vcmp.gt.f32.partialorder %v11208_v45, 20.0 }
 0x362   : > { %7873 = vrcp.f32 %v4412_v6  ;;  %v5899_v17 = vrot.slane %v5898_v55, 2  ;;  %v5363_v41 = vmul.f32 %v11291_v7, %v5362_v48  ;;  %v5344_v15 = vadd.f32 1.0, %v5343_v36 }
 0x363   : > { %v5921_v18 = vadd.f32 %v5920_v31, %v5919_v13  ;;  %vm5365_vm15 = vcmp.lt.f32.partialorder %v5364_v29, 0.0004427343  ;;  %v5346_v47 = vand.u32 2147483647, %v11303_v53  ;;  %v5915_v51 = vrot.slane %v5914_v57, 1 }
 0x364   : > { %vm4670_vm1 = vcmp.gt.f32.partialorder %v11240_v62, 20.0  ;;  %v5345_v24 = vmul.f32 %v11303_v53, %v5344_v15  ;;  %vm4668_vm3 = vcmp.gt.f32.partialorder %v11250_v30, 20.0  ;;  %vm4671_vm7 = vcmp.gt.f32.partialorder %v11272_v56, 20.0 }
 0x365   : > { %v11312_v39 = vpop.eup %7855  ;;  %v5922_v22 = vrot.slane %v5921_v18, 1  ;;  %vm5347_vm2 = vcmp.lt.f32.partialorder %v5346_v47, 0.0004427343  ;;  %v5916_v20 = vadd.f32 %v5915_v51, %v5914_v57 }
 0x366   : > { %v7858_v21 = vpop.eup %7857  ;;  %v5367_v63 = vadd.f32 1.0, %v11312_v39  ;;  %v5370_v7 = vmul.f32 -0.5, %v11312_v39  ;;  %v5373_v6 = vand.u32 2147483647, %v11312_v39 }
 0x367   : > { %v5315_v61 = vmul.f32 0.6931472, %v7858_v21  ;;  %v7860_v46 = vpop.eup %7859  ;;  %v5923_v37 = vadd.f32 %v5922_v22, %v5921_v18  ;;  %v6017_v25 = vmul.f32 %v11112_v28, %v5916_v20 }
 0x368   : > { %7875 = vlog2.f32 %v5367_v63  ;;  %v7862_v59 = vpop.eup %7861  ;;  %v5371_v2 = vadd.f32 1.0, %v5370_v7  ;;  %vm5374_vm5 = vcmp.lt.f32.partialorder %v5373_v6, 0.0004427343 }
 0x369   : > { %v5321_v11 = vsel %vm5320_vm9, %v5318_v32, %v5315_v61  ;;  %v7864_v52 = vpop.eup %7863  ;;  %v5360_v23 = vmul.f32 0.6931472, %v7862_v59  ;;  %7877 = vrcp.f32 %v4415_v54  ;;  %v6018_v32 = vmul.f32 %v11112_v28, %v5923_v37 }
 0x36a   : > { %v5433_v0 = vsel %vm4665_vm10, %v11208_v45, %v5321_v11  ;;  %v7866_v38 = vpop.eup %7865  ;;  %v5900_v45 = vadd.f32 %v5899_v17, %v5898_v55  ;;  %v4413_v9 = vadd.f32 1.0, %v7864_v52  ;;  %v5372_v54 = vmul.f32 %v11312_v39, %v5371_v2 }
 0x36b   : > { %v5497_v58 = vmul.f32 %v7860_v46, %v5433_v0  ;;  %v5366_v27 = vsel %vm5365_vm15, %v5363_v41, %v5360_v23  ;;  %v6088_v11 = vadd.f32 %v11143_v8, %v6017_v25  ;;  %v6089_v41 = vadd.f32 %v11143_v8, %v6018_v32 }
 0x36c   : > { %v7868_v19 = vpop.eup %7867  ;;  %v5438_v60 = vsel %vm4670_vm1, %v11240_v62, %v5366_v27  ;;  %v5901_v3 = vrot.slane %v5900_v45, 1  ;;  %vm6307_vm9 = vcmp.gt.f32.partialorder %v11301_v35, 20.0 }
 0x36d   : > { %v5903_v49 = vsel %vm668_vm0, %v5497_v58, 0.0  ;;  %v11326_v1 = vpop.eup %7869  ;;  %v5502_v16 = vmul.f32 %v7866_v38, %v5438_v60  ;;  %v5342_v14 = vmul.f32 0.6931472, %v7868_v19  ;;  %v6265_v51 = vrot.slane %v6088_v11, 6 }
 0x36e   : > { %v5904_v5 = vrot.slane %v5903_v49, 4  ;;  %v11329_v42 = vpop.eup %7871  ;;  %v6379_v43 = vadd.f32 1.0, %v11326_v1  ;;  %v5902_v55 = vadd.f32 %v5901_v3, %v5900_v45  ;;  %v6382_v61 = vmul.f32 -0.5, %v11326_v1 }
 0x36f   : > { %v5348_v34 = vsel %vm5347_vm2, %v5345_v24, %v5342_v14  ;;  %v5349_v62 = vadd.f32 1.0, %v11329_v42  ;;  %v7874_v26 = vpop.eup %7873  ;;  %v5938_v40 = vsel %vm668_vm0, %v5502_v16, 0.0  ;;  %v5352_v59 = vmul.f32 -0.5, %v11329_v42 }
 0x370   : > { %v5905_v10 = vadd.f32 %v5904_v5, %v5903_v49  ;;  %7879 = vlog2.f32 %v6379_v43  ;;  %v5436_v53 = vsel %vm4668_vm3, %v11250_v30, %v5348_v34  ;;  %v5939_v29 = vrot.slane %v5938_v40, 4 }
 0x371   : > { %7881 = vlog2.f32 %v5349_v62  ;;  %v5500_v4 = vmul.f32 %v7874_v26, %v5436_v53  ;;  %v6015_v17 = vmul.f32 %v11112_v28, %v5902_v55  ;;  %v6383_v58 = vadd.f32 1.0, %v6382_v61 }
 0x372   : > { %v5906_v50 = vrot.slane %v5905_v10, 2  ;;  %7883 = vrcp.f32 %v4413_v9  ;;  %v6385_v23 = vand.u32 2147483647, %v11326_v1  ;;  %v5353_v49 = vadd.f32 1.0, %v5352_v59 }
 0x373   : > { %v5924_v12 = vsel %vm668_vm0, %v5500_v4, 0.0  ;;  %v5355_v27 = vand.u32 2147483647, %v11329_v42  ;;  %v6086_v45 = vadd.f32 %v11143_v8, %v6015_v17  ;;  %v6384_v24 = vmul.f32 %v11326_v1, %v6383_v58 }
 0x374   : > { %v5907_v13 = vadd.f32 %v5906_v50, %v5905_v10  ;;  %v5925_v30 = vrot.slane %v5924_v12, 4  ;;  %vm6386_vm10 = vcmp.lt.f32.partialorder %v6385_v23, 0.0004427343  ;;  %v6267_v9 = vrot.slane %v6089_v41, 5  ;;  %v7902_v23 = vld [vmem:[%s8016_s28 + $0x38] sm:$0xff] }
 0x375   : > { %v7876_v44 = vpop.eup %7875  ;;  %v5354_v2 = vmul.f32 %v11329_v42, %v5353_v49  ;;  %vm5356_vm15 = vcmp.lt.f32.partialorder %v5355_v27, 0.0004427343 }
 0x376   : > { %v5369_v21 = vmul.f32 0.6931472, %v7876_v44  ;;  %v5908_v63 = vrot.slane %v5907_v13, 1  ;;  %v7878_v36 = vpop.eup %7877  ;;  %v5926_v46 = vadd.f32 %v5925_v30, %v5924_v12 }
 0x378   : > { %v5375_v48 = vsel %vm5374_vm5, %v5372_v54, %v5369_v21  ;;  %v5909_v31 = vadd.f32 %v5908_v63, %v5907_v13  ;;  %v5927_v52 = vrot.slane %v5926_v46, 2 }
 0x379   : > { %v5439_v57 = vsel %vm4671_vm7, %v11272_v56, %v5375_v48  ;;  %v5940_v56 = vadd.f32 %v5939_v29, %v5938_v40 }
 0x37a   : > { %v5503_v39 = vmul.f32 %v7878_v36, %v5439_v57  ;;  %v6016_v0 = vmul.f32 %v11112_v28, %v5909_v31  ;;  %v5928_v47 = vadd.f32 %v5927_v52, %v5926_v46 }
 0x37b   : > { %v5941_v22 = vrot.slane %v5940_v56, 2 }
 0x37c   : > { %v5945_v15 = vsel %vm668_vm0, %v5503_v39, 0.0  ;;  %v6087_v18 = vadd.f32 %v11143_v8, %v6016_v0  ;;  %v5929_v60 = vrot.slane %v5928_v47, 1 }
 0x37d   : > { %v5946_v38 = vrot.slane %v5945_v15, 4  ;;  %v7880_v19 = vpop.eup %7879  ;;  %v5942_v42 = vadd.f32 %v5941_v22, %v5940_v56 }
 0x37e   : > { %v6263_v5 = vrot.slane %v6087_v18, 7  ;;  %v7882_v16 = vpop.eup %7881  ;;  %v6381_v14 = vmul.f32 0.6931472, %v7880_v19  ;;  %v5930_v20 = vadd.f32 %v5929_v60, %v5928_v47 }
 0x37f   : > { %v5947_v7 = vadd.f32 %v5946_v38, %v5945_v15  ;;  %v5351_v10 = vmul.f32 0.6931472, %v7882_v16  ;;  %v7884_v34 = vpop.eup %7883  ;;  %v5943_v21 = vrot.slane %v5942_v42, 1 }
 0x380   : > { %v6264_v43 = vsel %vm6159_vm4, %v6263_v5, %v6086_v45  ;;  %v6387_v62 = vsel %vm6386_vm10, %v6384_v24, %v6381_v14  ;;  %v6019_v1 = vmul.f32 %v11112_v28, %v5930_v20  ;;  %vm4669_vm4 = vcmp.gt.f32.partialorder %v11286_v33, 20.0 }
 0x381   : > { %v6266_v3 = vsel %vm6162_vm6, %v6265_v51, %v6264_v43  ;;  %v6403_v26 = vsel %vm6307_vm9, %v11301_v35, %v6387_v62  ;;  %v5948_v53 = vrot.slane %v5947_v7, 2  ;;  %v5357_v6 = vsel %vm5356_vm15, %v5354_v2, %v5351_v10 }
 0x382   : > { %v6268_v50 = vsel %vm6165_vm8, %v6267_v9, %v6266_v3  ;;  %6411 = vst.msk [vmem:[%s9912_s30 + $0x30] sm:$0xff] %vm668_vm0, %v6403_v26  ;;  %v6090_v37 = vadd.f32 %v11143_v8, %v6019_v1  ;;  %v5437_v4 = vsel %vm4669_vm4, %v11286_v33, %v5357_v6  ;;  %v5944_v30 = vadd.f32 %v5943_v21, %v5942_v42 }
 0x383   : > { %v5501_v44 = vmul.f32 %v7884_v34, %v5437_v4  ;;  %v5949_v13 = vadd.f32 %v5948_v53, %v5947_v7 }
 0x384   : > { %v6269_v25 = vrot.slane %v6090_v37, 4  ;;  %v6021_v33 = vmul.f32 %v11112_v28, %v5944_v30 }
 0x385   : > { %v5931_v35 = vsel %vm668_vm0, %v5501_v44, 0.0  ;;  %v5950_v54 = vrot.slane %v5949_v13, 1 }
 0x386   : > { %v6270_v40 = vsel %vm6168_vm11, %v6269_v25, %v6268_v50  ;;  %v5932_v12 = vrot.slane %v5931_v35, 4  ;;  %v6092_v46 = vadd.f32 %v11143_v8, %v6021_v33 }
 0x387   : > { %v5951_v61 = vadd.f32 %v5950_v54, %v5949_v13 }
 0x388   : > { %v5933_v55 = vadd.f32 %v5932_v12, %v5931_v35  ;;  %v6273_v59 = vrot.slane %v6092_v46, 2 }
 0x389   : > { %v6022_v36 = vmul.f32 %v11112_v28, %v5951_v61 }
 0x38a   : > { %v5934_v63 = vrot.slane %v5933_v55, 2 }
 0x38b   : > { %v6093_v57 = vadd.f32 %v11143_v8, %v6022_v36 }
 0x38c   : > { %v5935_v32 = vadd.f32 %v5934_v63, %v5933_v55 }
 0x38d   : > { %v6275_v17 = vrot.slane %v6093_v57, 1 }
 0x38e   : > { %v5936_v48 = vrot.slane %v5935_v32, 1 }
 0x390   : > { %v5937_v31 = vadd.f32 %v5936_v48, %v5935_v32 }
 0x392   : > { %v6020_v29 = vmul.f32 %v11112_v28, %v5937_v31 }
 0x394   : > { %v6091_v11 = vadd.f32 %v11143_v8, %v6020_v29 }
 0x396   : > { %v6271_v39 = vrot.slane %v6091_v11, 3 }
 0x398   : > { %v6272_v0 = vsel %vm6171_vm12, %v6271_v39, %v6270_v40 }
 0x399   : > { %v6274_v52 = vsel %vm6174_vm13, %v6273_v59, %v6272_v0 }
 0x39a   : > { %v6276_v58 = vsel %vm6177_vm14, %v6275_v17, %v6274_v52 }
 0x39b   : > { %v6292_v41 = vadd.f32 %v7902_v23, %v6276_v58 }
 0x39d   : > { %v6300_v15 = vmin.f32 %v6292_v41, 20.0  ;;  %vm6308_vm8 = vcmp.gt.f32.partialorder %v6292_v41, 20.0 }
 0x39f   : > { %v6323_v28 = vmul.f32 1.442695, %v6300_v15 }
 0x3a1   : > { %7885 = vpow2.f32 %v6323_v28 }
 0x3ae   : > { %v7886_v18 = vpop.eup %7885 }
 0x3af   : > { %v6388_v56 = vadd.f32 1.0, %v7886_v18  ;;  %v6391_v47 = vmul.f32 -0.5, %v7886_v18  ;;  %v6394_v38 = vand.u32 2147483647, %v7886_v18 }
 0x3b1   : > { %7887 = vlog2.f32 %v6388_v56  ;;  %v6392_v8 = vadd.f32 1.0, %v6391_v47  ;;  %vm6395_vm6 = vcmp.lt.f32.partialorder %v6394_v38, 0.0004427343 }
 0x3b3   : > { %v6393_v27 = vmul.f32 %v7886_v18, %v6392_v8 }
 0x3be   : > { %v7888_v51 = vpop.eup %7887 }
 0x3bf   : > { %v6390_v49 = vmul.f32 0.6931472, %v7888_v51 }
 0x3c1   : > { %v6396_v19 = vsel %vm6395_vm6, %v6393_v27, %v6390_v49 }
 0x3c2   : > { %v6404_v45 = vsel %vm6308_vm8, %v6292_v41, %v6396_v19 }
 0x3c3   : > { %6412 = vst.msk [vmem:[%s9912_s30 + $0x38] sm:$0xff] %vm668_vm0, %v6404_v45 }
 0x3c4 PF: > { %s23_s25 = sadd.s32 1, %s7909_s25  }
 0x3c5   : > { %p20_p5 = scmp.ge.s32.totalorder %s23_s25, 4  }
 0x3c7   :  { %22 = sbr.rel (!%p20_p5) target bundleno = 1 (0x1), region = 108 }

</bundles_post_ra>
